<compile_context>
chip_gen: v5e
topology: v5e:2x2
jax: 0.10.0
libtpu: 0.0.40
codegen_flags: <defaults>
</compile_context>

<pallas_src>
import math

import jax
import jax.numpy as jnp
from jax.experimental import pallas as pl
from jax.experimental.pallas import tpu as pltpu

LATDIM = 32        # args.latdim
FC_LAYERS = 2      # args.fc_layer
ACT = "relu"       # args.act
DROP_RATE = 0.1    # args.drop_rate (identity at inference)
LN_EPS = 1e-5
LANES = 128


def _round_up(x, m):
    return ((x + m - 1) // m) * m


def _cdiv(a, b):
    return -(-a // b)


def _mlp_fused_kernel(x_ref, w_ref, b_ref, g_ref, beta_ref, m_ref, o_ref):
    """All layers fused; operates on lane-packed (tm, 128) activation tiles.

    x_ref:    (tm, 128)       packed f32 activations (PACK tokens per row)
    w_ref:    (L, 128, 128)   block-diagonal weights (matmul dtype)
    b_ref:    (L, 1, 128)     lane-tiled bias (f32)
    g_ref:    (L, 1, 128)     lane-tiled LayerNorm gamma (f32)
    beta_ref: (L, 1, 128)     lane-tiled LayerNorm beta (f32)
    m_ref:    (128, 128)      group-mean matrix, 1/D in each DxD diag block (matmul dtype)
    o_ref:    (tm, 128)       packed f32 output tile
    """
    x = x_ref[...]                     # f32, stays resident across layers
    mmat = m_ref[...]                  # matmul-dtype, resident
    cd = mmat.dtype                    # matmul operand dtype (bf16 by default)
    n_layers = w_ref.shape[0]
    for l in range(n_layers):          # tiny static trip count (FC_LAYERS)
        # Linear on the MXU; full 128-wide tiles thanks to block-diagonal
        # packing.  Operands in `cd`, accumulation in f32.
        h = jnp.dot(x.astype(cd), w_ref[l], preferred_element_type=jnp.float32)
        h = h + b_ref[l]               # f32 elementwise from here on
        # Activation.
        if ACT == "relu":
            h = jnp.maximum(h, 0.0)
        elif ACT == "relu6":
            h = jnp.clip(h, 0.0, 6.0)
        elif ACT in ("identity", None):
            pass
        # TODO(synk): dropout is identity in eval mode; a training-mode mask
        # would use pltpu.prng_random_bits if ever needed.
        s = h + x                      # residual (f32)
        # Per-token LayerNorm via segmented (per-32-lane-group) reductions done
        # as two back-to-back matmuls sharing the same resident RHS:
        #   mean = E[s], msq = E[s^2], var = msq - mean^2   (f32 accumulation)
        mean = jnp.dot(s.astype(cd), mmat, preferred_element_type=jnp.float32)
        msq = jnp.dot((s * s).astype(cd), mmat, preferred_element_type=jnp.float32)
        var = jnp.maximum(msq - mean * mean, 0.0)
        x = (s - mean) * jax.lax.rsqrt(var + LN_EPS) * g_ref[l] + beta_ref[l]
    o_ref[...] = x.astype(o_ref.dtype)   # single cast at the store


def _pack_params(weights, biases, gammas, betas, pack, matmul_dtype):
    """Build lane-dense (128-wide) parameter tensors from (L,D,D)/(L,D) params."""
    L, D, _ = weights.shape
    W = pack * D
    eye_p = jnp.eye(pack, dtype=weights.dtype)
    # Block-diagonal weights: out[l, p*D+i, q*D+j] = (p==q) * weights[l, i, j]
    w_bd = jnp.einsum("pq,lio->lpiqo", eye_p, weights).reshape(L, W, W)
    w_bd = w_bd.astype(matmul_dtype)
    b_p = jnp.tile(biases, (1, pack))[:, None, :].astype(jnp.float32)    # (L,1,W)
    g_p = jnp.tile(gammas, (1, pack))[:, None, :].astype(jnp.float32)
    beta_p = jnp.tile(betas, (1, pack))[:, None, :].astype(jnp.float32)
    # Segmented group-mean matrix: 1/D inside each DxD diagonal block.
    # 0 and 1/32 are exactly representable in bf16 -> free downcast.
    mmat = jnp.kron(jnp.eye(pack, dtype=jnp.float32),
                    jnp.full((D, D), 1.0 / D, dtype=jnp.float32)).astype(matmul_dtype)
    return w_bd, b_p, g_p, beta_p, mmat


def _choose_tiling(n_tokens, pack, tm_req, min_steps=4):
    """Pick (tm, n_pack): tm = packed rows per grid step (multiple of 8).

    Prefers large tiles (per-step overhead ~0.35us), but guarantees an even
    grid of >= min_steps steps when the input permits so both v7x TensorCores
    get >= 2 pipelined steps each under dimension_semantics=("parallel",).
    """
    n_pack_raw = _cdiv(max(n_tokens, 1), pack)
    n8 = _round_up(n_pack_raw, 8)
    tm = _round_up(max(8, min(tm_req, n8)), 8)
    if n8 >= min_steps * 8:
        steps = _cdiv(n8, tm)
        if steps < min_steps or steps % 2:
            target = max(min_steps, steps + (steps % 2))
            tm = max(8, min(tm, _round_up(_cdiv(n8, target), 8)))
    n_pack = _round_up(n8, tm)
    return tm, n_pack


def mlp_forward(x, params, *, tm=1024, matmul_dtype=jnp.bfloat16):
    """Fused forward of the whole MLP in a single pallas_call.

    x: (N, D) f32 activations.
    params: (weights (L,D,D) stored as in_feat x out_feat, biases (L,D),
             gammas (L,D), betas (L,D)).
    tm: requested packed-row tile (each packed row holds 128//D tokens).
    matmul_dtype: MXU operand dtype (bf16 default; jnp.float32 for full fidelity).
        Accumulation and all elementwise math are always f32.
    """
    weights, biases, gammas, betas = params
    N, D = x.shape
    L = weights.shape[0]
    assert LANES % D == 0, "latdim must divide 128 for lane packing"
    pack = LANES // D
    W = LANES

    tm, n_pack = _choose_tiling(N, pack, tm)
    n_pad = n_pack * pack

    x_p = x if n_pad == N else jnp.pad(x, ((0, n_pad - N), (0, 0)))
    x_p = x_p.reshape(n_pack, W)                              # free row-major repack

    w_bd, b_p, g_p, beta_p, mmat = _pack_params(
        weights, biases, gammas, betas, pack, matmul_dtype)

    # VMEM budget: double-buffered in/out activation tiles + (double-buffered,
    # grid-invariant) params + headroom.  Cap at 48 MiB: safe on v7x's 64 MiB
    # physical VMEM; v5e/v6e (128 MiB) could go higher for much larger tm.
    cd_bytes = jnp.dtype(matmul_dtype).itemsize
    tile_bytes = tm * W * x.dtype.itemsize
    param_bytes = (L * W * W + W * W) * cd_bytes + 3 * L * W * 4
    vmem_limit = 4 * tile_bytes + 2 * param_bytes + (4 << 20)
    vmem_limit = int(min(max(vmem_limit, 16 << 20), 48 << 20))

    out_p = pl.pallas_call(
        _mlp_fused_kernel,
        out_shape=jax.ShapeDtypeStruct((n_pack, W), x.dtype),
        grid_spec=pltpu.PrefetchScalarGridSpec(
            num_scalar_prefetch=0,
            grid=(n_pack // tm,),
            in_specs=[
                pl.BlockSpec((tm, W), lambda i: (i, 0)),        # packed activations
                pl.BlockSpec((L, W, W), lambda i: (0, 0, 0)),   # block-diag weights
                pl.BlockSpec((L, 1, W), lambda i: (0, 0, 0)),   # bias
                pl.BlockSpec((L, 1, W), lambda i: (0, 0, 0)),   # gamma
                pl.BlockSpec((L, 1, W), lambda i: (0, 0, 0)),   # beta
                pl.BlockSpec((W, W), lambda i: (0, 0)),         # group-mean matrix
            ],
            out_specs=pl.BlockSpec((tm, W), lambda i: (i, 0)),
        ),
        compiler_params=pltpu.CompilerParams(
            dimension_semantics=("parallel",),
            vmem_limit_bytes=vmem_limit,
        ),
    )(x_p, w_bd, b_p, g_p, beta_p, mmat)

    out = out_p.reshape(n_pad, D)
    return out if n_pad == N else out[:N]


def init_params(key, latdim, n_layers):
    """Matches PyTorch defaults: nn.Linear kaiming_uniform(a=sqrt(5)) -> both
    weight and bias ~ U(-1/sqrt(fan_in), 1/sqrt(fan_in)); LayerNorm weight=1, bias=0."""
    bound = 1.0 / math.sqrt(latdim)
    ws, bs = [], []
    for _ in range(n_layers):
        key, kw, kb = jax.random.split(key, 3)
        w = jax.random.uniform(kw, (latdim, latdim), jnp.float32, -bound, bound)
        ws.append(w.T)  # store as (in_feat, out_feat) so forward does x @ w
        bs.append(jax.random.uniform(kb, (latdim,), jnp.float32, -bound, bound))
    weights = jnp.stack(ws)                              # (L, D, D)
    biases = jnp.stack(bs)                               # (L, D)
    gammas = jnp.ones((n_layers, latdim), jnp.float32)   # (L, D)
    betas = jnp.zeros((n_layers, latdim), jnp.float32)   # (L, D)
    return weights, biases, gammas, betas


def mlp_reference(x, params, matmul_dtype=None):
    """Pure-JAX reference (un-packed layout).

    matmul_dtype=None: full-f32 math with pinned HIGHEST matmul precision
        (PyTorch-fidelity reference).
    matmul_dtype=bf16: mimics the kernel's matmul-operand rounding (operands in
        bf16, f32 accumulation) so the kernel can be checked at tight tolerance.
    """
    weights, biases, gammas, betas = params
    for l in range(weights.shape[0]):
        if matmul_dtype is None:
            h = jnp.dot(x, weights[l], precision=jax.lax.Precision.HIGHEST)
        else:
            h = jnp.dot(x.astype(matmul_dtype), weights[l].astype(matmul_dtype),
                        preferred_element_type=jnp.float32)
        h = h + biases[l]
        if ACT == "relu":
            h = jnp.maximum(h, 0.0)
        elif ACT == "relu6":
            h = jnp.clip(h, 0.0, 6.0)
        s = h + x
        if matmul_dtype is None:
            mean = jnp.mean(s, axis=-1, keepdims=True)
            var = jnp.mean((s - mean) ** 2, axis=-1, keepdims=True)
        else:
            sm = s.astype(matmul_dtype).astype(jnp.float32)
            mean = jnp.mean(sm, axis=-1, keepdims=True)
            msq = jnp.mean((s * s).astype(matmul_dtype).astype(jnp.float32),
                           axis=-1, keepdims=True)
            var = jnp.maximum(msq - mean * mean, 0.0)
        x = (s - mean) * jax.lax.rsqrt(var + LN_EPS) * gammas[l] + betas[l]
    return x


if __name__ == "__main__":
    key = jax.random.PRNGKey(0)
    k_x, k_p = jax.random.split(key)
    params = init_params(k_p, LATDIM, FC_LAYERS)

    # Multi-step grid: 4096 tokens -> 1024 packed rows -> tm=256, grid=(4,):
    # an even >=4-step "parallel" grid so both v7x TensorCores pipeline.
    N = 4096
    x = jax.random.normal(k_x, (N, LATDIM), jnp.float32)
    out = jax.block_until_ready(mlp_forward(x, params))
    assert out.shape == (N, LATDIM)

    # Tight structural check: compare against a reference applying the same
    # bf16 matmul-operand rounding (both sides accumulate in f32).
    ref_bf16 = mlp_reference(x, params, matmul_dtype=jnp.bfloat16)
    assert jnp.allclose(out, ref_bf16, atol=1e-3, rtol=1e-3), \
        "mismatch vs bf16-matmul reference (N=4096)"

    # Fidelity check vs the full-f32 PyTorch-style reference: bf16 matmul
    # operands with f32 accumulation keep the RMS error ~1e-3, well under 1e-2.
    ref_f32 = mlp_reference(x, params)
    rms = float(jnp.sqrt(jnp.mean((out - ref_f32) ** 2)))
    assert rms < 1e-2, f"excessive error vs f32 reference: rms={rms}"

    # Ragged-shape check: exercises the padding path (N not a multiple of 4*tm).
    x_small = jax.random.normal(k_x, (50, LATDIM), jnp.float32)
    out_small = jax.block_until_ready(mlp_forward(x_small, params))
    assert out_small.shape == (50, LATDIM)
    ref_small = mlp_reference(x_small, params, matmul_dtype=jnp.bfloat16)
    assert jnp.allclose(out_small, ref_small, atol=1e-3, rtol=1e-3), "mismatch (N=50)"

    print("KERNEL_OK")
</pallas_src>

<mosaic_0001>
module attributes {stable_mosaic.version = 11 : i64} {
  func.func @_mlp_fused_kernel(%arg0: i32, %arg1: memref<256x128xf32, #tpu.memory_space<vmem>>, %arg2: memref<2x128x128xbf16, #tpu.memory_space<vmem>>, %arg3: memref<2x1x128xf32, #tpu.memory_space<vmem>>, %arg4: memref<2x1x128xf32, #tpu.memory_space<vmem>>, %arg5: memref<2x1x128xf32, #tpu.memory_space<vmem>>, %arg6: memref<128x128xbf16, #tpu.memory_space<vmem>>, %arg7: memref<256x128xf32, #tpu.memory_space<vmem>>) attributes {dimension_semantics = [#tpu.dimension_semantics<parallel>], iteration_bounds = array<i64: 4>, scalar_prefetch = 0 : i64, scratch_operands = 0 : i64, tpu.core_type = #tpu.core_type<tc>, window_params = [{transform_indices = @transform_0, window_bounds = array<i64: 256, 128>}, {pipeline_mode = #tpu.pipeline_mode<synchronous>, transform_indices = @transform_1, window_bounds = array<i64: 2, 128, 128>}, {pipeline_mode = #tpu.pipeline_mode<synchronous>, transform_indices = @transform_2, window_bounds = array<i64: 2, 1, 128>}, {pipeline_mode = #tpu.pipeline_mode<synchronous>, transform_indices = @transform_3, window_bounds = array<i64: 2, 1, 128>}, {pipeline_mode = #tpu.pipeline_mode<synchronous>, transform_indices = @transform_4, window_bounds = array<i64: 2, 1, 128>}, {pipeline_mode = #tpu.pipeline_mode<synchronous>, transform_indices = @transform_5, window_bounds = array<i64: 128, 128>}, {transform_indices = @transform_6, window_bounds = array<i64: 256, 128>}]} {
    %c0 = arith.constant 0 : index
    %c0_0 = arith.constant 0 : index
    %0 = vector.load %arg1[%c0, %c0_0] : memref<256x128xf32, #tpu.memory_space<vmem>>, vector<256x128xf32>
    %c0_1 = arith.constant 0 : index
    %c0_2 = arith.constant 0 : index
    %1 = vector.load %arg6[%c0_1, %c0_2] : memref<128x128xbf16, #tpu.memory_space<vmem>>, vector<128x128xbf16>
    %2 = arith.truncf %0 : vector<256x128xf32> to vector<256x128xbf16>
    %c0_3 = arith.constant 0 : index
    %c0_4 = arith.constant 0 : index
    %c0_5 = arith.constant 0 : index
    %3 = vector.load %arg2[%c0_3, %c0_4, %c0_5] : memref<2x128x128xbf16, #tpu.memory_space<vmem>>, vector<1x128x128xbf16>
    %4 = vector.shape_cast %3 : vector<1x128x128xbf16> to vector<128x128xbf16>
    %cst = arith.constant dense<0.000000e+00> : vector<256x128xf32>
    %5 = tpu.matmul %2, %4, %cst {dimension_numbers = #tpu.dot_dimension_numbers<[1], [0], [0], [1], [0, 0, 1, 1], [], []>} : vector<256x128xbf16>, vector<128x128xbf16>, vector<256x128xf32> -> vector<256x128xf32>
    %c0_6 = arith.constant 0 : index
    %c0_7 = arith.constant 0 : index
    %c0_8 = arith.constant 0 : index
    %6 = vector.load %arg3[%c0_6, %c0_7, %c0_8] : memref<2x1x128xf32, #tpu.memory_space<vmem>>, vector<1x1x128xf32>
    %7 = vector.shape_cast %6 : vector<1x1x128xf32> to vector<1x128xf32>
    %8 = vector.broadcast %7 : vector<1x128xf32> to vector<256x128xf32>
    %9 = arith.addf %5, %8 : vector<256x128xf32>
    %cst_9 = arith.constant 0.000000e+00 : f32
    %10 = vector.broadcast %cst_9 : f32 to vector<256x128xf32>
    %11 = arith.maximumf %9, %10 : vector<256x128xf32>
    %12 = arith.addf %11, %0 : vector<256x128xf32>
    %13 = arith.truncf %12 : vector<256x128xf32> to vector<256x128xbf16>
    %cst_10 = arith.constant dense<0.000000e+00> : vector<256x128xf32>
    %14 = tpu.matmul %13, %1, %cst_10 {dimension_numbers = #tpu.dot_dimension_numbers<[1], [0], [0], [1], [0, 0, 1, 1], [], []>} : vector<256x128xbf16>, vector<128x128xbf16>, vector<256x128xf32> -> vector<256x128xf32>
    %15 = arith.mulf %12, %12 : vector<256x128xf32>
    %16 = arith.truncf %15 : vector<256x128xf32> to vector<256x128xbf16>
    %cst_11 = arith.constant dense<0.000000e+00> : vector<256x128xf32>
    %17 = tpu.matmul %16, %1, %cst_11 {dimension_numbers = #tpu.dot_dimension_numbers<[1], [0], [0], [1], [0, 0, 1, 1], [], []>} : vector<256x128xbf16>, vector<128x128xbf16>, vector<256x128xf32> -> vector<256x128xf32>
    %18 = arith.mulf %14, %14 : vector<256x128xf32>
    %19 = arith.subf %17, %18 : vector<256x128xf32>
    %cst_12 = arith.constant 0.000000e+00 : f32
    %20 = vector.broadcast %cst_12 : f32 to vector<256x128xf32>
    %21 = arith.maximumf %19, %20 : vector<256x128xf32>
    %22 = arith.subf %12, %14 : vector<256x128xf32>
    %cst_13 = arith.constant 9.99999974E-6 : f32
    %23 = vector.broadcast %cst_13 : f32 to vector<256x128xf32>
    %24 = arith.addf %21, %23 : vector<256x128xf32>
    %25 = math.rsqrt %24 : vector<256x128xf32>
    %26 = arith.mulf %22, %25 : vector<256x128xf32>
    %c0_14 = arith.constant 0 : index
    %c0_15 = arith.constant 0 : index
    %c0_16 = arith.constant 0 : index
    %27 = vector.load %arg4[%c0_14, %c0_15, %c0_16] : memref<2x1x128xf32, #tpu.memory_space<vmem>>, vector<1x1x128xf32>
    %28 = vector.shape_cast %27 : vector<1x1x128xf32> to vector<1x128xf32>
    %29 = vector.broadcast %28 : vector<1x128xf32> to vector<256x128xf32>
    %30 = arith.mulf %26, %29 : vector<256x128xf32>
    %c0_17 = arith.constant 0 : index
    %c0_18 = arith.constant 0 : index
    %c0_19 = arith.constant 0 : index
    %31 = vector.load %arg5[%c0_17, %c0_18, %c0_19] : memref<2x1x128xf32, #tpu.memory_space<vmem>>, vector<1x1x128xf32>
    %32 = vector.shape_cast %31 : vector<1x1x128xf32> to vector<1x128xf32>
    %33 = vector.broadcast %32 : vector<1x128xf32> to vector<256x128xf32>
    %34 = arith.addf %30, %33 : vector<256x128xf32>
    %35 = arith.truncf %34 : vector<256x128xf32> to vector<256x128xbf16>
    %c1 = arith.constant 1 : index
    %c0_20 = arith.constant 0 : index
    %c0_21 = arith.constant 0 : index
    %36 = vector.load %arg2[%c1, %c0_20, %c0_21] : memref<2x128x128xbf16, #tpu.memory_space<vmem>>, vector<1x128x128xbf16>
    %37 = vector.shape_cast %36 : vector<1x128x128xbf16> to vector<128x128xbf16>
    %cst_22 = arith.constant dense<0.000000e+00> : vector<256x128xf32>
    %38 = tpu.matmul %35, %37, %cst_22 {dimension_numbers = #tpu.dot_dimension_numbers<[1], [0], [0], [1], [0, 0, 1, 1], [], []>} : vector<256x128xbf16>, vector<128x128xbf16>, vector<256x128xf32> -> vector<256x128xf32>
    %c1_23 = arith.constant 1 : index
    %c0_24 = arith.constant 0 : index
    %c0_25 = arith.constant 0 : index
    %39 = vector.load %arg3[%c1_23, %c0_24, %c0_25] : memref<2x1x128xf32, #tpu.memory_space<vmem>>, vector<1x1x128xf32>
    %40 = vector.shape_cast %39 : vector<1x1x128xf32> to vector<1x128xf32>
    %41 = vector.broadcast %40 : vector<1x128xf32> to vector<256x128xf32>
    %42 = arith.addf %38, %41 : vector<256x128xf32>
    %cst_26 = arith.constant 0.000000e+00 : f32
    %43 = vector.broadcast %cst_26 : f32 to vector<256x128xf32>
    %44 = arith.maximumf %42, %43 : vector<256x128xf32>
    %45 = arith.addf %44, %34 : vector<256x128xf32>
    %46 = arith.truncf %45 : vector<256x128xf32> to vector<256x128xbf16>
    %cst_27 = arith.constant dense<0.000000e+00> : vector<256x128xf32>
    %47 = tpu.matmul %46, %1, %cst_27 {dimension_numbers = #tpu.dot_dimension_numbers<[1], [0], [0], [1], [0, 0, 1, 1], [], []>} : vector<256x128xbf16>, vector<128x128xbf16>, vector<256x128xf32> -> vector<256x128xf32>
    %48 = arith.mulf %45, %45 : vector<256x128xf32>
    %49 = arith.truncf %48 : vector<256x128xf32> to vector<256x128xbf16>
    %cst_28 = arith.constant dense<0.000000e+00> : vector<256x128xf32>
    %50 = tpu.matmul %49, %1, %cst_28 {dimension_numbers = #tpu.dot_dimension_numbers<[1], [0], [0], [1], [0, 0, 1, 1], [], []>} : vector<256x128xbf16>, vector<128x128xbf16>, vector<256x128xf32> -> vector<256x128xf32>
    %51 = arith.mulf %47, %47 : vector<256x128xf32>
    %52 = arith.subf %50, %51 : vector<256x128xf32>
    %cst_29 = arith.constant 0.000000e+00 : f32
    %53 = vector.broadcast %cst_29 : f32 to vector<256x128xf32>
    %54 = arith.maximumf %52, %53 : vector<256x128xf32>
    %55 = arith.subf %45, %47 : vector<256x128xf32>
    %cst_30 = arith.constant 9.99999974E-6 : f32
    %56 = vector.broadcast %cst_30 : f32 to vector<256x128xf32>
    %57 = arith.addf %54, %56 : vector<256x128xf32>
    %58 = math.rsqrt %57 : vector<256x128xf32>
    %59 = arith.mulf %55, %58 : vector<256x128xf32>
    %c1_31 = arith.constant 1 : index
    %c0_32 = arith.constant 0 : index
    %c0_33 = arith.constant 0 : index
    %60 = vector.load %arg4[%c1_31, %c0_32, %c0_33] : memref<2x1x128xf32, #tpu.memory_space<vmem>>, vector<1x1x128xf32>
    %61 = vector.shape_cast %60 : vector<1x1x128xf32> to vector<1x128xf32>
    %62 = vector.broadcast %61 : vector<1x128xf32> to vector<256x128xf32>
    %63 = arith.mulf %59, %62 : vector<256x128xf32>
    %c1_34 = arith.constant 1 : index
    %c0_35 = arith.constant 0 : index
    %c0_36 = arith.constant 0 : index
    %64 = vector.load %arg5[%c1_34, %c0_35, %c0_36] : memref<2x1x128xf32, #tpu.memory_space<vmem>>, vector<1x1x128xf32>
    %65 = vector.shape_cast %64 : vector<1x1x128xf32> to vector<1x128xf32>
    %66 = vector.broadcast %65 : vector<1x128xf32> to vector<256x128xf32>
    %67 = arith.addf %63, %66 : vector<256x128xf32>
    %c0_37 = arith.constant 0 : index
    %c0_38 = arith.constant 0 : index
    %68 = vector.load %arg7[%c0_37, %c0_38] : memref<256x128xf32, #tpu.memory_space<vmem>>, vector<256x128xf32>
    tpu.vector_store %arg7[%c0_37, %c0_38], %67 {strides = array<i32>} : memref<256x128xf32, #tpu.memory_space<vmem>>, vector<256x128xf32>,
    return
  }
  func.func @transform_0(%arg0: i32) -> (i32, i32) {
    %c0_i32 = arith.constant 0 : i32
    %c0_i32_0 = arith.constant 0 : i32
    return %arg0, %c0_i32 : i32, i32
  }
  func.func @transform_1(%arg0: i32) -> (i32, i32, i32) {
    %c0_i32 = arith.constant 0 : i32
    %c0_i32_0 = arith.constant 0 : i32
    %c0_i32_1 = arith.constant 0 : i32
    %c0_i32_2 = arith.constant 0 : i32
    return %c0_i32, %c0_i32_0, %c0_i32_1 : i32, i32, i32
  }
  func.func @transform_2(%arg0: i32) -> (i32, i32, i32) {
    %c0_i32 = arith.constant 0 : i32
    %c0_i32_0 = arith.constant 0 : i32
    %c0_i32_1 = arith.constant 0 : i32
    %c0_i32_2 = arith.constant 0 : i32
    return %c0_i32, %c0_i32_0, %c0_i32_1 : i32, i32, i32
  }
  func.func @transform_3(%arg0: i32) -> (i32, i32, i32) {
    %c0_i32 = arith.constant 0 : i32
    %c0_i32_0 = arith.constant 0 : i32
    %c0_i32_1 = arith.constant 0 : i32
    %c0_i32_2 = arith.constant 0 : i32
    return %c0_i32, %c0_i32_0, %c0_i32_1 : i32, i32, i32
  }
  func.func @transform_4(%arg0: i32) -> (i32, i32, i32) {
    %c0_i32 = arith.constant 0 : i32
    %c0_i32_0 = arith.constant 0 : i32
    %c0_i32_1 = arith.constant 0 : i32
    %c0_i32_2 = arith.constant 0 : i32
    return %c0_i32, %c0_i32_0, %c0_i32_1 : i32, i32, i32
  }
  func.func @transform_5(%arg0: i32) -> (i32, i32) {
    %c0_i32 = arith.constant 0 : i32
    %c0_i32_0 = arith.constant 0 : i32
    %c0_i32_1 = arith.constant 0 : i32
    return %c0_i32, %c0_i32_0 : i32, i32
  }
  func.func @transform_6(%arg0: i32) -> (i32, i32) {
    %c0_i32 = arith.constant 0 : i32
    %c0_i32_0 = arith.constant 0 : i32
    return %arg0, %c0_i32 : i32, i32
  }
}

</mosaic_0001>

<bundles_post_ra>
// kernel: tpu_custom_call.1
= control target key start
LH: loop header
LB: loop body
LE: loop exit
PB: predicated region body
PF: predicated region fallthrough
CT: control target
= control target key end

     0   :  { %11 = vsyncpa [#allocation3], 0  ;;  %s4998_s0 = inlined_call_operand.hbm [shape: f32[1024,128], index: 0, kind: input, shape index: {}]   ;;  %s4999_s1 = inlined_call_operand.hbm [shape: bf16[2,128,128], index: 1, kind: input, shape index: {}]   ;;  %s5000_s2 = inlined_call_operand.hbm [shape: f32[2,1,128], index: 2, kind: input, shape index: {}]   ;;  %s5001_s3 = inlined_call_operand.vmem [shape: f32[2,1,128], index: 3, kind: input, shape index: {}]   ;;  %s5002_s4 = inlined_call_operand.hbm [shape: f32[2,1,128], index: 4, kind: input, shape index: {}]   ;;  %s5003_s5 = inlined_call_operand.hbm [shape: bf16[128,128], index: 5, kind: input, shape index: {}]   ;;  %s5004_s6 = inlined_call_operand.hbm [shape: f32[1024,128], index: 6, kind: output, shape index: {}]  }
   0x1   :  { %13 = vsyncpa [#allocation3 + $0x1], 0 }
   0x2   :  { %14 = vsyncpa [#allocation6], 0 }
   0x3   :  { %15 = vsyncpa [#allocation9], 0 }
   0x4   :  { %16 = vsyncpa [#allocation4], 0 }
   0x5   :  { %18 = vsyncpa [#allocation4 + $0x1], 0  ;;  %s3393_s21 = smov 0   ;;  %s3395_s22 = smov 0  }
   0x6   :  { %s3397_s23 = smov 0   ;;  %s3399_s24 = smov 0  }
   0x7 LB: > { %s3414_s25 = sadd.s32 4294967295, %s3344_s24   ;;  %s2725_s26 = sadd.s32 4294967294, %s3344_s24   ;;  %s3344_s24 = sphi %s3399_s24, %s5048_s24   ;;  %s3340_s23 = sphi %s3397_s23, %s5047_s23   ;;  %s3336_s22 = sphi %s3395_s22, %s5046_s22   ;;  %s3332_s21 = sphi %s3393_s21, %s5045_s21  }
   0x8   : > { %p44_p0 = scmp.ne.s32.totalorder %s3336_s22, %s3332_s21  ;;  %p45_p1 = scmp.eq.s32.totalorder %s3414_s25, 0 }
   0x9   : > { %p173_p2 = scmp.eq.s32.totalorder %s3414_s25, 3  ;;  %p179_p3 = scmp.eq.s32.totalorder %s2725_s26, 3 }
   0xa   : > { %p3423_p4 = por %p45_p1, %p44_p0  ;;  %p2726_p5 = scmp.ge.s32.totalorder %s3344_s24, 1 }
   0xb   : > { %p3428_p6 = por %p179_p3, %p44_p0  ;;  %p186_p7 = scmp.lt.s32.totalorder %s3344_s24, 5 }
   0xc   : > { %s197_s7 = sshll.u32 %s4999_s1, 4  ;;  %s3346_s9 = smov [#allocation5]   ;;  %s198_s7 = int_to_ptr.hbm [resolvable:$true] %s197_s7 }
   0xd   : > { %p3436_p8 = pnand %p2726_p5, %p186_p7  ;;  %s199_s10 = sshll.u32 %s3346_s9, 4  ;;  %s200_s10 = int_to_ptr.vmem [resolvable:$true] %s199_s10 }
   0xe   : > { %s228_s14 = sshll.u32 %s5002_s4, 4  ;;  %s3347_s15 = smov 64   ;;  %s229_s14 = int_to_ptr.hbm [resolvable:$true] %s228_s14 }
   0xf   : > { %p2906_p9 = pneg %p3436_p8  ;;  %s3348_s16 = smov 4  }
  0x10   : > { %s3349_s17 = smov [#allocation8]   ;;  %s211_s26 = sshll.u32 %s5000_s2, 4  ;;  %s212_s26 = int_to_ptr.hbm [resolvable:$true] %s211_s26 }
  0x11   : > { %p3444_p10 = pnand %p2906_p9, %p45_p1  ;;  %s230_s18 = sshll.u32 %s3349_s17, 4  ;;  %s231_s18 = int_to_ptr.vmem [resolvable:$true] %s230_s18 }
  0x12   : > { %s3350_s29 = smov 16   ;;  %s3351_s30 = smov 1  }
  0x13   : > { %2909 = dma.hbm_to_vmem [thread:$0]  (!%p3444_p10), %s198_s7, 2048, %s200_s10, [#allocation6], %s3347_s15, %s3347_s15, %s3348_s16  }
  0x14   : > { %2915 = dma.hbm_to_vmem [thread:$0]  (!%p3444_p10), %s229_s14, 32, %s231_s18, [#allocation9], %s3350_s29, %s3350_s29, %s3351_s30  }
  0x15   : > { %s242_s10 = sshll.u32 %s5003_s5, 4  ;;  %s3352_s12 = smov [#allocation7]   ;;  %s243_s10 = int_to_ptr.hbm [resolvable:$true] %s242_s10 }
  0x16   : > { %s213_s13 = sshll.u32 %s3352_s12, 4  ;;  %s3353_s17 = smov [#allocation10]   ;;  %s214_s13 = int_to_ptr.vmem [resolvable:$true] %s213_s13 }
  0x17   : > { %2912 = dma.hbm_to_vmem [thread:$0]  (!%p3444_p10), %s212_s26, 32, %s214_s13, [#allocation6], %s3350_s29, %s3350_s29, %s3351_s30  }
  0x18   : > { %s244_s19 = sshll.u32 %s3353_s17, 4  ;;  %s3466_s14 = sadd.s32 1, %s3344_s24   ;;  %s245_s19 = int_to_ptr.vmem [resolvable:$true] %s244_s19 }
  0x19   : > { %2918 = dma.hbm_to_vmem [thread:$0]  (!%p3444_p10), %s243_s10, 1024, %s245_s19, [#allocation9], %s3347_s15, %s3347_s15, %s3348_s16  }
  0x1a   : > { %s31_s18 = sadd.s32 1, %s3340_s23  ;;  %s28_s20 = ssub.s32 %s3344_s24, %s3466_s14 }
  0x1b   : > { %p38_p11 = scmp.ne.s32.totalorder %s3340_s23, %s3336_s22  ;;  %p29_p12 = scmp.eq.s32.totalorder %s28_s20, 0 }
  0x1c   : > { %p39_p13 = scmp.eq.s32.totalorder %s3344_s24, 0  ;;  %p2931_p3 = scmp.lt.s32.totalorder %s3344_s24, 4 }
  0x1d   : > { %p3476_p0 = por %p173_p2, %p38_p11  ;;  %s258_s29 = sand.u32 1, %s3340_s23  }
  0x1e   : > { %s3482_s26 = scalar_select %p29_p12, %s3340_s23, %s31_s18  }
  0x1f   : > { %p40_p5 = por %p39_p13, %p38_p11  ;;  %s2732_s11 = sshll.u32 %s258_s29, 8 }
  0x20   : > { %s2844_s15 = sshll.u32 %s3344_s24, 8  ;;  %s262_s10 = scalar_lea.vmem [#allocation2], %s2732_s11 }
  0x21   : > { %s267_s9 = scalar_lea.hbm %s4998_s0, %s2844_s15  ;;  %s270_s12 = sshll.u32 %s262_s10, 4  ;;  %s271_s12 = int_to_ptr.vmem [resolvable:$true] %s270_s12 }
  0x22   : > { %s268_s13 = sshll.u32 %s267_s9, 4  ;;  %p3489_p2 = pnand %p2931_p3, %p40_p5  ;;  %s269_s13 = int_to_ptr.hbm [resolvable:$true] %s268_s13 }
  0x23   : > { %s259_s19 = scalar_lea.sflag [#allocation3], %s258_s29  ;;  %s3240_s18 = sshra.s32 %s269_s13, 4  ;;  %s3241_s18 = int_to_ptr.hbm [resolvable:$true] %s3240_s18 }
  0x24   : > { %s3242_s20 = scalar_lea.hbm %s3241_s18, 256  ;;  %p3244_p9 = pneg %p3489_p2 }
  0x25   : > { %p3243_p7 = scmp.ne.s32.totalorder %s3241_s18, %s3242_s20  ;;  %s3247_s16 = scalar_lea.hbm %s4998_s0, 1024 }
  0x26   : > { %p3248_p12 = scmp.lt.s32.totalorder %s3241_s18, %s4998_s0  ;;  %p3249_p13 = scmp.lt.s32.totalorder %s3247_s16, %s3242_s20 }
  0x27   : > { %p3245_p10 = pnand %p3244_p9, %p3243_p7 }
  0x28   : > { %p3250_p3 = por %p3249_p13, %p3248_p12 }
  0x29   : > { %p3246_p11 = pneg %p3245_p10 }
  0x2b   : > { %p3251_p5 = pnand %p3250_p3, %p3246_p11 }
  0x2d   : > { %3254 = shalt.err (!%p3251_p5)
}
  0x2e   : > { %s3354_s29 = smov 128   ;;  %s3355_s10 = smov 8  }
  0x2f   : > { %2922 = dma.hbm_to_vmem [thread:$0]  (!%p3489_p2), %s269_s13, 4096, %s271_s12, %s259_s19, %s3354_s29, %s3354_s29, %s3355_s10  }
  0x30   : > { %282 = sbr.rel (%p3436_p8) target bundleno = 967 (0x3c7), region = 44 }
  0x35   : > { %s3506_s15 = sand.u32 1, %s3336_s22  }
  0x36   : > { %s2736_s18 = sshll.u32 %s3506_s15, 8  ;;  %s285_s20 = scalar_lea.sflag [#allocation3], %s3506_s15 }
  0x37   : > { %s3512_s11 = scalar_lea.vmem [#allocation2], %s2736_s18 }
  0x38   : > { %3315 = dma.done.wait (%p3423_p4), %s285_s20, 4096  }
  0x39   : > { %3317 = vsyncadd (%p3423_p4), %s285_s20, 4294963200 }
  0x3a   : > { %3319 = dma.done.wait (%p45_p1), [#allocation6], 2080  }
  0x3b   : > { %3321 = vsyncadd (%p45_p1), [#allocation6], 4294965216 }
  0x3c   : > { %3323 = dma.done.wait (%p45_p1), [#allocation9], 1056  }
  0x3d   : > { %3325 = vsyncadd (%p45_p1), [#allocation9], 4294966240  ;;  %v2860_v0 = vld [vmem:[#allocation5 + $0x38] sm:$0xff]  ;;  %v2859_v1 = vld [vmem:[#allocation5 + $0x30] sm:$0xff]  ;;  %s4568_s16 = scalar_lea.vmem [#allocation11], %s2736_s18  ;;  %s2869_s29 = sshll.u32 %s3414_s25, 8 }
  0x3e   : > { %472 = vmatpush.bf16.msra.mxu0 %v2860_v0  ;;  %2870 = vmatpush.bf16.msra.mxu2 %v2860_v0  ;;  %v2858_v2 = vld [vmem:[#allocation5 + $0x28] sm:$0xff]  ;;  %v2857_v3 = vld [vmem:[#allocation5 + $0x20] sm:$0xff]  ;;  %v2856_v4 = vld [vmem:[#allocation5 + $0x18] sm:$0xff]  ;;  %s2610_s20 = scalar_lea.hbm %s5004_s6, %s2869_s29  ;;  %s2611_s25 = sshll.u32 %s4568_s16, 4  ;;  %s2612_s25 = int_to_ptr.vmem [resolvable:$true] %s2611_s25 }
  0x3f   : > { %v3526_v5 = vld [vmem:[#allocation10 + $0x38] sm:$0xff]  ;;  %v2855_v6 = vld [vmem:[#allocation5 + $0x10] sm:$0xff]  ;;  %v2854_v7 = vld [vmem:[#allocation5 + $0x8] sm:$0xff]  ;;  %s2599_s27 = scalar_lea.sflag [#allocation4], %s3506_s15  ;;  %s3290_s19 = scalar_lea.hbm %s5004_s6, 1024 }
  0x40   : > { %689 = vmatpush.bf16.msra.mxu1 %v3526_v5  ;;  %2878 = vmatpush.bf16.msra.mxu3 %v3526_v5  ;;  %v2853_v8 = vld [vmem:[#allocation5] sm:$0xff]  ;;  %v3534_v10 = vld [vmem:[%s3512_s11 + $0x8] sm:$0xff]  ;;  %v3548_v15 = vld [vmem:[#allocation10 + $0x30] sm:$0xff] }
  0x41   : > { %v3531_v9 = vld [vmem:[%s3512_s11] sm:$0xff]  ;;  %v3540_v12 = vld [vmem:[%s3512_s11 + $0x88] sm:$0xff]  ;;  %v3555_v16 = vld [vmem:[%s3512_s11 + $0x10] sm:$0xff] }
  0x42   : > { %473 = vmatpush.bf16.msra.mxu0 %v2859_v1  ;;  %2871 = vmatpush.bf16.msra.mxu2 %v2859_v1  ;;  %v3537_v11 = vld [vmem:[%s3512_s11 + $0x80] sm:$0xff]  ;;  %v388_v13 = vpack.c.bf16 %v3534_v10, %v3531_v9  ;;  %v3558_v17 = vld [vmem:[%s3512_s11 + $0x18] sm:$0xff]  ;;  %v3561_v18 = vld [vmem:[%s3512_s11 + $0x90] sm:$0xff] }
  0x43   : > { %v396_v14 = vpack.c.bf16 %v3540_v12, %v3537_v11  ;;  %v3564_v19 = vld [vmem:[%s3512_s11 + $0x98] sm:$0xff]  ;;  %v389_v20 = vpack.c.bf16 %v3558_v17, %v3555_v16  ;;  %v3570_v22 = vld [vmem:[#allocation10 + $0x28] sm:$0xff]  ;;  %v3577_v23 = vld [vmem:[%s3512_s11 + $0x20] sm:$0xff] }
  0x44   : > { %690 = vmatpush.bf16.msra.mxu1 %v3548_v15  ;;  %2879 = vmatpush.bf16.msra.mxu3 %v3548_v15  ;;  %v397_v21 = vpack.c.bf16 %v3564_v19, %v3561_v18  ;;  %v3580_v24 = vld [vmem:[%s3512_s11 + $0x28] sm:$0xff]  ;;  %v3583_v25 = vld [vmem:[%s3512_s11 + $0xa0] sm:$0xff]  ;;  %v3599_v30 = vld [vmem:[%s3512_s11 + $0x30] sm:$0xff] }
  0x45   : > { %v3586_v26 = vld [vmem:[%s3512_s11 + $0xa8] sm:$0xff]  ;;  %v390_v27 = vpack.c.bf16 %v3580_v24, %v3577_v23  ;;  %v3602_v31 = vld [vmem:[%s3512_s11 + $0x38] sm:$0xff]  ;;  %v3605_v32 = vld [vmem:[%s3512_s11 + $0xb0] sm:$0xff] }
  0x46   : > { %474 = vmatpush.bf16.msra.mxu0 %v2858_v2  ;;  %2872 = vmatpush.bf16.msra.mxu2 %v2858_v2  ;;  %v398_v28 = vpack.c.bf16 %v3586_v26, %v3583_v25  ;;  %v3592_v29 = vld [vmem:[#allocation10 + $0x20] sm:$0xff]  ;;  %v3608_v33 = vld [vmem:[%s3512_s11 + $0xb8] sm:$0xff]  ;;  %v391_v34 = vpack.c.bf16 %v3602_v31, %v3599_v30  ;;  %v3631_v44 = vld [vmem:[%s3512_s11 + $0x50] sm:$0xff] }
  0x47   : > { %v399_v35 = vpack.c.bf16 %v3608_v33, %v3605_v32  ;;  %v2848_v36 = vld [vmem:[#allocation10 + $0x18] sm:$0xff]  ;;  %v3618_v38 = vld [vmem:[%s3512_s11 + $0x48] sm:$0xff]  ;;  %v2847_v43 = vld [vmem:[#allocation10 + $0x10] sm:$0xff] }
  0x48   : > { %691 = vmatpush.bf16.msra.mxu1 %v3570_v22  ;;  %2880 = vmatpush.bf16.msra.mxu3 %v3570_v22  ;;  %v3615_v37 = vld [vmem:[%s3512_s11 + $0x40] sm:$0xff]  ;;  %v3624_v40 = vld [vmem:[%s3512_s11 + $0xc8] sm:$0xff]  ;;  %v3634_v45 = vld [vmem:[%s3512_s11 + $0x58] sm:$0xff] }
  0x49   : > { %v3621_v39 = vld [vmem:[%s3512_s11 + $0xc0] sm:$0xff]  ;;  %v392_v41 = vpack.c.bf16 %v3618_v38, %v3615_v37  ;;  %v3637_v46 = vld [vmem:[%s3512_s11 + $0xd0] sm:$0xff]  ;;  %v3640_v47 = vld [vmem:[%s3512_s11 + $0xd8] sm:$0xff]  ;;  %v393_v48 = vpack.c.bf16 %v3634_v45, %v3631_v44 }
  0x4a   : > { %475 = vmatpush.bf16.msra.mxu0 %v2857_v3  ;;  %2873 = vmatpush.bf16.msra.mxu2 %v2857_v3  ;;  %v400_v42 = vpack.c.bf16 %v3624_v40, %v3621_v39  ;;  %v401_v49 = vpack.c.bf16 %v3640_v47, %v3637_v46  ;;  %v2846_v50 = vld [vmem:[#allocation10 + $0x8] sm:$0xff]  ;;  %v3647_v51 = vld [vmem:[%s3512_s11 + $0x60] sm:$0xff]  ;;  %v3667_v59 = vld [vmem:[%s3512_s11 + $0x78] sm:$0xff] }
  0x4b   : > { %v3650_v52 = vld [vmem:[%s3512_s11 + $0x68] sm:$0xff]  ;;  %v3653_v53 = vld [vmem:[%s3512_s11 + $0xe0] sm:$0xff]  ;;  %v3664_v58 = vld [vmem:[%s3512_s11 + $0x70] sm:$0xff] }
  0x4c   : > { %692 = vmatpush.bf16.msra.mxu1 %v3592_v29  ;;  %2881 = vmatpush.bf16.msra.mxu3 %v3592_v29  ;;  %v3656_v54 = vld [vmem:[%s3512_s11 + $0xe8] sm:$0xff]  ;;  %v394_v55 = vpack.c.bf16 %v3650_v52, %v3647_v51  ;;  %v3670_v60 = vld [vmem:[%s3512_s11 + $0xf0] sm:$0xff]  ;;  %v3673_v61 = vld [vmem:[%s3512_s11 + $0xf8] sm:$0xff]  ;;  %v395_v62 = vpack.c.bf16 %v3667_v59, %v3664_v58  ;;  %s2613_s11 = sshll.u32 %s2610_s20, 4  ;;  %s2614_s11 = int_to_ptr.hbm [resolvable:$true] %s2613_s11 }
  0x4d   : > { %v402_v56 = vpack.c.bf16 %v3656_v54, %v3653_v53  ;;  %v2845_v57 = vld [vmem:[#allocation10] sm:$0xff]  ;;  %v403_v63 = vpack.c.bf16 %v3673_v61, %v3670_v60  ;;  %v3682_v0 = vld [vmem:[#allocation7] ss:$0 sm:$0xff]  ;;  %s3284_s8 = sshra.s32 %s2614_s11, 4  ;;  %s3285_s8 = int_to_ptr.hbm [resolvable:$true] %s3284_s8 }
  0x4e   : > { %476 = vmatpush.bf16.msra.mxu0 %v2856_v4  ;;  %2874 = vmatpush.bf16.msra.mxu2 %v2856_v4  ;;  %s3286_s12 = scalar_lea.hbm %s3285_s8, 256  ;;  %p3291_p2 = scmp.lt.s32.totalorder %s3285_s8, %s5004_s6 }
  0x4f   : > { %p3287_p1 = scmp.ne.s32.totalorder %s3285_s8, %s3286_s12  ;;  %p3292_p7 = scmp.lt.s32.totalorder %s3290_s19, %s3286_s12 }
  0x50   : > { %693 = vmatpush.bf16.msra.mxu1 %v2848_v36  ;;  %2882 = vmatpush.bf16.msra.mxu3 %v2848_v36 }
  0x51   : > { %p3288_p4 = pnand %p3287_p1, %p3476_p0  ;;  %p3293_p9 = por %p3292_p7, %p3291_p2 }
  0x52   : > { %477 = vmatpush.bf16.msra.mxu0 %v2855_v6  ;;  %2875 = vmatpush.bf16.msra.mxu2 %v2855_v6 }
  0x53   : > { %p3289_p8 = pneg %p3288_p4 }
  0x54   : > { %694 = vmatpush.bf16.msra.mxu1 %v2847_v43  ;;  %2883 = vmatpush.bf16.msra.mxu3 %v2847_v43 }
  0x55   : > { %p3294_p10 = pnand %p3293_p9, %p3289_p8 }
  0x56   : > { %478 = vmatpush.bf16.msra.mxu0 %v2854_v7  ;;  %2876 = vmatpush.bf16.msra.mxu2 %v2854_v7 }
  0x58   : > { %695 = vmatpush.bf16.msra.mxu1 %v2846_v50  ;;  %2884 = vmatpush.bf16.msra.mxu3 %v2846_v50 }
  0x5a   : > { %479 = vmatpush.bf16.msra.mxu0 %v2853_v8  ;;  %2877 = vmatpush.bf16.msra.mxu2 %v2853_v8 }
  0x5c   : > { %696 = vmatpush.bf16.msra.mxu1 %v2845_v57  ;;  %2885 = vmatpush.bf16.msra.mxu3 %v2845_v57 }
  0x5d   : > { %480 = vmatmul.bf16.vlgmr.msra.gmra.mxu0 %v388_v13  ;;  %520 = vmatmul.bf16.vlgmr.msra.gmra.mxu2 %v396_v14 }
  0x5e   : > { %826 = vmatpush.bf16.msrb.mxu2 %v3526_v5  ;;  %1754 = vmatpush.bf16.msrb.mxu0 %v3526_v5 }
  0x60   : > { %1891 = vmatpush.bf16.msrb.mxu1 %v3526_v5 }
  0x62   : > { %827 = vmatpush.bf16.msrb.mxu2 %v3548_v15  ;;  %1755 = vmatpush.bf16.msrb.mxu0 %v3548_v15 }
  0x64   : > { %1892 = vmatpush.bf16.msrb.mxu1 %v3548_v15 }
  0x66   : > { %828 = vmatpush.bf16.msrb.mxu2 %v3570_v22  ;;  %1756 = vmatpush.bf16.msrb.mxu0 %v3570_v22 }
  0x68   : > { %1893 = vmatpush.bf16.msrb.mxu1 %v3570_v22 }
  0x6a   : > { %829 = vmatpush.bf16.msrb.mxu2 %v3592_v29  ;;  %1757 = vmatpush.bf16.msrb.mxu0 %v3592_v29 }
  0x6c   : > { %1894 = vmatpush.bf16.msrb.mxu1 %v3592_v29 }
  0x6d   : > { %485 = vmatmul.bf16.gmra.mxu0 %v389_v20  ;;  %525 = vmatmul.bf16.gmra.mxu2 %v397_v21 }
  0x6e   : > { %830 = vmatpush.bf16.msrb.mxu2 %v2848_v36  ;;  %1758 = vmatpush.bf16.msrb.mxu0 %v2848_v36 }
  0x70   : > { %1895 = vmatpush.bf16.msrb.mxu1 %v2848_v36 }
  0x72   : > { %831 = vmatpush.bf16.msrb.mxu2 %v2847_v43  ;;  %1759 = vmatpush.bf16.msrb.mxu0 %v2847_v43 }
  0x74   : > { %1896 = vmatpush.bf16.msrb.mxu1 %v2847_v43 }
  0x76   : > { %832 = vmatpush.bf16.msrb.mxu2 %v2846_v50  ;;  %1760 = vmatpush.bf16.msrb.mxu0 %v2846_v50 }
  0x78   : > { %1897 = vmatpush.bf16.msrb.mxu1 %v2846_v50 }
  0x7a   : > { %833 = vmatpush.bf16.msrb.mxu2 %v2845_v57  ;;  %1761 = vmatpush.bf16.msrb.mxu0 %v2845_v57 }
  0x7c   : > { %1898 = vmatpush.bf16.msrb.mxu1 %v2845_v57 }
  0x7d   : > { %490 = vmatmul.bf16.gmra.mxu0 %v390_v27  ;;  %530 = vmatmul.bf16.gmra.mxu2 %v398_v28 }
  0x8d   : > { %495 = vmatmul.bf16.gmra.mxu0 %v391_v34  ;;  %535 = vmatmul.bf16.gmra.mxu2 %v399_v35 }
  0x9d   : > { %500 = vmatmul.bf16.gmra.mxu0 %v392_v41  ;;  %540 = vmatmul.bf16.gmra.mxu2 %v400_v42 }
  0xad   : > { %505 = vmatmul.bf16.gmra.mxu0 %v393_v48  ;;  %545 = vmatmul.bf16.gmra.mxu2 %v401_v49 }
  0xbd   : > { %510 = vmatmul.bf16.gmra.mxu0 %v394_v55  ;;  %550 = vmatmul.bf16.gmra.mxu2 %v402_v56 }
  0xcd   : > { %515 = vmatmul.bf16.gmra.mxu0 %v395_v62  ;;  %555 = vmatmul.bf16.gmra.mxu2 %v403_v63 }
  0xda   : > { %v481_v1 = vpop.f32.mrf.mxu0 }
  0xdb   : > { %v482_v2 = vadd.f32 %v3682_v0, %v481_v1 }
  0xdd   : > { %v561_v4 = vmax.f32 %v482_v2, 0.0 }
  0xdf   : > { %v3688_v8 = vadd.f32 %v561_v4, %v3531_v9 }
  0xe0   : > { %v521_v3 = vpop.f32.mrf.mxu2 }
  0xe1   : > { %v522_v6 = vadd.f32 %v3682_v0, %v521_v3  ;;  %v778_v27 = vmul.f32 %v3688_v8, %v3688_v8 }
  0xe2   : > { %v483_v5 = vpop.f32.mrf.mxu0 }
  0xe3   : > { %v484_v7 = vadd.f32 %v3682_v0, %v483_v5  ;;  %v577_v14 = vmax.f32 %v522_v6, 0.0 }
  0xe5   : > { %v562_v13 = vmax.f32 %v484_v7, 0.0  ;;  %v3701_v9 = vadd.f32 %v577_v14, %v3537_v11  ;;  %v2868_v7 = vld [vmem:[#allocation5 + $0x78] sm:$0xff] }
  0xe6   : > { %1585 = vmatpush.bf16.msrb.mxu3 %v2868_v7 }
  0xe7   : > { %v3691_v15 = vadd.f32 %v562_v13, %v3534_v10 }
  0xe8   : > { %v523_v20 = vpop.f32.mrf.mxu2 }
  0xe9   : > { %v524_v21 = vadd.f32 %v3682_v0, %v523_v20  ;;  %v625_v22 = vpack.c.bf16 %v3691_v15, %v3688_v8  ;;  %v779_v28 = vmul.f32 %v3691_v15, %v3691_v15 }
  0xea   : > { %v486_v29 = vpop.f32.mrf.mxu0 }
  0xeb   : > { %v578_v34 = vmax.f32 %v524_v21, 0.0  ;;  %697 = vmatmul.bf16.vlgmr.msra.gmra.mxu1 %v625_v22  ;;  %v810_v10 = vpack.c.bf16 %v779_v28, %v778_v27  ;;  %v487_v36 = vadd.f32 %v3682_v0, %v486_v29 }
  0xed   : > { %v3704_v35 = vadd.f32 %v578_v34, %v3540_v12  ;;  %834 = vmatmul.bf16.vlgmr.msrb.gmra.mxu2 %v810_v10  ;;  %v563_v43 = vmax.f32 %v487_v36, 0.0 }
  0xef   : > { %v633_v41 = vpack.c.bf16 %v3704_v35, %v3701_v9  ;;  %v3712_v50 = vadd.f32 %v563_v43, %v3555_v16 }
  0xf0   : > { %v526_v42 = vpop.f32.mrf.mxu2 }
  0xf1   : > { %737 = vmatmul.bf16.vlgmr.msra.gmra.mxu3 %v633_v41  ;;  %v527_v49 = vadd.f32 %v3682_v0, %v526_v42  ;;  %v780_v1 = vmul.f32 %v3712_v50, %v3712_v50 }
  0xf2   : > { %v488_v48 = vpop.f32.mrf.mxu0 }
  0xf3   : > { %v489_v11 = vadd.f32 %v3682_v0, %v488_v48  ;;  %v579_v12 = vmax.f32 %v527_v49, 0.0 }
  0xf5   : > { %v564_v55 = vmax.f32 %v489_v11, 0.0  ;;  %v3725_v16 = vadd.f32 %v579_v12, %v3561_v18 }
  0xf7   : > { %v3715_v56 = vadd.f32 %v564_v55, %v3558_v17  ;;  %v2867_v55 = vld [vmem:[#allocation5 + $0x70] sm:$0xff] }
  0xf8   : > { %v528_v57 = vpop.f32.mrf.mxu2  ;;  %1586 = vmatpush.bf16.msrb.mxu3 %v2867_v55 }
  0xf9   : > { %v529_v62 = vadd.f32 %v3682_v0, %v528_v57  ;;  %v626_v63 = vpack.c.bf16 %v3715_v56, %v3712_v50  ;;  %v781_v2 = vmul.f32 %v3715_v56, %v3715_v56 }
  0xfa   : > { %v491_v3 = vpop.f32.mrf.mxu0 }
  0xfb   : > { %v580_v4 = vmax.f32 %v529_v62, 0.0  ;;  %702 = vmatmul.bf16.gmra.mxu1 %v626_v63  ;;  %v811_v17 = vpack.c.bf16 %v781_v2, %v780_v1  ;;  %v492_v6 = vadd.f32 %v3682_v0, %v491_v3 }
  0xfd   : > { %v3728_v5 = vadd.f32 %v580_v4, %v3564_v19  ;;  %839 = vmatmul.bf16.gmra.mxu2 %v811_v17  ;;  %v565_v20 = vmax.f32 %v492_v6, 0.0 }
  0xff   : > { %v634_v13 = vpack.c.bf16 %v3728_v5, %v3725_v16  ;;  %v3736_v27 = vadd.f32 %v565_v20, %v3577_v23 }
 0x100   : > { %v531_v14 = vpop.f32.mrf.mxu2 }
 0x101   : > { %742 = vmatmul.bf16.gmra.mxu3 %v634_v13  ;;  %v532_v18 = vadd.f32 %v3682_v0, %v531_v14  ;;  %v782_v41 = vmul.f32 %v3736_v27, %v3736_v27 }
 0x102   : > { %v493_v21 = vpop.f32.mrf.mxu0 }
 0x103   : > { %v494_v22 = vadd.f32 %v3682_v0, %v493_v21  ;;  %v581_v28 = vmax.f32 %v532_v18, 0.0 }
 0x105   : > { %v566_v19 = vmax.f32 %v494_v22, 0.0  ;;  %v3749_v23 = vadd.f32 %v581_v28, %v3583_v25 }
 0x107   : > { %v3739_v29 = vadd.f32 %v566_v19, %v3580_v24  ;;  %v2866_v19 = vld [vmem:[#allocation5 + $0x68] sm:$0xff] }
 0x108   : > { %v533_v34 = vpop.f32.mrf.mxu2  ;;  %1587 = vmatpush.bf16.msrb.mxu3 %v2866_v19 }
 0x109   : > { %v534_v10 = vadd.f32 %v3682_v0, %v533_v34  ;;  %v627_v36 = vpack.c.bf16 %v3739_v29, %v3736_v27  ;;  %v783_v42 = vmul.f32 %v3739_v29, %v3739_v29 }
 0x10a   : > { %v496_v43 = vpop.f32.mrf.mxu0 }
 0x10b   : > { %v582_v48 = vmax.f32 %v534_v10, 0.0  ;;  %707 = vmatmul.bf16.gmra.mxu1 %v627_v36  ;;  %v812_v24 = vpack.c.bf16 %v783_v42, %v782_v41  ;;  %v497_v11 = vadd.f32 %v3682_v0, %v496_v43 }
 0x10d   : > { %v3752_v49 = vadd.f32 %v582_v48, %v3586_v26  ;;  %844 = vmatmul.bf16.gmra.mxu2 %v812_v24  ;;  %v567_v62 = vmax.f32 %v497_v11, 0.0 }
 0x10f   : > { %v635_v12 = vpack.c.bf16 %v3752_v49, %v3749_v23  ;;  %v3760_v2 = vadd.f32 %v567_v62, %v3599_v30 }
 0x110   : > { %v536_v57 = vpop.f32.mrf.mxu2 }
 0x111   : > { %747 = vmatmul.bf16.gmra.mxu3 %v635_v12  ;;  %v537_v25 = vadd.f32 %v3682_v0, %v536_v57  ;;  %v784_v13 = vmul.f32 %v3760_v2, %v3760_v2 }
 0x112   : > { %v498_v63 = vpop.f32.mrf.mxu0 }
 0x113   : > { %v499_v1 = vadd.f32 %v3682_v0, %v498_v63  ;;  %v583_v3 = vmax.f32 %v537_v25, 0.0 }
 0x115   : > { %v568_v26 = vmax.f32 %v499_v1, 0.0  ;;  %v3773_v30 = vadd.f32 %v583_v3, %v3605_v32 }
 0x117   : > { %v3763_v4 = vadd.f32 %v568_v26, %v3602_v31  ;;  %v2865_v26 = vld [vmem:[#allocation5 + $0x60] sm:$0xff] }
 0x118   : > { %v538_v17 = vpop.f32.mrf.mxu2  ;;  %1588 = vmatpush.bf16.msrb.mxu3 %v2865_v26 }
 0x119   : > { %v539_v6 = vadd.f32 %v3682_v0, %v538_v17  ;;  %v628_v7 = vpack.c.bf16 %v3763_v4, %v3760_v2  ;;  %v785_v14 = vmul.f32 %v3763_v4, %v3763_v4 }
 0x11a   : > { %v501_v20 = vpop.f32.mrf.mxu0 }
 0x11b   : > { %v584_v21 = vmax.f32 %v539_v6, 0.0  ;;  %712 = vmatmul.bf16.gmra.mxu1 %v628_v7  ;;  %v813_v31 = vpack.c.bf16 %v785_v14, %v784_v13  ;;  %v502_v22 = vadd.f32 %v3682_v0, %v501_v20 }
 0x11d   : > { %v3776_v18 = vadd.f32 %v584_v21, %v3608_v33  ;;  %849 = vmatmul.bf16.gmra.mxu2 %v813_v31  ;;  %v569_v10 = vmax.f32 %v502_v22, 0.0 }
 0x11f   : > { %5019 = vst [vmem:[#allocation16_spill] sm:$0xff] %v3776_v18  ;;  %v636_v28 = vpack.c.bf16 %v3776_v18, %v3773_v30  ;;  %v3784_v42 = vadd.f32 %v569_v10, %v3615_v37 }
 0x120   : > { %v541_v34 = vpop.f32.mrf.mxu2 }
 0x121   : > { %752 = vmatmul.bf16.gmra.mxu3 %v636_v28  ;;  %v542_v32 = vadd.f32 %v3682_v0, %v541_v34  ;;  %v786_v12 = vmul.f32 %v3784_v42, %v3784_v42 }
 0x122   : > { %v503_v36 = vpop.f32.mrf.mxu0 }
 0x123   : > { %v504_v41 = vadd.f32 %v3682_v0, %v503_v36  ;;  %v585_v43 = vmax.f32 %v542_v32, 0.0 }
 0x125   : > { %v570_v33 = vmax.f32 %v504_v41, 0.0  ;;  %v3797_v37 = vadd.f32 %v585_v43, %v3621_v39 }
 0x127   : > { %v3787_v48 = vadd.f32 %v570_v33, %v3618_v38  ;;  %5020 = vst [vmem:[#allocation17_spill] sm:$0xff] %v3797_v37  ;;  %v2864_v33 = vld [vmem:[#allocation5 + $0x58] sm:$0xff] }
 0x128   : > { %v543_v24 = vpop.f32.mrf.mxu2  ;;  %1589 = vmatpush.bf16.msrb.mxu3 %v2864_v33 }
 0x129   : > { %v544_v11 = vadd.f32 %v3682_v0, %v543_v24  ;;  %v629_v55 = vpack.c.bf16 %v3787_v48, %v3784_v42  ;;  %v787_v57 = vmul.f32 %v3787_v48, %v3787_v48 }
 0x12a   : > { %v506_v62 = vpop.f32.mrf.mxu0 }
 0x12b   : > { %v586_v63 = vmax.f32 %v544_v11, 0.0  ;;  %717 = vmatmul.bf16.gmra.mxu1 %v629_v55  ;;  %v814_v38 = vpack.c.bf16 %v787_v57, %v786_v12  ;;  %v507_v1 = vadd.f32 %v3682_v0, %v506_v62 }
 0x12d   : > { %v3800_v25 = vadd.f32 %v586_v63, %v3624_v40  ;;  %854 = vmatmul.bf16.gmra.mxu2 %v814_v38  ;;  %v571_v6 = vmax.f32 %v507_v1, 0.0 }
 0x12f   : > { %5021 = vst [vmem:[#allocation18_spill] sm:$0xff] %v3800_v25  ;;  %v637_v3 = vpack.c.bf16 %v3800_v25, %v3797_v37  ;;  %v3808_v14 = vadd.f32 %v571_v6, %v3631_v44  ;;  %v2863_v6 = vld [vmem:[#allocation5 + $0x50] sm:$0xff] }
 0x130   : > { %v546_v17 = vpop.f32.mrf.mxu2  ;;  %1590 = vmatpush.bf16.msrb.mxu3 %v2863_v6 }
 0x131   : > { %757 = vmatmul.bf16.gmra.mxu3 %v637_v3  ;;  %v547_v39 = vadd.f32 %v3682_v0, %v546_v17  ;;  %v788_v28 = vmul.f32 %v3808_v14, %v3808_v14 }
 0x132   : > { %v508_v7 = vpop.f32.mrf.mxu0 }
 0x133   : > { %v509_v13 = vadd.f32 %v3682_v0, %v508_v7  ;;  %v587_v20 = vmax.f32 %v547_v39, 0.0 }
 0x135   : > { %v572_v40 = vmax.f32 %v509_v13, 0.0  ;;  %v3821_v44 = vadd.f32 %v587_v20, %v3637_v46 }
 0x137   : > { %v3811_v21 = vadd.f32 %v572_v40, %v3634_v45 }
 0x138   : > { %v548_v31 = vpop.f32.mrf.mxu2 }
 0x139   : > { %v549_v22 = vadd.f32 %v3682_v0, %v548_v31  ;;  %v630_v19 = vpack.c.bf16 %v3811_v21, %v3808_v14  ;;  %v789_v34 = vmul.f32 %v3811_v21, %v3811_v21 }
 0x13a   : > { %v511_v10 = vpop.f32.mrf.mxu0 }
 0x13b   : > { %v588_v36 = vmax.f32 %v549_v22, 0.0  ;;  %722 = vmatmul.bf16.gmra.mxu1 %v630_v19  ;;  %v815_v45 = vpack.c.bf16 %v789_v34, %v788_v28  ;;  %v512_v41 = vadd.f32 %v3682_v0, %v511_v10 }
 0x13d   : > { %v3824_v32 = vadd.f32 %v588_v36, %v3640_v47  ;;  %859 = vmatmul.bf16.gmra.mxu2 %v815_v45  ;;  %v573_v11 = vmax.f32 %v512_v41, 0.0 }
 0x13f   : > { %5022 = vst [vmem:[#allocation19_spill] sm:$0xff] %v3824_v32  ;;  %v638_v43 = vpack.c.bf16 %v3824_v32, %v3821_v44  ;;  %v3832_v57 = vadd.f32 %v573_v11, %v3647_v51 }
 0x140   : > { %v551_v24 = vpop.f32.mrf.mxu2 }
 0x141   : > { %762 = vmatmul.bf16.gmra.mxu3 %v638_v43  ;;  %v552_v46 = vadd.f32 %v3682_v0, %v551_v24  ;;  %v790_v3 = vmul.f32 %v3832_v57, %v3832_v57 }
 0x142   : > { %v513_v55 = vpop.f32.mrf.mxu0 }
 0x143   : > { %v514_v12 = vadd.f32 %v3682_v0, %v513_v55  ;;  %v589_v62 = vmax.f32 %v552_v46, 0.0  ;;  %v794_v46 = vmul.f32 %v3701_v9, %v3701_v9 }
 0x145   : > { %v574_v47 = vmax.f32 %v514_v12, 0.0  ;;  %v3845_v7 = vadd.f32 %v589_v62, %v3653_v53  ;;  %v795_v12 = vmul.f32 %v3704_v35, %v3704_v35 }
 0x147   : > { %v3835_v63 = vadd.f32 %v574_v47, %v3650_v52  ;;  %5023 = vst [vmem:[#allocation20_spill] sm:$0xff] %v3845_v7 }
 0x148   : > { %v553_v38 = vpop.f32.mrf.mxu2 }
 0x149   : > { %v554_v1 = vadd.f32 %v3682_v0, %v553_v38  ;;  %v631_v26 = vpack.c.bf16 %v3835_v63, %v3832_v57  ;;  %v791_v17 = vmul.f32 %v3835_v63, %v3835_v63 }
 0x14a   : > { %v516_v51 = vpop.f32.mrf.mxu0 }
 0x14b   : > { %v590_v39 = vmax.f32 %v554_v1, 0.0  ;;  %727 = vmatmul.bf16.gmra.mxu1 %v631_v26  ;;  %v816_v52 = vpack.c.bf16 %v791_v17, %v790_v3  ;;  %v517_v40 = vadd.f32 %v3682_v0, %v516_v51  ;;  %v2862_v1 = vld [vmem:[#allocation5 + $0x48] sm:$0xff]  ;;  %v2861_v17 = vld [vmem:[#allocation5 + $0x40] sm:$0xff] }
 0x14c   : > { %1591 = vmatpush.bf16.msrb.mxu3 %v2862_v1 }
 0x14d   : > { %v3848_v13 = vadd.f32 %v590_v39, %v3656_v54  ;;  %864 = vmatmul.bf16.gmra.mxu2 %v816_v52  ;;  %v575_v22 = vmax.f32 %v517_v40, 0.0  ;;  %v796_v39 = vmul.f32 %v3725_v16, %v3725_v16  ;;  %v797_v52 = vmul.f32 %v3728_v5, %v3728_v5 }
 0x14f   : > { %5024 = vst [vmem:[#allocation21_spill] sm:$0xff] %v3848_v13  ;;  %v639_v20 = vpack.c.bf16 %v3848_v13, %v3845_v7  ;;  %v3856_v34 = vadd.f32 %v575_v22, %v3664_v58 }
 0x150   : > { %v556_v31 = vpop.f32.mrf.mxu2  ;;  %1592 = vmatpush.bf16.msrb.mxu3 %v2861_v17 }
 0x151   : > { %767 = vmatmul.bf16.gmra.mxu3 %v639_v20  ;;  %v557_v53 = vadd.f32 %v3682_v0, %v556_v31  ;;  %v792_v43 = vmul.f32 %v3856_v34, %v3856_v34 }
 0x152   : > { %v518_v19 = vpop.f32.mrf.mxu0 }
 0x153   : > { %v519_v28 = vadd.f32 %v3682_v0, %v518_v19  ;;  %v591_v54 = vmax.f32 %v557_v53, 0.0  ;;  %v819_v19 = vpack.c.bf16 %v797_v52, %v796_v39 }
 0x155   : > { %v576_v10 = vmax.f32 %v519_v28, 0.0  ;;  %v3869_v58 = vadd.f32 %v591_v54, %v3670_v60  ;;  %v818_v60 = vpack.c.bf16 %v795_v12, %v794_v46 }
 0x157   : > { %v3859_v36 = vadd.f32 %v576_v10, %v3667_v59  ;;  %5025 = vst [vmem:[#allocation22_spill] sm:$0xff] %v3869_v58 }
 0x158   : > { %v558_v45 = vpop.f32.mrf.mxu2 }
 0x159   : > { %v559_v41 = vadd.f32 %v3682_v0, %v558_v45  ;;  %v632_v33 = vpack.c.bf16 %v3859_v36, %v3856_v34  ;;  %v793_v24 = vmul.f32 %v3859_v36, %v3859_v36 }
 0x15b   : > { %v592_v11 = vmax.f32 %v559_v41, 0.0  ;;  %732 = vmatmul.bf16.gmra.mxu1 %v632_v33  ;;  %v817_v55 = vpack.c.bf16 %v793_v24, %v792_v43 }
 0x15d   : > { %v3872_v59 = vadd.f32 %v592_v11, %v3673_v61  ;;  %869 = vmatmul.bf16.gmra.mxu2 %v817_v55 }
 0x15f   : > { %5026 = vst [vmem:[#allocation23_spill] sm:$0xff] %v3872_v59  ;;  %v640_v0 = vpack.c.bf16 %v3872_v59, %v3869_v58 }
 0x161   : > { %772 = vmatmul.bf16.gmra.mxu3 %v640_v0 }
 0x168   : > { %v3880_v47 = vpop.f32.mrf.mxu1 }
 0x169   : > { %v915_v62 = vmul.f32 %v3880_v47, %v3880_v47 }
 0x16d   : > { %874 = vmatmul.bf16.gmra.mxu2 %v818_v60 }
 0x170   : > { %v3884_v61 = vpop.f32.mrf.mxu1  ;;  %v835_v38 = vpop.f32.mrf.mxu2 }
 0x171   : > { %v947_v26 = vsub.f32 %v835_v38, %v915_v62  ;;  %v916_v51 = vmul.f32 %v3884_v61, %v3884_v61 }
 0x173   : > { %v979_v3 = vmax.f32 %v947_v26, 0.0  ;;  %v798_v26 = vmul.f32 %v3749_v23, %v3749_v23 }
 0x174   : > { %v3894_v28 = vpop.f32.mrf.mxu3 }
 0x175   : > { %v1043_v6 = vadd.f32 1e-05, %v979_v3  ;;  %v799_v3 = vmul.f32 %v3752_v49, %v3752_v49 }
 0x177   : > { %2987 = vrsqrt.f32 %v1043_v6  ;;  %vm1081_vm1 = vweird.f32 %v1043_v6 }
 0x178   : > { %v3892_v40 = vpop.f32.mrf.mxu1  ;;  %v837_v20 = vpop.f32.mrf.mxu2 }
 0x179   : > { %v948_v31 = vsub.f32 %v837_v20, %v916_v51  ;;  %v917_v45 = vmul.f32 %v3892_v40, %v3892_v40 }
 0x17b   : > { %v980_v22 = vmax.f32 %v948_v31, 0.0 }
 0x17c   : > { %v3902_v38 = vpop.f32.mrf.mxu3 }
 0x17d   : > { %v2988_v53 = vpop.eup %2987  ;;  %v1044_v10 = vadd.f32 1e-05, %v980_v22  ;;  %879 = vmatmul.bf16.gmra.mxu2 %v819_v19  ;;  %v1011_v22 = vsub.f32 %v3688_v8, %v3880_v47  ;;  %v1012_v8 = vsub.f32 %v3691_v15, %v3884_v61 }
 0x17e   : > { %v1076_v54 = vmul.f32 %v2988_v53, %v1043_v6  ;;  %vm1082_vm0 = vweird.f32 %v2988_v53  ;;  %v3918_v6 = vld [vmem:[%s5001_s3] ss:$0 sm:$0xff] }
 0x17f   : > { %2989 = vrsqrt.f32 %v1044_v10  ;;  %vm1083_vm2 = vmor %vm1081_vm1, %vm1082_vm0  ;;  %vm1091_vm4 = vweird.f32 %v1044_v10 }
 0x180   : > { %v1077_v41 = vmul.f32 %v2988_v53, %v1076_v54  ;;  %v3898_v33 = vpop.f32.mrf.mxu1  ;;  %v840_v43 = vpop.f32.mrf.mxu2  ;;  %v820_v54 = vpack.c.bf16 %v799_v3, %v798_v26 }
 0x181   : > { %v949_v24 = vsub.f32 %v840_v43, %v917_v45  ;;  %v918_v1 = vmul.f32 %v3898_v33, %v3898_v33 }
 0x182   : > { %v1078_v11 = vmul.f32 0.5, %v1077_v41 }
 0x183   : > { %v981_v55 = vmax.f32 %v949_v24, 0.0 }
 0x184   : > { %v1079_v0 = vsub.f32 1.5, %v1078_v11 }
 0x185   : > { %v2990_v46 = vpop.eup %2989  ;;  %v3900_v12 = vadd.f32 1e-05, %v981_v55 }
 0x186   : > { %v1080_v60 = vmul.f32 %v2988_v53, %v1079_v0  ;;  %v1086_v62 = vmul.f32 %v2990_v46, %v1044_v10  ;;  %vm1092_vm3 = vweird.f32 %v2990_v46 }
 0x187   : > { %2991 = vrsqrt.f32 %v3900_v12  ;;  %vm1093_vm5 = vmor %vm1091_vm4, %vm1092_vm3  ;;  %vm1101_vm7 = vweird.f32 %v3900_v12 }
 0x188   : > { %v1087_v17 = vmul.f32 %v2990_v46, %v1086_v62  ;;  %v3911_v51 = vpop.f32.mrf.mxu1  ;;  %v842_v39 = vpop.f32.mrf.mxu2  ;;  %v1084_v20 = vsel %vm1083_vm2, %v2988_v53, %v1080_v60 }
 0x189   : > { %v950_v52 = vsub.f32 %v842_v39, %v918_v1  ;;  %v1395_v24 = vmul.f32 %v1084_v20, %v1011_v22  ;;  %v919_v47 = vmul.f32 %v3911_v51, %v3911_v51  ;;  %v3927_v1 = vpop.f32.mrf.mxu3 }
 0x18a   : > { %v1088_v31 = vmul.f32 0.5, %v1087_v17  ;;  %v3930_v17 = vld [vmem:[#allocation8] ss:$0 sm:$0xff] }
 0x18b   : > { %v982_v19 = vmax.f32 %v950_v52, 0.0  ;;  %v1431_v10 = vmul.f32 %v3918_v6, %v1395_v24 }
 0x18c   : > { %v1089_v45 = vsub.f32 1.5, %v1088_v31 }
 0x18d   : > { %v2992_v41 = vpop.eup %2991  ;;  %v1046_v43 = vadd.f32 1e-05, %v982_v19  ;;  %884 = vmatmul.bf16.gmra.mxu2 %v820_v54 }
 0x18e   : > { %v1090_v11 = vmul.f32 %v2990_v46, %v1089_v45  ;;  %v1096_v53 = vmul.f32 %v2992_v41, %v3900_v12  ;;  %vm1102_vm6 = vweird.f32 %v2992_v41  ;;  %v800_v45 = vmul.f32 %v3773_v30, %v3773_v30 }
 0x18f   : > { %2993 = vrsqrt.f32 %v1046_v43  ;;  %vm1103_vm8 = vmor %vm1101_vm7, %vm1102_vm6  ;;  %vm1111_vm10 = vweird.f32 %v1046_v43 }
 0x190   : > { %v1094_v55 = vsel %vm1093_vm5, %v2990_v46, %v1090_v11  ;;  %v1097_v0 = vmul.f32 %v2992_v41, %v1096_v53  ;;  %v3925_v60 = vpop.f32.mrf.mxu1  ;;  %v845_v62 = vpop.f32.mrf.mxu2  ;;  %v3936_v46 = vadd.f32 %v3930_v17, %v1431_v10  ;;  %v801_v53 = vmul.f32 %v3776_v18, %v3776_v18 }
 0x191   : > { %v951_v26 = vsub.f32 %v845_v62, %v919_v47  ;;  %v1396_v3 = vmul.f32 %v1094_v55, %v1012_v8  ;;  %v920_v24 = vmul.f32 %v3925_v60, %v3925_v60  ;;  %v3955_v10 = vpop.f32.mrf.mxu3 }
 0x192   : > { %v1098_v39 = vmul.f32 0.5, %v1097_v0 }
 0x193   : > { %v983_v15 = vmax.f32 %v951_v26, 0.0  ;;  %v1432_v61 = vmul.f32 %v3918_v6, %v1396_v3  ;;  %v1013_v3 = vsub.f32 %v3712_v50, %v3892_v40 }
 0x194   : > { %v1099_v52 = vsub.f32 1.5, %v1098_v39 }
 0x195   : > { %v2994_v20 = vpop.eup %2993  ;;  %v3933_v31 = vadd.f32 1e-05, %v983_v15  ;;  %v3939_v22 = vadd.f32 %v3930_v17, %v1432_v61  ;;  %v821_v15 = vpack.c.bf16 %v801_v53, %v800_v45 }
 0x196   : > { %v1100_v19 = vmul.f32 %v2992_v41, %v1099_v52  ;;  %v1106_v54 = vmul.f32 %v2994_v20, %v1046_v43  ;;  %vm1112_vm9 = vweird.f32 %v2994_v20 }
 0x197   : > { %2995 = vrsqrt.f32 %v3933_v31  ;;  %v1499_v11 = vpack.c.bf16 %v3939_v22, %v3936_v46  ;;  %vm1113_vm11 = vmor %vm1111_vm10, %vm1112_vm9  ;;  %vm1121_vm13 = vweird.f32 %v3933_v31 }
 0x198   : > { %v1107_v8 = vmul.f32 %v2994_v20, %v1106_v54  ;;  %v3951_v47 = vpop.f32.mrf.mxu1  ;;  %v847_v55 = vpop.f32.mrf.mxu2  ;;  %v1104_v26 = vsel %vm1103_vm8, %v2992_v41, %v1100_v19  ;;  %v1014_v41 = vsub.f32 %v3715_v56, %v3898_v33 }
 0x199   : > { %v952_v0 = vsub.f32 %v847_v55, %v920_v24  ;;  %1593 = vmatmul.bf16.vlgmr.msrb.gmra.mxu3 %v1499_v11  ;;  %v1397_v54 = vmul.f32 %v1104_v26, %v1013_v3  ;;  %v921_v50 = vmul.f32 %v3951_v47, %v3951_v47  ;;  %v3966_v33 = vpop.f32.mrf.mxu3 }
 0x19a   : > { %v1108_v62 = vmul.f32 0.5, %v1107_v8 }
 0x19b   : > { %v984_v39 = vmax.f32 %v952_v0, 0.0  ;;  %v1433_v55 = vmul.f32 %v3918_v6, %v1397_v54 }
 0x19c   : > { %v1109_v61 = vsub.f32 1.5, %v1108_v62 }
 0x19d   : > { %v2996_v52 = vpop.eup %2995  ;;  %v1048_v12 = vadd.f32 1e-05, %v984_v39  ;;  %889 = vmatmul.bf16.gmra.mxu2 %v821_v15  ;;  %v3971_v39 = vadd.f32 %v3930_v17, %v1433_v55  ;;  %v1015_v55 = vsub.f32 %v3736_v27, %v3911_v51 }
 0x19e   : > { %v1110_v18 = vmul.f32 %v2994_v20, %v1109_v61  ;;  %v1116_v24 = vmul.f32 %v2996_v52, %v3933_v31  ;;  %vm1122_vm12 = vweird.f32 %v2996_v52  ;;  %v802_v61 = vmul.f32 %v3797_v37, %v3797_v37 }
 0x19f   : > { %2997 = vrsqrt.f32 %v1048_v12  ;;  %vm1123_vm14 = vmor %vm1121_vm13, %vm1122_vm12  ;;  %vm1131_vm0 = vweird.f32 %v1048_v12 }
 0x1a0   : > { %v1117_v40 = vmul.f32 %v2996_v52, %v1116_v24  ;;  %v3962_v19 = vpop.f32.mrf.mxu1  ;;  %v850_v45 = vpop.f32.mrf.mxu2  ;;  %v1114_v11 = vsel %vm1113_vm11, %v2994_v20, %v1110_v18 }
 0x1a1   : > { %v953_v53 = vsub.f32 %v850_v45, %v921_v50  ;;  %v1398_v8 = vmul.f32 %v1114_v11, %v1014_v41  ;;  %v922_v54 = vmul.f32 %v3962_v19, %v3962_v19  ;;  %v803_v41 = vmul.f32 %v3800_v25, %v3800_v25 }
 0x1a2   : > { %v1118_v43 = vmul.f32 0.5, %v1117_v40 }
 0x1a3   : > { %v985_v0 = vmax.f32 %v953_v53, 0.0  ;;  %v1434_v62 = vmul.f32 %v3918_v6, %v1398_v8 }
 0x1a4   : > { %v1119_v26 = vsub.f32 1.5, %v1118_v43 }
 0x1a5   : > { %v2998_v56 = vpop.eup %2997  ;;  %v3968_v3 = vadd.f32 1e-05, %v985_v0  ;;  %v3974_v15 = vadd.f32 %v3930_v17, %v1434_v62  ;;  %v822_v0 = vpack.c.bf16 %v803_v41, %v802_v61 }
 0x1a6   : > { %v1120_v18 = vmul.f32 %v2996_v52, %v1119_v26  ;;  %v1126_v20 = vmul.f32 %v2998_v56, %v1048_v12  ;;  %vm1132_vm15 = vweird.f32 %v2998_v56 }
 0x1a7   : > { %2999 = vrsqrt.f32 %v3968_v3  ;;  %v1500_v24 = vpack.c.bf16 %v3974_v15, %v3971_v39  ;;  %vm1133_vm1 = vmor %vm1131_vm0, %vm1132_vm15  ;;  %vm1141_vm3 = vweird.f32 %v3968_v3 }
 0x1a8   : > { %v1127_v50 = vmul.f32 %v2998_v56, %v1126_v20  ;;  %v3986_v40 = vpop.f32.mrf.mxu1  ;;  %v852_v45 = vpop.f32.mrf.mxu2  ;;  %v1124_v8 = vsel %vm1123_vm14, %v2996_v52, %v1120_v18 }
 0x1a9   : > { %v954_v11 = vsub.f32 %v852_v45, %v922_v54  ;;  %1598 = vmatmul.bf16.gmra.mxu3 %v1500_v24  ;;  %v1399_v31 = vmul.f32 %v1124_v8, %v1015_v55  ;;  %v1016_v54 = vsub.f32 %v3739_v29, %v3925_v60  ;;  %v3993_v52 = vpop.f32.mrf.mxu3  ;;  %v923_v27 = vmul.f32 %v3986_v40, %v3986_v40 }
 0x1aa   : > { %v1128_v53 = vmul.f32 0.5, %v1127_v50 }
 0x1ab   : > { %v986_v43 = vmax.f32 %v954_v11, 0.0  ;;  %v1435_v12 = vmul.f32 %v3918_v6, %v1399_v31 }
 0x1ac   : > { %v1129_v62 = vsub.f32 1.5, %v1128_v53 }
 0x1ad   : > { %v3000_v26 = vpop.eup %2999  ;;  %v1050_v25 = vadd.f32 1e-05, %v986_v43  ;;  %894 = vmatmul.bf16.gmra.mxu2 %v822_v0  ;;  %v4004_v55 = vadd.f32 %v3930_v17, %v1435_v12  ;;  %v804_v0 = vmul.f32 %v3821_v44, %v3821_v44  ;;  %v1017_v12 = vsub.f32 %v3760_v2, %v3951_v47 }
 0x1ae   : > { %v1130_v20 = vmul.f32 %v2998_v56, %v1129_v62  ;;  %v1136_v37 = vmul.f32 %v3000_v26, %v3968_v3  ;;  %vm1142_vm2 = vweird.f32 %v3000_v26 }
 0x1af   : > { %3001 = vrsqrt.f32 %v1050_v25  ;;  %vm1143_vm4 = vmor %vm1141_vm3, %vm1142_vm2  ;;  %vm1151_vm6 = vweird.f32 %v1050_v25 }
 0x1b0   : > { %v1137_v51 = vmul.f32 %v3000_v26, %v1136_v37  ;;  %v3997_v18 = vpop.f32.mrf.mxu1  ;;  %v855_v61 = vpop.f32.mrf.mxu2  ;;  %v1134_v24 = vsel %vm1133_vm1, %v2998_v56, %v1130_v20  ;;  %v805_v20 = vmul.f32 %v3824_v32, %v3824_v32 }
 0x1b1   : > { %v955_v41 = vsub.f32 %v855_v61, %v923_v27  ;;  %v1400_v50 = vmul.f32 %v1134_v24, %v1016_v54  ;;  %v924_v62 = vmul.f32 %v3997_v18, %v3997_v18  ;;  %v4021_v24 = vpop.f32.mrf.mxu3 }
 0x1b2   : > { %v1138_v45 = vmul.f32 0.5, %v1137_v51 }
 0x1b3   : > { %v987_v11 = vmax.f32 %v955_v41, 0.0  ;;  %v1436_v29 = vmul.f32 %v3918_v6, %v1400_v50 }
 0x1b4   : > { %v1139_v60 = vsub.f32 1.5, %v1138_v45 }
 0x1b5   : > { %v3002_v53 = vpop.eup %3001  ;;  %v4001_v8 = vadd.f32 1e-05, %v987_v11  ;;  %v4007_v37 = vadd.f32 %v3930_v17, %v1436_v29  ;;  %v823_v11 = vpack.c.bf16 %v805_v20, %v804_v0 }
 0x1b6   : > { %v1140_v43 = vmul.f32 %v3000_v26, %v1139_v60  ;;  %v1146_v56 = vmul.f32 %v3002_v53, %v1050_v25  ;;  %vm1152_vm5 = vweird.f32 %v3002_v53 }
 0x1b7   : > { %3003 = vrsqrt.f32 %v4001_v8  ;;  %v1501_v31 = vpack.c.bf16 %v4007_v37, %v4004_v55  ;;  %vm1153_vm7 = vmor %vm1151_vm6, %vm1152_vm5  ;;  %vm1161_vm9 = vweird.f32 %v4001_v8 }
 0x1b8   : > { %v1147_v54 = vmul.f32 %v3002_v53, %v1146_v56  ;;  %v4019_v27 = vpop.f32.mrf.mxu1  ;;  %v857_v51 = vpop.f32.mrf.mxu2  ;;  %v1144_v50 = vsel %vm1143_vm4, %v3000_v26, %v1140_v43 }
 0x1b9   : > { %v956_v61 = vsub.f32 %v857_v51, %v924_v62  ;;  %1603 = vmatmul.bf16.gmra.mxu3 %v1501_v31  ;;  %v1401_v56 = vmul.f32 %v1144_v50, %v1017_v12  ;;  %v1018_v31 = vsub.f32 %v3763_v4, %v3962_v19  ;;  %v925_v26 = vmul.f32 %v4019_v27, %v4019_v27  ;;  %v4034_v50 = vpop.f32.mrf.mxu3 }
 0x1ba   : > { %v1148_v41 = vmul.f32 0.5, %v1147_v54 }
 0x1bb   : > { %v988_v45 = vmax.f32 %v956_v61, 0.0  ;;  %v1437_v51 = vmul.f32 %v3918_v6, %v1401_v56 }
 0x1bc   : > { %v1149_v29 = vsub.f32 1.5, %v1148_v41 }
 0x1bd   : > { %v3004_v60 = vpop.eup %3003  ;;  %v1052_v3 = vadd.f32 1e-05, %v988_v45  ;;  %899 = vmatmul.bf16.gmra.mxu2 %v823_v11  ;;  %v4039_v45 = vadd.f32 %v3930_v17, %v1437_v51  ;;  %v1019_v51 = vsub.f32 %v3784_v42, %v3986_v40 }
 0x1be   : > { %v1150_v32 = vmul.f32 %v3002_v53, %v1149_v29  ;;  %v1156_v62 = vmul.f32 %v3004_v60, %v4001_v8  ;;  %vm1162_vm8 = vweird.f32 %v3004_v60  ;;  %v806_v29 = vmul.f32 %v3845_v7, %v3845_v7 }
 0x1bf   : > { %3005 = vrsqrt.f32 %v1052_v3  ;;  %vm1163_vm10 = vmor %vm1161_vm9, %vm1162_vm8  ;;  %vm1171_vm12 = vweird.f32 %v1052_v3 }
 0x1c0   : > { %v1157_v2 = vmul.f32 %v3004_v60, %v1156_v62  ;;  %v4030_v47 = vpop.f32.mrf.mxu1  ;;  %v860_v43 = vpop.f32.mrf.mxu2  ;;  %v1154_v0 = vsel %vm1153_vm7, %v3002_v53, %v1150_v32 }
 0x1c1   : > { %v957_v20 = vsub.f32 %v860_v43, %v925_v26  ;;  %v1402_v54 = vmul.f32 %v1154_v0, %v1018_v31  ;;  %v926_v56 = vmul.f32 %v4030_v47, %v4030_v47  ;;  %v807_v31 = vmul.f32 %v3848_v13, %v3848_v13 }
 0x1c2   : > { %v1158_v25 = vmul.f32 0.5, %v1157_v2 }
 0x1c3   : > { %v989_v61 = vmax.f32 %v957_v20, 0.0  ;;  %v1438_v41 = vmul.f32 %v3918_v6, %v1402_v54 }
 0x1c4   : > { %v1159_v4 = vsub.f32 1.5, %v1158_v25 }
 0x1c5   : > { %v3006_v19 = vpop.eup %3005  ;;  %v4036_v12 = vadd.f32 1e-05, %v989_v61  ;;  %v4042_v11 = vadd.f32 %v3930_v17, %v1438_v41  ;;  %v824_v61 = vpack.c.bf16 %v807_v31, %v806_v29 }
 0x1c6   : > { %v1160_v32 = vmul.f32 %v3004_v60, %v1159_v4  ;;  %v1166_v53 = vmul.f32 %v3006_v19, %v1052_v3  ;;  %vm1172_vm11 = vweird.f32 %v3006_v19 }
 0x1c7   : > { %3007 = vrsqrt.f32 %v4036_v12  ;;  %v1502_v62 = vpack.c.bf16 %v4042_v11, %v4039_v45  ;;  %vm1173_vm13 = vmor %vm1171_vm12, %vm1172_vm11  ;;  %vm1181_vm15 = vweird.f32 %v4036_v12 }
 0x1c8   : > { %v1167_v26 = vmul.f32 %v3006_v19, %v1166_v53  ;;  %v4054_v2 = vpop.f32.mrf.mxu1  ;;  %v862_v43 = vpop.f32.mrf.mxu2  ;;  %v1164_v20 = vsel %vm1163_vm10, %v3004_v60, %v1160_v32  ;;  %v1020_v60 = vsub.f32 %v3787_v48, %v3997_v18 }
 0x1c9   : > { %v958_v0 = vsub.f32 %v862_v43, %v926_v56  ;;  %1608 = vmatmul.bf16.gmra.mxu3 %v1502_v62  ;;  %v1403_v8 = vmul.f32 %v1164_v20, %v1019_v51  ;;  %v4058_v53 = vpop.f32.mrf.mxu3  ;;  %v927_v42 = vmul.f32 %v4054_v2, %v4054_v2 }
 0x1ca   : > { %v1168_v54 = vmul.f32 0.5, %v1167_v26 }
 0x1cb   : > { %v990_v25 = vmax.f32 %v958_v0, 0.0  ;;  %v1439_v43 = vmul.f32 %v3918_v6, %v1403_v8 }
 0x1cc   : > { %v1169_v41 = vsub.f32 1.5, %v1168_v54 }
 0x1cd   : > { %v3008_v4 = vpop.eup %3007  ;;  %v1054_v13 = vadd.f32 1e-05, %v990_v25  ;;  %904 = vmatmul.bf16.gmra.mxu2 %v824_v61  ;;  %v4070_v51 = vadd.f32 %v3930_v17, %v1439_v43  ;;  %v808_v61 = vmul.f32 %v3869_v58, %v3869_v58  ;;  %v1021_v43 = vsub.f32 %v3808_v14, %v4019_v27 }
 0x1ce   : > { %v1170_v7 = vmul.f32 %v3006_v19, %v1169_v41  ;;  %v1176_v56 = vmul.f32 %v3008_v4, %v4036_v12  ;;  %vm1182_vm14 = vweird.f32 %v3008_v4 }
 0x1cf   : > { %3009 = vrsqrt.f32 %v1054_v13  ;;  %vm1183_vm0 = vmor %vm1181_vm15, %vm1182_vm14  ;;  %vm1191_vm2 = vweird.f32 %v1054_v13 }
 0x1d0   : > { %v1174_v40 = vsel %vm1173_vm13, %v3006_v19, %v1170_v7  ;;  %v1177_v32 = vmul.f32 %v3008_v4, %v1176_v56  ;;  %v4065_v29 = vpop.f32.mrf.mxu1  ;;  %v865_v62 = vpop.f32.mrf.mxu2  ;;  %v809_v56 = vmul.f32 %v3872_v59, %v3872_v59 }
 0x1d1   : > { %v959_v31 = vsub.f32 %v865_v62, %v927_v42  ;;  %v1404_v26 = vmul.f32 %v1174_v40, %v1020_v60  ;;  %v928_v41 = vmul.f32 %v4065_v29, %v4065_v29  ;;  %v4083_v60 = vpop.f32.mrf.mxu3 }
 0x1d2   : > { %v1178_v3 = vmul.f32 0.5, %v1177_v32 }
 0x1d3   : > { %v991_v0 = vmax.f32 %v959_v31, 0.0  ;;  %v1440_v20 = vmul.f32 %v3918_v6, %v1404_v26 }
 0x1d4   : > { %v1179_v54 = vsub.f32 1.5, %v1178_v3 }
 0x1d5   : > { %v3010_v48 = vpop.eup %3009  ;;  %v1055_v18 = vadd.f32 1e-05, %v991_v0  ;;  %v4073_v7 = vadd.f32 %v3930_v17, %v1440_v20  ;;  %v825_v0 = vpack.c.bf16 %v809_v56, %v808_v61 }
 0x1d6   : > { %v1180_v19 = vmul.f32 %v3008_v4, %v1179_v54  ;;  %v1186_v25 = vmul.f32 %v3010_v48, %v1054_v13  ;;  %vm1192_vm1 = vweird.f32 %v3010_v48 }
 0x1d7   : > { %3011 = vrsqrt.f32 %v1055_v18  ;;  %v1503_v8 = vpack.c.bf16 %v4073_v7, %v4070_v51  ;;  %vm1193_vm3 = vmor %vm1191_vm2, %vm1192_vm1  ;;  %vm1201_vm5 = vweird.f32 %v1055_v18 }
 0x1d8   : > { %v1187_v42 = vmul.f32 %v3010_v48, %v1186_v25  ;;  %v867_v40 = vpop.f32.mrf.mxu2  ;;  %v1184_v62 = vsel %vm1183_vm0, %v3008_v4, %v1180_v19  ;;  %v4086_v26 = vpop.f32.mrf.mxu1  ;;  %v1022_v4 = vsub.f32 %v3811_v21, %v4030_v47 }
 0x1d9   : > { %v960_v32 = vsub.f32 %v867_v40, %v928_v41  ;;  %1613 = vmatmul.bf16.gmra.mxu3 %v1503_v8  ;;  %v1405_v12 = vmul.f32 %v1184_v62, %v1021_v43  ;;  %v929_v19 = vmul.f32 %v4086_v26, %v4086_v26 }
 0x1da   : > { %v1188_v31 = vmul.f32 0.5, %v1187_v42  ;;  %v4095_v42 = vpop.f32.mrf.mxu3 }
 0x1db   : > { %v992_v3 = vmax.f32 %v960_v32, 0.0  ;;  %v1441_v56 = vmul.f32 %v3918_v6, %v1405_v12 }
 0x1dc   : > { %v1189_v20 = vsub.f32 1.5, %v1188_v31 }
 0x1dd   : > { %v3012_v54 = vpop.eup %3011  ;;  %v1056_v59 = vadd.f32 1e-05, %v992_v3  ;;  %909 = vmatmul.bf16.gmra.mxu2 %v825_v0  ;;  %v4101_v43 = vadd.f32 %v3930_v17, %v1441_v56 }
 0x1de   : > { %v1190_v25 = vmul.f32 %v3010_v48, %v1189_v20  ;;  %v1196_v58 = vmul.f32 %v3012_v54, %v1055_v18  ;;  %vm1202_vm4 = vweird.f32 %v3012_v54 }
 0x1df   : > { %3013 = vrsqrt.f32 %v1056_v59  ;;  %vm1203_vm6 = vmor %vm1201_vm5, %vm1202_vm4  ;;  %vm1211_vm8 = vweird.f32 %v1056_v59 }
 0x1e0   : > { %v1194_v14 = vsel %vm1193_vm3, %v3010_v48, %v1190_v25  ;;  %v1197_v27 = vmul.f32 %v3012_v54, %v1196_v58  ;;  %v870_v61 = vpop.f32.mrf.mxu2  ;;  %v4098_v21 = vpop.f32.mrf.mxu1 }
 0x1e1   : > { %v961_v41 = vsub.f32 %v870_v61, %v929_v19  ;;  %v1406_v8 = vmul.f32 %v1194_v14, %v1022_v4  ;;  %v930_v0 = vmul.f32 %v4098_v21, %v4098_v21 }
 0x1e2   : > { %v1198_v40 = vmul.f32 0.5, %v1197_v27  ;;  %v1023_v27 = vsub.f32 %v3832_v57, %v4054_v2 }
 0x1e3   : > { %v993_v13 = vmax.f32 %v961_v41, 0.0  ;;  %v1442_v32 = vmul.f32 %v3918_v6, %v1406_v8  ;;  %v4112_v41 = vpop.f32.mrf.mxu3 }
 0x1e4   : > { %v1199_v62 = vsub.f32 1.5, %v1198_v40 }
 0x1e5   : > { %v3014_v47 = vpop.eup %3013  ;;  %v1057_v31 = vadd.f32 1e-05, %v993_v13  ;;  %v4104_v58 = vadd.f32 %v3930_v17, %v1442_v32 }
 0x1e6   : > { %v1200_v48 = vmul.f32 %v3012_v54, %v1199_v62  ;;  %v1206_v3 = vmul.f32 %v3014_v47, %v1056_v59  ;;  %vm1212_vm7 = vweird.f32 %v3014_v47  ;;  %v931_v62 = vmul.f32 %v3894_v28, %v3894_v28 }
 0x1e7   : > { %3015 = vrsqrt.f32 %v1057_v31  ;;  %v1504_v20 = vpack.c.bf16 %v4104_v58, %v4101_v43  ;;  %vm1213_vm9 = vmor %vm1211_vm8, %vm1212_vm7  ;;  %vm1221_vm11 = vweird.f32 %v1057_v31 }
 0x1e8   : > { %v1207_v12 = vmul.f32 %v3014_v47, %v1206_v3  ;;  %v872_v25 = vpop.f32.mrf.mxu2  ;;  %v1204_v19 = vsel %vm1203_vm6, %v3012_v54, %v1200_v48  ;;  %v1024_v54 = vsub.f32 %v3835_v63, %v4065_v29 }
 0x1e9   : > { %v962_v4 = vsub.f32 %v872_v25, %v930_v0  ;;  %1618 = vmatmul.bf16.gmra.mxu3 %v1504_v20  ;;  %v1407_v13 = vmul.f32 %v1204_v19, %v1023_v27 }
 0x1ea   : > { %v1208_v14 = vmul.f32 0.5, %v1207_v12 }
 0x1eb   : > { %v994_v61 = vmax.f32 %v962_v4, 0.0  ;;  %v1443_v20 = vmul.f32 %v3918_v6, %v1407_v13  ;;  %v4126_v29 = vpop.f32.mrf.mxu3 }
 0x1ec   : > { %v1209_v8 = vsub.f32 1.5, %v1208_v14 }
 0x1ed   : > { %v3016_v56 = vpop.eup %3015  ;;  %v1058_v40 = vadd.f32 1e-05, %v994_v61  ;;  %v4121_v27 = vadd.f32 %v3930_v17, %v1443_v20 }
 0x1ee   : > { %v1210_v32 = vmul.f32 %v3014_v47, %v1209_v8  ;;  %v1216_v18 = vmul.f32 %v3016_v56, %v1057_v31  ;;  %vm1222_vm10 = vweird.f32 %v3016_v56  ;;  %v932_v8 = vmul.f32 %v3902_v38, %v3902_v38 }
 0x1ef   : > { %3017 = vrsqrt.f32 %v1058_v40  ;;  %vm1223_vm12 = vmor %vm1221_vm11, %vm1222_vm10  ;;  %vm1231_vm14 = vweird.f32 %v1058_v40  ;;  %v933_v31 = vmul.f32 %v3927_v1, %v3927_v1 }
 0x1f0   : > { %v1214_v57 = vsel %vm1213_vm9, %v3014_v47, %v1210_v32  ;;  %v1217_v2 = vmul.f32 %v3016_v56, %v1216_v18  ;;  %v875_v48 = vpop.f32.mrf.mxu2 }
 0x1f1   : > { %v963_v3 = vsub.f32 %v875_v48, %v931_v62  ;;  %v1408_v0 = vmul.f32 %v1214_v57, %v1024_v54 }
 0x1f2   : > { %v1218_v12 = vmul.f32 0.5, %v1217_v2  ;;  %v1025_v2 = vsub.f32 %v3856_v34, %v4086_v26 }
 0x1f3   : > { %v995_v25 = vmax.f32 %v963_v3, 0.0  ;;  %v1444_v59 = vmul.f32 %v3918_v6, %v1408_v0 }
 0x1f4   : > { %v1219_v4 = vsub.f32 1.5, %v1218_v12 }
 0x1f5   : > { %v3018_v19 = vpop.eup %3017  ;;  %v1059_v14 = vadd.f32 1e-05, %v995_v25  ;;  %v4124_v63 = vadd.f32 %v3930_v17, %v1444_v59 }
 0x1f6   : > { %v1220_v47 = vmul.f32 %v3016_v56, %v1219_v4  ;;  %v1226_v61 = vmul.f32 %v3018_v19, %v1058_v40  ;;  %vm1232_vm13 = vweird.f32 %v3018_v19  ;;  %v1026_v4 = vsub.f32 %v3859_v36, %v4098_v21 }
 0x1f7   : > { %3019 = vrsqrt.f32 %v1059_v14  ;;  %v1505_v13 = vpack.c.bf16 %v4124_v63, %v4121_v27  ;;  %vm1233_vm15 = vmor %vm1231_vm14, %vm1232_vm13  ;;  %vm1241_vm1 = vweird.f32 %v1059_v14 }
 0x1f8   : > { %v1227_v32 = vmul.f32 %v3018_v19, %v1226_v61  ;;  %v877_v18 = vpop.f32.mrf.mxu2  ;;  %v1224_v54 = vsel %vm1223_vm12, %v3016_v56, %v1220_v47  ;;  %v4138_v56 = vpop.f32.mrf.mxu3 }
 0x1f9   : > { %v964_v62 = vsub.f32 %v877_v18, %v932_v8  ;;  %1623 = vmatmul.bf16.gmra.mxu3 %v1505_v13  ;;  %v1409_v12 = vmul.f32 %v1224_v54, %v1025_v2 }
 0x1fa   : > { %v1228_v57 = vmul.f32 0.5, %v1227_v32 }
 0x1fb   : > { %v996_v48 = vmax.f32 %v964_v62, 0.0  ;;  %v1445_v13 = vmul.f32 %v3918_v6, %v1409_v12 }
 0x1fc   : > { %v1229_v3 = vsub.f32 1.5, %v1228_v57 }
 0x1fd   : > { %v3020_v0 = vpop.eup %3019  ;;  %v1060_v20 = vadd.f32 1e-05, %v996_v48  ;;  %v4143_v36 = vadd.f32 %v3930_v17, %v1445_v13  ;;  %v934_v48 = vmul.f32 %v3955_v10, %v3955_v10 }
 0x1fe   : > { %v1230_v25 = vmul.f32 %v3018_v19, %v1229_v3  ;;  %v1236_v59 = vmul.f32 %v3020_v0, %v1059_v14  ;;  %vm1242_vm0 = vweird.f32 %v3020_v0 }
 0x1ff   : > { %3021 = vrsqrt.f32 %v1060_v20  ;;  %vm1243_vm2 = vmor %vm1241_vm1, %vm1242_vm0  ;;  %vm1251_vm4 = vweird.f32 %v1060_v20 }
 0x200   : > { %v1234_v34 = vsel %vm1233_vm15, %v3018_v19, %v1230_v25  ;;  %v1237_v26 = vmul.f32 %v3020_v0, %v1236_v59  ;;  %v880_v47 = vpop.f32.mrf.mxu2 }
 0x201   : > { %v965_v61 = vsub.f32 %v880_v47, %v933_v31  ;;  %v1410_v8 = vmul.f32 %v1234_v34, %v1026_v4  ;;  %v4152_v31 = vpop.f32.mrf.mxu3 }
 0x202   : > { %v1238_v32 = vmul.f32 0.5, %v1237_v26  ;;  %v1027_v26 = vsub.f32 %v3701_v9, %v3894_v28 }
 0x203   : > { %v997_v40 = vmax.f32 %v965_v61, 0.0  ;;  %v1446_v18 = vmul.f32 %v3918_v6, %v1410_v8 }
 0x204   : > { %v1239_v62 = vsub.f32 1.5, %v1238_v32 }
 0x205   : > { %v3022_v54 = vpop.eup %3021  ;;  %v1061_v57 = vadd.f32 1e-05, %v997_v40  ;;  %v4146_v21 = vadd.f32 %v3930_v17, %v1446_v18  ;;  %v1028_v18 = vsub.f32 %v3704_v35, %v3902_v38 }
 0x206   : > { %v1240_v19 = vmul.f32 %v3020_v0, %v1239_v62  ;;  %v1246_v2 = vmul.f32 %v3022_v54, %v1060_v20  ;;  %vm1252_vm3 = vweird.f32 %v3022_v54  ;;  %v935_v62 = vmul.f32 %v3966_v33, %v3966_v33 }
 0x207   : > { %3023 = vrsqrt.f32 %v1061_v57  ;;  %v1506_v3 = vpack.c.bf16 %v4146_v21, %v4143_v36  ;;  %vm1253_vm5 = vmor %vm1251_vm4, %vm1252_vm3  ;;  %vm1261_vm7 = vweird.f32 %v1061_v57 }
 0x208   : > { %v1247_v12 = vmul.f32 %v3022_v54, %v1246_v2  ;;  %v882_v25 = vpop.f32.mrf.mxu2  ;;  %v1244_v4 = vsel %vm1243_vm2, %v3020_v0, %v1240_v19 }
 0x209   : > { %v966_v59 = vsub.f32 %v882_v25, %v934_v48  ;;  %1628 = vmatmul.bf16.gmra.mxu3 %v1506_v3  ;;  %v1411_v32 = vmul.f32 %v1244_v4, %v1027_v26  ;;  %v4162_v25 = vpop.f32.mrf.mxu3 }
 0x20a   : > { %v1248_v34 = vmul.f32 0.5, %v1247_v12 }
 0x20b   : > { %v998_v47 = vmax.f32 %v966_v59, 0.0  ;;  %v1447_v48 = vmul.f32 %v3918_v6, %v1411_v32 }
 0x20c   : > { %v1249_v61 = vsub.f32 1.5, %v1248_v34 }
 0x20d   : > { %v3024_v8 = vpop.eup %3023  ;;  %v1062_v13 = vadd.f32 1e-05, %v998_v47  ;;  %v4165_v4 = vadd.f32 %v3930_v17, %v1447_v48  ;;  %v936_v47 = vmul.f32 %v3993_v52, %v3993_v52 }
 0x20e   : > { %v1250_v40 = vmul.f32 %v3022_v54, %v1249_v61  ;;  %v1256_v14 = vmul.f32 %v3024_v8, %v1061_v57  ;;  %vm1262_vm6 = vweird.f32 %v3024_v8 }
 0x20f   : > { %3025 = vrsqrt.f32 %v1062_v13  ;;  %vm1263_vm8 = vmor %vm1261_vm7, %vm1262_vm6  ;;  %vm1271_vm10 = vweird.f32 %v1062_v13 }
 0x210   : > { %v1254_v0 = vsel %vm1253_vm5, %v3022_v54, %v1250_v40  ;;  %v1257_v19 = vmul.f32 %v3024_v8, %v1256_v14  ;;  %v885_v9 = vpop.f32.mrf.mxu2 }
 0x211   : > { %v967_v28 = vsub.f32 %v885_v9, %v935_v62  ;;  %v1412_v2 = vmul.f32 %v1254_v0, %v1028_v18  ;;  %v1029_v0 = vsub.f32 %v3725_v16, %v3927_v1  ;;  %v4176_v9 = vld [vmem:[#allocation7 + $0x1] ss:$0 sm:$0xff] }
 0x212   : > { %v1258_v3 = vmul.f32 0.5, %v1257_v19 }
 0x213   : > { %v999_v12 = vmax.f32 %v967_v28, 0.0  ;;  %v1448_v20 = vmul.f32 %v3918_v6, %v1412_v2 }
 0x214   : > { %v1259_v59 = vsub.f32 1.5, %v1258_v3 }
 0x215   : > { %v3026_v35 = vpop.eup %3025  ;;  %v1063_v38 = vadd.f32 1e-05, %v999_v12  ;;  %v4168_v54 = vadd.f32 %v3930_v17, %v1448_v20 }
 0x216   : > { %v1260_v34 = vmul.f32 %v3024_v8, %v1259_v59  ;;  %v1266_v26 = vmul.f32 %v3026_v35, %v1062_v13  ;;  %vm1272_vm9 = vweird.f32 %v3026_v35  ;;  %v1030_v59 = vsub.f32 %v3728_v5, %v3955_v10 }
 0x217   : > { %3027 = vrsqrt.f32 %v1063_v38  ;;  %v1507_v61 = vpack.c.bf16 %v4168_v54, %v4165_v4  ;;  %vm1273_vm11 = vmor %vm1271_vm10, %vm1272_vm9  ;;  %vm1281_vm13 = vweird.f32 %v1063_v38 }
 0x218   : > { %v1267_v32 = vmul.f32 %v3026_v35, %v1266_v26  ;;  %v887_v40 = vpop.f32.mrf.mxu2  ;;  %v1264_v18 = vsel %vm1263_vm8, %v3024_v8, %v1260_v34  ;;  %v937_v8 = vmul.f32 %v4021_v24, %v4021_v24 }
 0x219   : > { %v968_v14 = vsub.f32 %v887_v40, %v936_v47  ;;  %1633 = vmatmul.bf16.gmra.mxu3 %v1507_v61  ;;  %v1413_v12 = vmul.f32 %v1264_v18, %v1029_v0 }
 0x21a   : > { %v1268_v62 = vmul.f32 0.5, %v1267_v32 }
 0x21b   : > { %v1000_v19 = vmax.f32 %v968_v14, 0.0  ;;  %v1449_v32 = vmul.f32 %v3918_v6, %v1413_v12 }
 0x21c   : > { %v1269_v28 = vsub.f32 1.5, %v1268_v62  ;;  %v1594_v2 = vpop.f32.mrf.mxu3 }
 0x21d   : > { %v3028_v48 = vpop.eup %3027  ;;  %v1064_v3 = vadd.f32 1e-05, %v1000_v19  ;;  %v1595_v16 = vadd.f32 %v4176_v9, %v1594_v2 }
 0x21e   : > { %v1270_v57 = vmul.f32 %v3026_v35, %v1269_v28  ;;  %v1276_v20 = vmul.f32 %v3028_v48, %v1063_v38  ;;  %vm1282_vm12 = vweird.f32 %v3028_v48 }
 0x21f   : > { %3029 = vrsqrt.f32 %v1064_v3  ;;  %v1674_v13 = vmax.f32 %v1595_v16, 0.0  ;;  %vm4202_vm14 = vmor %vm1281_vm13, %vm1282_vm12  ;;  %vm1291_vm0 = vweird.f32 %v1064_v3 }
 0x220   : > { %v1274_v1 = vsel %vm1273_vm11, %v3026_v35, %v1270_v57  ;;  %v1277_v34 = vmul.f32 %v3028_v48, %v1276_v20  ;;  %v890_v26 = vpop.f32.mrf.mxu2  ;;  %v4189_v35 = vadd.f32 %v3930_v17, %v1449_v32  ;;  %v938_v57 = vmul.f32 %v4034_v50, %v4034_v50 }
 0x221   : > { %v969_v47 = vsub.f32 %v890_v26, %v937_v8  ;;  %v1414_v61 = vmul.f32 %v1274_v1, %v1030_v59  ;;  %v4197_v20 = vadd.f32 %v1674_v13, %v3936_v46  ;;  %v1031_v46 = vsub.f32 %v3749_v23, %v3966_v33 }
 0x222   : > { %v1278_v40 = vmul.f32 0.5, %v1277_v34 }
 0x223   : > { %v1001_v14 = vmax.f32 %v969_v47, 0.0  ;;  %v1450_v18 = vmul.f32 %v3918_v6, %v1414_v61  ;;  %v1843_v13 = vmul.f32 %v4197_v20, %v4197_v20 }
 0x224   : > { %v1279_v5 = vsub.f32 1.5, %v1278_v40  ;;  %v1596_v10 = vpop.f32.mrf.mxu3 }
 0x225   : > { %v3030_v62 = vpop.eup %3029  ;;  %v4185_v0 = vadd.f32 1e-05, %v1001_v14  ;;  %v1597_v19 = vadd.f32 %v4176_v9, %v1596_v10  ;;  %v4192_v28 = vadd.f32 %v3930_v17, %v1450_v18 }
 0x226   : > { %v1280_v2 = vmul.f32 %v3028_v48, %v1279_v5  ;;  %v1286_v12 = vmul.f32 %v3030_v62, %v1064_v3  ;;  %vm1292_vm15 = vweird.f32 %v3030_v62 }
 0x227   : > { %3031 = vrsqrt.f32 %v4185_v0  ;;  %v1675_v59 = vmax.f32 %v1597_v19, 0.0  ;;  %v1508_v8 = vpack.c.bf16 %v4192_v28, %v4189_v35  ;;  %vm1293_vm1 = vmor %vm1291_vm0, %vm1292_vm15  ;;  %vm1301_vm3 = vweird.f32 %v4185_v0 }
 0x228   : > { %v1287_v16 = vmul.f32 %v3030_v62, %v1286_v12  ;;  %v892_v1 = vpop.f32.mrf.mxu2  ;;  %v1284_v61 = vsel %vm4202_vm14, %v3028_v48, %v1280_v2  ;;  %v1032_v2 = vsub.f32 %v3752_v49, %v3993_v52  ;;  %v939_v12 = vmul.f32 %v4058_v53, %v4058_v53 }
 0x229   : > { %v4207_v26 = vadd.f32 %v1675_v59, %v3939_v22  ;;  %v970_v47 = vsub.f32 %v892_v1, %v938_v57  ;;  %1638 = vmatmul.bf16.gmra.mxu3 %v1508_v8  ;;  %v1415_v33 = vmul.f32 %v1284_v61, %v1031_v46 }
 0x22a   : > { %v1288_v32 = vmul.f32 0.5, %v1287_v16 }
 0x22b   : > { %v1002_v40 = vmax.f32 %v970_v47, 0.0  ;;  %v1738_v38 = vpack.c.bf16 %v4207_v26, %v4197_v20  ;;  %v1844_v22 = vmul.f32 %v4207_v26, %v4207_v26  ;;  %v1451_v3 = vmul.f32 %v3918_v6, %v1415_v33 }
 0x22c   : > { %v1289_v14 = vsub.f32 1.5, %v1288_v32  ;;  %v1599_v18 = vpop.f32.mrf.mxu3 }
 0x22d   : > { %v3032_v5 = vpop.eup %3031  ;;  %v4219_v10 = vadd.f32 1e-05, %v1002_v40  ;;  %1762 = vmatmul.bf16.vlgmr.msrb.gmra.mxu0 %v1738_v38  ;;  %v1875_v23 = vpack.c.bf16 %v1844_v22, %v1843_v13  ;;  %v1600_v57 = vadd.f32 %v4176_v9, %v1599_v18 }
 0x22e   : > { %v1290_v48 = vmul.f32 %v3030_v62, %v1289_v14  ;;  %v1296_v19 = vmul.f32 %v3032_v5, %v4185_v0  ;;  %vm1302_vm2 = vweird.f32 %v3032_v5 }
 0x22f   : > { %3033 = vrsqrt.f32 %v4219_v10  ;;  %1899 = vmatmul.bf16.vlgmr.msrb.gmra.mxu1 %v1875_v23  ;;  %v1676_v46 = vmax.f32 %v1600_v57, 0.0  ;;  %vm4249_vm4 = vmor %vm1301_vm3, %vm1302_vm2  ;;  %vm1311_vm6 = vweird.f32 %v4219_v10 }
 0x230   : > { %v1294_v59 = vsel %vm1293_vm1, %v3030_v62, %v1290_v48  ;;  %v1297_v8 = vmul.f32 %v3032_v5, %v1296_v19  ;;  %v895_v16 = vpop.f32.mrf.mxu2  ;;  %v4234_v62 = vadd.f32 %v3930_v17, %v1451_v3 }
 0x231   : > { %v971_v1 = vsub.f32 %v895_v16, %v939_v12  ;;  %v1416_v34 = vmul.f32 %v1294_v59, %v1032_v2  ;;  %v4243_v23 = vadd.f32 %v1676_v46, %v3971_v39  ;;  %v1033_v39 = vsub.f32 %v3773_v30, %v4021_v24 }
 0x232   : > { %v1298_v47 = vmul.f32 0.5, %v1297_v8 }
 0x233   : > { %v1003_v61 = vmax.f32 %v971_v1, 0.0  ;;  %v1452_v49 = vmul.f32 %v3918_v6, %v1416_v34  ;;  %v940_v6 = vmul.f32 %v4083_v60, %v4083_v60  ;;  %v1845_v1 = vmul.f32 %v4243_v23, %v4243_v23 }
 0x234   : > { %v1299_v52 = vsub.f32 1.5, %v1298_v47  ;;  %v1601_v32 = vpop.f32.mrf.mxu3 }
 0x235   : > { %v3034_v40 = vpop.eup %3033  ;;  %v4230_v38 = vadd.f32 1e-05, %v1003_v61  ;;  %v1602_v13 = vadd.f32 %v4176_v9, %v1601_v32  ;;  %v4237_v22 = vadd.f32 %v3930_v17, %v1452_v49  ;;  %v5031_v49 = vld [vmem:[#allocation16_spill] sm:$0xff]  ;;  %v941_v32 = vmul.f32 %v4095_v42, %v4095_v42 }
 0x236   : > { %v1300_v14 = vmul.f32 %v3032_v5, %v1299_v52  ;;  %v1306_v18 = vmul.f32 %v3034_v40, %v4219_v10  ;;  %vm1312_vm5 = vweird.f32 %v3034_v40  ;;  %v1034_v52 = vsub.f32 %v5031_v49, %v4034_v50 }
 0x237   : > { %3035 = vrsqrt.f32 %v4230_v38  ;;  %v1677_v33 = vmax.f32 %v1602_v13, 0.0  ;;  %v1509_v48 = vpack.c.bf16 %v4237_v22, %v4234_v62  ;;  %vm1313_vm7 = vmor %vm1311_vm6, %vm1312_vm5  ;;  %vm1321_vm9 = vweird.f32 %v4230_v38 }
 0x238   : > { %v1307_v17 = vmul.f32 %v3034_v40, %v1306_v18  ;;  %v897_v19 = vpop.f32.mrf.mxu2  ;;  %v1304_v59 = vsel %vm4249_vm4, %v3032_v5, %v1300_v14 }
 0x239   : > { %v4254_v12 = vadd.f32 %v1677_v33, %v3974_v15  ;;  %v972_v57 = vsub.f32 %v897_v19, %v940_v6  ;;  %1643 = vmatmul.bf16.gmra.mxu3 %v1509_v48  ;;  %v1417_v5 = vmul.f32 %v1304_v59, %v1033_v39  ;;  %v4283_v48 = vld [vmem:[%s5001_s3] ss:$0 sm:$0xff] }
 0x23a   : > { %v1308_v8 = vmul.f32 0.5, %v1307_v17 }
 0x23b   : > { %v1004_v16 = vmax.f32 %v972_v57, 0.0  ;;  %v1739_v0 = vpack.c.bf16 %v4254_v12, %v4243_v23  ;;  %v1846_v15 = vmul.f32 %v4254_v12, %v4254_v12  ;;  %v1453_v50 = vmul.f32 %v4283_v48, %v1417_v5 }
 0x23c   : > { %v1309_v34 = vsub.f32 1.5, %v1308_v8  ;;  %v1604_v3 = vpop.f32.mrf.mxu3 }
 0x23d   : > { %v4266_v47 = vpop.eup %3035  ;;  %v4268_v30 = vadd.f32 1e-05, %v1004_v16  ;;  %1767 = vmatmul.bf16.gmra.mxu0 %v1739_v0  ;;  %v1876_v24 = vpack.c.bf16 %v1846_v15, %v1845_v1  ;;  %v1605_v13 = vadd.f32 %v4176_v9, %v1604_v3  ;;  %v4290_v0 = vld [vmem:[#allocation8] ss:$0 sm:$0xff] }
 0x23e   : > { %v1310_v46 = vmul.f32 %v3034_v40, %v1309_v34  ;;  %v1316_v61 = vmul.f32 %v4266_v47, %v4230_v38  ;;  %v4293_v1 = vadd.f32 %v4290_v0, %v1453_v50  ;;  %vm1322_vm8 = vweird.f32 %v4266_v47 }
 0x23f   : > { %3037 = vrsqrt.f32 %v4268_v30  ;;  %1904 = vmatmul.bf16.gmra.mxu1 %v1876_v24  ;;  %v1678_v19 = vmax.f32 %v1605_v13, 0.0  ;;  %v942_v24 = vmul.f32 %v4112_v41, %v4112_v41  ;;  %vm4310_vm10 = vmor %vm1321_vm9, %vm1322_vm8  ;;  %vm1331_vm12 = vweird.f32 %v4268_v30 }
 0x240   : > { %v1314_v14 = vsel %vm1313_vm7, %v3034_v40, %v1310_v46  ;;  %v1317_v18 = vmul.f32 %v4266_v47, %v1316_v61  ;;  %v900_v6 = vpop.f32.mrf.mxu2 }
 0x241   : > { %v973_v10 = vsub.f32 %v900_v6, %v941_v32  ;;  %v1418_v33 = vmul.f32 %v1314_v14, %v1034_v52  ;;  %v4304_v5 = vadd.f32 %v1678_v19, %v4004_v55  ;;  %v5034_v55 = vld [vmem:[#allocation17_spill] sm:$0xff] }
 0x242   : > { %v1318_v17 = vmul.f32 0.5, %v1317_v18  ;;  %v1035_v18 = vsub.f32 %v5034_v55, %v4058_v53 }
 0x243   : > { %v1005_v2 = vmax.f32 %v973_v10, 0.0  ;;  %v1454_v57 = vmul.f32 %v4283_v48, %v1418_v33  ;;  %v1847_v50 = vmul.f32 %v4304_v5, %v4304_v5 }
 0x244   : > { %v1319_v39 = vsub.f32 1.5, %v1318_v17  ;;  %v1606_v59 = vpop.f32.mrf.mxu3 }
 0x245   : > { %v3038_v40 = vpop.eup %3037  ;;  %v4287_v8 = vadd.f32 1e-05, %v1005_v2  ;;  %v1607_v16 = vadd.f32 %v4176_v9, %v1606_v59  ;;  %v4296_v15 = vadd.f32 %v4290_v0, %v1454_v57 }
 0x246   : > { %v1320_v34 = vmul.f32 %v4266_v47, %v1319_v39  ;;  %v1326_v3 = vmul.f32 %v3038_v40, %v4268_v30  ;;  %vm1332_vm11 = vweird.f32 %v3038_v40 }
 0x247   : > { %3039 = vrsqrt.f32 %v4287_v8  ;;  %v1679_v46 = vmax.f32 %v1607_v16, 0.0  ;;  %v1510_v61 = vpack.c.bf16 %v4296_v15, %v4293_v1  ;;  %v5035_v16 = vld [vmem:[#allocation18_spill] sm:$0xff]  ;;  %vm1333_vm13 = vmor %vm1331_vm12, %vm1332_vm11  ;;  %vm1341_vm15 = vweird.f32 %v4287_v8 }
 0x248   : > { %v1327_v49 = vmul.f32 %v3038_v40, %v1326_v3  ;;  %v902_v52 = vpop.f32.mrf.mxu2  ;;  %v1324_v6 = vsel %vm4310_vm10, %v4266_v47, %v1320_v34  ;;  %v1036_v34 = vsub.f32 %v5035_v16, %v4083_v60  ;;  %v943_v3 = vmul.f32 %v4126_v29, %v4126_v29 }
 0x249   : > { %v4315_v13 = vadd.f32 %v1679_v46, %v4007_v37  ;;  %v974_v14 = vsub.f32 %v902_v52, %v942_v24  ;;  %1648 = vmatmul.bf16.gmra.mxu3 %v1510_v61  ;;  %v1419_v47 = vmul.f32 %v1324_v6, %v1035_v18 }
 0x24a   : > { %v1328_v10 = vmul.f32 0.5, %v1327_v49 }
 0x24b   : > { %v1006_v38 = vmax.f32 %v974_v14, 0.0  ;;  %v1740_v33 = vpack.c.bf16 %v4315_v13, %v4304_v5  ;;  %v1848_v37 = vmul.f32 %v4315_v13, %v4315_v13  ;;  %v1455_v30 = vmul.f32 %v4283_v48, %v1419_v47 }
 0x24c   : > { %v1329_v17 = vsub.f32 1.5, %v1328_v10  ;;  %v1609_v19 = vpop.f32.mrf.mxu3 }
 0x24d   : > { %v3040_v2 = vpop.eup %3039  ;;  %v4328_v53 = vadd.f32 1e-05, %v1006_v38  ;;  %1772 = vmatmul.bf16.gmra.mxu0 %v1740_v33  ;;  %v1877_v57 = vpack.c.bf16 %v1848_v37, %v1847_v50  ;;  %v1610_v24 = vadd.f32 %v4176_v9, %v1609_v19 }
 0x24e   : > { %v1330_v39 = vmul.f32 %v3038_v40, %v1329_v17  ;;  %v1336_v59 = vmul.f32 %v3040_v2, %v4287_v8  ;;  %vm1342_vm14 = vweird.f32 %v3040_v2 }
 0x24f   : > { %3041 = vrsqrt.f32 %v4328_v53  ;;  %1909 = vmatmul.bf16.gmra.mxu1 %v1877_v57  ;;  %v1680_v55 = vmax.f32 %v1610_v24, 0.0  ;;  %v944_v57 = vmul.f32 %v4138_v56, %v4138_v56  ;;  %vm4359_vm0 = vmor %vm1341_vm15, %vm1342_vm14  ;;  %vm1351_vm2 = vweird.f32 %v4328_v53 }
 0x250   : > { %v1334_v46 = vsel %vm1333_vm13, %v3038_v40, %v1330_v39  ;;  %v1337_v61 = vmul.f32 %v3040_v2, %v1336_v59  ;;  %v905_v49 = vpop.f32.mrf.mxu2  ;;  %v4344_v40 = vadd.f32 %v4290_v0, %v1455_v30 }
 0x251   : > { %v975_v52 = vsub.f32 %v905_v49, %v943_v3  ;;  %v1420_v32 = vmul.f32 %v1334_v46, %v1036_v34  ;;  %v4353_v47 = vadd.f32 %v1680_v55, %v4039_v45  ;;  %v1037_v45 = vsub.f32 %v3821_v44, %v4095_v42 }
 0x252   : > { %v1338_v14 = vmul.f32 0.5, %v1337_v61 }
 0x253   : > { %v1007_v18 = vmax.f32 %v975_v52, 0.0  ;;  %v1456_v60 = vmul.f32 %v4283_v48, %v1420_v32  ;;  %v1849_v32 = vmul.f32 %v4353_v47, %v4353_v47 }
 0x254   : > { %v1339_v6 = vsub.f32 1.5, %v1338_v14  ;;  %v1611_v10 = vpop.f32.mrf.mxu3 }
 0x255   : > { %v3042_v38 = vpop.eup %3041  ;;  %v4340_v33 = vadd.f32 1e-05, %v1007_v18  ;;  %v1612_v50 = vadd.f32 %v4176_v9, %v1611_v10  ;;  %v4347_v37 = vadd.f32 %v4290_v0, %v1456_v60 }
 0x256   : > { %v1340_v17 = vmul.f32 %v3040_v2, %v1339_v6  ;;  %v1346_v19 = vmul.f32 %v3042_v38, %v4328_v53  ;;  %vm1352_vm1 = vweird.f32 %v3042_v38  ;;  %v5038_v6 = vld [vmem:[#allocation19_spill] sm:$0xff] }
 0x257   : > { %3043 = vrsqrt.f32 %v4340_v33  ;;  %v1681_v39 = vmax.f32 %v1612_v50, 0.0  ;;  %v1511_v59 = vpack.c.bf16 %v4347_v37, %v4344_v40  ;;  %v1038_v10 = vsub.f32 %v5038_v6, %v4112_v41  ;;  %vm1353_vm3 = vmor %vm1351_vm2, %vm1352_vm1 }
 0x258   : > { %v1347_v16 = vmul.f32 %v3042_v38, %v1346_v19  ;;  %v907_v34 = vpop.f32.mrf.mxu2  ;;  %v1344_v61 = vsel %vm4359_vm0, %v3040_v2, %v1340_v17  ;;  %v945_v50 = vmul.f32 %v4152_v31, %v4152_v31  ;;  %vm1361_vm5 = vweird.f32 %v4340_v33 }
 0x259   : > { %v4364_v24 = vadd.f32 %v1681_v39, %v4042_v11  ;;  %v976_v46 = vsub.f32 %v907_v34, %v944_v57  ;;  %1653 = vmatmul.bf16.gmra.mxu3 %v1511_v59  ;;  %v1421_v42 = vmul.f32 %v1344_v61, %v1037_v45 }
 0x25a   : > { %v1348_v49 = vmul.f32 0.5, %v1347_v16 }
 0x25b   : > { %v1008_v52 = vmax.f32 %v976_v46, 0.0  ;;  %v1741_v8 = vpack.c.bf16 %v4364_v24, %v4353_v47  ;;  %v1850_v11 = vmul.f32 %v4364_v24, %v4364_v24  ;;  %v1457_v53 = vmul.f32 %v4283_v48, %v1421_v42 }
 0x25c   : > { %v1349_v30 = vsub.f32 1.5, %v1348_v49  ;;  %v1614_v14 = vpop.f32.mrf.mxu3 }
 0x25d   : > { %v3044_v55 = vpop.eup %3043  ;;  %v4376_v18 = vadd.f32 1e-05, %v1008_v52  ;;  %1777 = vmatmul.bf16.gmra.mxu0 %v1741_v8  ;;  %v1878_v44 = vpack.c.bf16 %v1850_v11, %v1849_v32  ;;  %v1615_v17 = vadd.f32 %v4176_v9, %v1614_v14  ;;  %v946_v14 = vmul.f32 %v4162_v25, %v4162_v25 }
 0x25e   : > { %v1350_v2 = vmul.f32 %v3042_v38, %v1349_v30  ;;  %v1356_v60 = vmul.f32 %v3044_v55, %v4340_v33  ;;  %vm1362_vm4 = vweird.f32 %v3044_v55 }
 0x25f   : > { %3045 = vrsqrt.f32 %v4376_v18  ;;  %1914 = vmatmul.bf16.gmra.mxu1 %v1878_v44  ;;  %v1682_v3 = vmax.f32 %v1615_v17, 0.0  ;;  %vm4407_vm6 = vmor %vm1361_vm5, %vm1362_vm4  ;;  %vm1371_vm8 = vweird.f32 %v4376_v18 }
 0x260   : > { %v1354_v19 = vsel %vm1353_vm3, %v3042_v38, %v1350_v2  ;;  %v1357_v57 = vmul.f32 %v3044_v55, %v1356_v60  ;;  %v910_v39 = vpop.f32.mrf.mxu2  ;;  %v4392_v38 = vadd.f32 %v4290_v0, %v1457_v53 }
 0x261   : > { %v977_v59 = vsub.f32 %v910_v39, %v945_v50  ;;  %v1422_v16 = vmul.f32 %v1354_v19, %v1038_v10  ;;  %v4401_v44 = vadd.f32 %v1682_v3, %v4070_v51  ;;  %v5041_v51 = vld [vmem:[#allocation20_spill] sm:$0xff] }
 0x262   : > { %v1358_v34 = vmul.f32 0.5, %v1357_v57  ;;  %v1039_v19 = vsub.f32 %v5041_v51, %v4126_v29 }
 0x263   : > { %v1009_v46 = vmax.f32 %v977_v59, 0.0  ;;  %v1458_v41 = vmul.f32 %v4283_v48, %v1422_v16  ;;  %v1851_v16 = vmul.f32 %v4401_v44, %v4401_v44 }
 0x264   : > { %v1359_v45 = vsub.f32 1.5, %v1358_v34  ;;  %v1616_v61 = vpop.f32.mrf.mxu3 }
 0x265   : > { %v3046_v49 = vpop.eup %3045  ;;  %v4388_v52 = vadd.f32 1e-05, %v1009_v46  ;;  %v1617_v8 = vadd.f32 %v4176_v9, %v1616_v61  ;;  %v4395_v32 = vadd.f32 %v4290_v0, %v1458_v41  ;;  %v5042_v61 = vld [vmem:[#allocation21_spill] sm:$0xff] }
 0x266   : > { %v1360_v11 = vmul.f32 %v3044_v55, %v1359_v45  ;;  %v1366_v30 = vmul.f32 %v3046_v49, %v4376_v18  ;;  %vm1372_vm7 = vweird.f32 %v3046_v49 }
 0x267   : > { %3047 = vrsqrt.f32 %v4388_v52  ;;  %v1683_v42 = vmax.f32 %v1617_v8, 0.0  ;;  %v1512_v2 = vpack.c.bf16 %v4395_v32, %v4392_v38  ;;  %v1040_v8 = vsub.f32 %v5042_v61, %v4138_v56  ;;  %vm1373_vm9 = vmor %vm1371_vm8, %vm1372_vm7 }
 0x268   : > { %v1367_v60 = vmul.f32 %v3046_v49, %v1366_v30  ;;  %v912_v6 = vpop.f32.mrf.mxu2  ;;  %v1364_v57 = vsel %vm4407_vm6, %v3044_v55, %v1360_v11  ;;  %vm1381_vm11 = vweird.f32 %v4388_v52 }
 0x269   : > { %v4412_v50 = vadd.f32 %v1683_v42, %v4073_v7  ;;  %v978_v17 = vsub.f32 %v912_v6, %v946_v14  ;;  %1658 = vmatmul.bf16.gmra.mxu3 %v1512_v2  ;;  %v1423_v41 = vmul.f32 %v1364_v57, %v1039_v19 }
 0x26a   : > { %v1368_v39 = vmul.f32 0.5, %v1367_v60 }
 0x26b   : > { %v1010_v59 = vmax.f32 %v978_v17, 0.0  ;;  %v1742_v33 = vpack.c.bf16 %v4412_v50, %v4401_v44  ;;  %v1852_v7 = vmul.f32 %v4412_v50, %v4412_v50  ;;  %v1459_v2 = vmul.f32 %v4283_v48, %v1423_v41  ;;  %v5043_v41 = vld [vmem:[#allocation22_spill] sm:$0xff] }
 0x26c   : > { %v1369_v53 = vsub.f32 1.5, %v1368_v39  ;;  %v1619_v34 = vpop.f32.mrf.mxu3 }
 0x26d   : > { %v3048_v3 = vpop.eup %3047  ;;  %v1074_v46 = vadd.f32 1e-05, %v1010_v59  ;;  %1782 = vmatmul.bf16.gmra.mxu0 %v1742_v33  ;;  %v1879_v29 = vpack.c.bf16 %v1852_v7, %v1851_v16  ;;  %v1620_v11 = vadd.f32 %v4176_v9, %v1619_v34  ;;  %v4433_v56 = vadd.f32 %v4290_v0, %v1459_v2 }
 0x26e   : > { %v1370_v55 = vmul.f32 %v3046_v49, %v1369_v53  ;;  %v1376_v45 = vmul.f32 %v3048_v3, %v4388_v52  ;;  %vm1382_vm10 = vweird.f32 %v3048_v3 }
 0x26f   : > { %3049 = vrsqrt.f32 %v1074_v46  ;;  %1919 = vmatmul.bf16.gmra.mxu1 %v1879_v29  ;;  %v1684_v6 = vmax.f32 %v1620_v11, 0.0  ;;  %vm1383_vm12 = vmor %vm1381_vm11, %vm1382_vm10  ;;  %vm1391_vm14 = vweird.f32 %v1074_v46 }
 0x270   : > { %v1374_v30 = vsel %vm1373_vm9, %v3046_v49, %v1370_v55  ;;  %v1377_v14 = vmul.f32 %v3048_v3, %v1376_v45  ;;  %v1041_v55 = vsub.f32 %v5043_v41, %v4152_v31 }
 0x271   : > { %v1424_v42 = vmul.f32 %v1374_v30, %v1040_v8  ;;  %v4439_v59 = vadd.f32 %v1684_v6, %v4101_v43  ;;  %v5044_v30 = vld [vmem:[#allocation23_spill] sm:$0xff] }
 0x272   : > { %v1378_v60 = vmul.f32 0.5, %v1377_v14  ;;  %v1042_v31 = vsub.f32 %v5044_v30, %v4162_v25 }
 0x273   : > { %v1460_v10 = vmul.f32 %v4283_v48, %v1424_v42  ;;  %v1853_v45 = vmul.f32 %v4439_v59, %v4439_v59 }
 0x274   : > { %v1379_v18 = vsub.f32 1.5, %v1378_v60  ;;  %v1621_v17 = vpop.f32.mrf.mxu3 }
 0x275   : > { %v3050_v51 = vpop.eup %3049  ;;  %v1622_v19 = vadd.f32 %v4176_v9, %v1621_v17  ;;  %v4436_v57 = vadd.f32 %v4290_v0, %v1460_v10 }
 0x276   : > { %v1380_v49 = vmul.f32 %v3048_v3, %v1379_v18  ;;  %v1386_v39 = vmul.f32 %v3050_v51, %v1074_v46  ;;  %vm1392_vm13 = vweird.f32 %v3050_v51 }
 0x277   : > { %v1685_v33 = vmax.f32 %v1622_v19, 0.0  ;;  %v1513_v16 = vpack.c.bf16 %v4436_v57, %v4433_v56  ;;  %vm1393_vm15 = vmor %vm1391_vm14, %vm1392_vm13 }
 0x278   : > { %v1387_v7 = vmul.f32 %v3050_v51, %v1386_v39  ;;  %v1384_v34 = vsel %vm1383_vm12, %v3048_v3, %v1380_v49 }
 0x279   : > { %v4445_v53 = vadd.f32 %v1685_v33, %v4104_v58  ;;  %1663 = vmatmul.bf16.gmra.mxu3 %v1513_v16  ;;  %v1425_v11 = vmul.f32 %v1384_v34, %v1041_v55 }
 0x27a   : > { %v1388_v29 = vmul.f32 0.5, %v1387_v7 }
 0x27b   : > { %v1743_v43 = vpack.c.bf16 %v4445_v53, %v4439_v59  ;;  %v1854_v52 = vmul.f32 %v4445_v53, %v4445_v53  ;;  %v1461_v60 = vmul.f32 %v4283_v48, %v1425_v11 }
 0x27c   : > { %v1389_v61 = vsub.f32 1.5, %v1388_v29  ;;  %v1624_v8 = vpop.f32.mrf.mxu3 }
 0x27d   : > { %1787 = vmatmul.bf16.gmra.mxu0 %v1743_v43  ;;  %v1880_v58 = vpack.c.bf16 %v1854_v52, %v1853_v45  ;;  %v1625_v14 = vadd.f32 %v4176_v9, %v1624_v8  ;;  %v4462_v19 = vadd.f32 %v4290_v0, %v1461_v60 }
 0x27e   : > { %v1390_v3 = vmul.f32 %v3050_v51, %v1389_v61 }
 0x27f   : > { %1924 = vmatmul.bf16.gmra.mxu1 %v1880_v58  ;;  %v1686_v6 = vmax.f32 %v1625_v14, 0.0 }
 0x280   : > { %v1394_v42 = vsel %vm1393_vm15, %v3050_v51, %v1390_v3 }
 0x281   : > { %v1426_v2 = vmul.f32 %v1394_v42, %v1042_v31  ;;  %v4468_v25 = vadd.f32 %v1686_v6, %v4121_v27 }
 0x283   : > { %v1462_v10 = vmul.f32 %v4283_v48, %v1426_v2  ;;  %v1855_v33 = vmul.f32 %v4468_v25, %v4468_v25 }
 0x284   : > { %v1626_v18 = vpop.f32.mrf.mxu3 }
 0x285   : > { %v1627_v17 = vadd.f32 %v4176_v9, %v1626_v18  ;;  %v4465_v46 = vadd.f32 %v4290_v0, %v1462_v10 }
 0x287   : > { %v1687_v49 = vmax.f32 %v1627_v17, 0.0  ;;  %v1514_v51 = vpack.c.bf16 %v4465_v46, %v4462_v19 }
 0x289   : > { %v4473_v39 = vadd.f32 %v1687_v49, %v4124_v63  ;;  %1668 = vmatmul.bf16.gmra.mxu3 %v1514_v51 }
 0x28b   : > { %v1744_v48 = vpack.c.bf16 %v4473_v39, %v4468_v25  ;;  %v1856_v0 = vmul.f32 %v4473_v39, %v4473_v39 }
 0x28c   : > { %v1629_v16 = vpop.f32.mrf.mxu3 }
 0x28d   : > { %1792 = vmatmul.bf16.gmra.mxu0 %v1744_v48  ;;  %v1881_v27 = vpack.c.bf16 %v1856_v0, %v1855_v33  ;;  %v1630_v7 = vadd.f32 %v4176_v9, %v1629_v16 }
 0x28f   : > { %1929 = vmatmul.bf16.gmra.mxu1 %v1881_v27  ;;  %v1688_v34 = vmax.f32 %v1630_v7, 0.0 }
 0x291   : > { %v4484_v41 = vadd.f32 %v1688_v34, %v4143_v36 }
 0x293   : > { %v1857_v52 = vmul.f32 %v4484_v41, %v4484_v41 }
 0x294   : > { %v1631_v29 = vpop.f32.mrf.mxu3 }
 0x295   : > { %v1632_v63 = vadd.f32 %v4176_v9, %v1631_v29 }
 0x297   : > { %v1689_v55 = vmax.f32 %v1632_v63, 0.0 }
 0x299   : > { %v4487_v43 = vadd.f32 %v1689_v55, %v4146_v21 }
 0x29b   : > { %v1745_v45 = vpack.c.bf16 %v4487_v43, %v4484_v41  ;;  %v1858_v61 = vmul.f32 %v4487_v43, %v4487_v43 }
 0x29c   : > { %v1634_v8 = vpop.f32.mrf.mxu3 }
 0x29d   : > { %1797 = vmatmul.bf16.gmra.mxu0 %v1745_v45  ;;  %v1882_v58 = vpack.c.bf16 %v1858_v61, %v1857_v52  ;;  %v1635_v11 = vadd.f32 %v4176_v9, %v1634_v8 }
 0x29f   : > { %1934 = vmatmul.bf16.gmra.mxu1 %v1882_v58  ;;  %v1690_v36 = vmax.f32 %v1635_v11, 0.0 }
 0x2a1   : > { %v4498_v30 = vadd.f32 %v1690_v36, %v4165_v4 }
 0x2a3   : > { %v1859_v6 = vmul.f32 %v4498_v30, %v4498_v30 }
 0x2a4   : > { %v1636_v3 = vpop.f32.mrf.mxu3 }
 0x2a5   : > { %v1637_v21 = vadd.f32 %v4176_v9, %v1636_v3 }
 0x2a7   : > { %v1691_v31 = vmax.f32 %v1637_v21, 0.0 }
 0x2a9   : > { %v4501_v14 = vadd.f32 %v1691_v31, %v4168_v54 }
 0x2aa   : > { %v4503_v42 = vpop.f32.mrf.mxu0 }
 0x2ab   : > { %v1980_v2 = vmul.f32 %v4503_v42, %v4503_v42  ;;  %v1746_v60 = vpack.c.bf16 %v4501_v14, %v4498_v30  ;;  %v1860_v10 = vmul.f32 %v4501_v14, %v4501_v14 }
 0x2ac   : > { %v1639_v4 = vpop.f32.mrf.mxu3  ;;  %v1900_v18 = vpop.f32.mrf.mxu1 }
 0x2ad   : > { %v2012_v17 = vsub.f32 %v1900_v18, %v1980_v2  ;;  %1802 = vmatmul.bf16.gmra.mxu0 %v1746_v60  ;;  %v1883_v54 = vpack.c.bf16 %v1860_v10, %v1859_v6  ;;  %v1640_v51 = vadd.f32 %v4176_v9, %v1639_v4 }
 0x2af   : > { %v2044_v49 = vmax.f32 %v2012_v17, 0.0  ;;  %1939 = vmatmul.bf16.gmra.mxu1 %v1883_v54  ;;  %v1692_v16 = vmax.f32 %v1640_v51, 0.0 }
 0x2b1   : > { %v2108_v48 = vadd.f32 1e-05, %v2044_v49  ;;  %v4520_v45 = vadd.f32 %v1692_v16, %v4189_v35 }
 0x2b2   : > { %v4514_v33 = vpop.f32.mrf.mxu0 }
 0x2b3   : > { %3051 = vrsqrt.f32 %v2108_v48  ;;  %v1981_v0 = vmul.f32 %v4514_v33, %v4514_v33  ;;  %v1861_v35 = vmul.f32 %v4520_v45, %v4520_v45  ;;  %vm2146_vm1 = vweird.f32 %v2108_v48 }
 0x2b4   : > { %v1641_v27 = vpop.f32.mrf.mxu3  ;;  %v1902_v7 = vpop.f32.mrf.mxu1 }
 0x2b5   : > { %v1642_v34 = vadd.f32 %v4176_v9, %v1641_v27  ;;  %v2013_v29 = vsub.f32 %v1902_v7, %v1981_v0  ;;  %v2076_v27 = vsub.f32 %v4197_v20, %v4503_v42  ;;  %v4545_v7 = vld [vmem:[%s5001_s3 + $0x1] ss:$0 sm:$0xff] }
 0x2b7   : > { %v1693_v63 = vmax.f32 %v1642_v34, 0.0  ;;  %v2045_v55 = vmax.f32 %v2013_v29, 0.0 }
 0x2b9   : > { %v3052_v52 = vpop.eup %3051  ;;  %v4523_v61 = vadd.f32 %v1693_v63, %v4192_v28  ;;  %v2109_v8 = vadd.f32 1e-05, %v2045_v55 }
 0x2ba   : > { %v2141_v58 = vmul.f32 %v3052_v52, %v2108_v48  ;;  %v4525_v11 = vpop.f32.mrf.mxu0  ;;  %vm2147_vm0 = vweird.f32 %v3052_v52 }
 0x2bb   : > { %3053 = vrsqrt.f32 %v2109_v8  ;;  %v1982_v36 = vmul.f32 %v4525_v11, %v4525_v11  ;;  %v1747_v2 = vpack.c.bf16 %v4523_v61, %v4520_v45  ;;  %v1862_v28 = vmul.f32 %v4523_v61, %v4523_v61  ;;  %vm2148_vm2 = vmor %vm2146_vm1, %vm2147_vm0 }
 0x2bc   : > { %v2142_v3 = vmul.f32 %v3052_v52, %v2141_v58  ;;  %v1644_v21 = vpop.f32.mrf.mxu3  ;;  %v1905_v31 = vpop.f32.mrf.mxu1  ;;  %vm2156_vm4 = vweird.f32 %v2109_v8 }
 0x2bd   : > { %v2014_v60 = vsub.f32 %v1905_v31, %v1982_v36  ;;  %1807 = vmatmul.bf16.gmra.mxu0 %v1747_v2  ;;  %v1884_v10 = vpack.c.bf16 %v1862_v28, %v1861_v35  ;;  %v1645_v4 = vadd.f32 %v4176_v9, %v1644_v21 }
 0x2be   : > { %v2143_v6 = vmul.f32 0.5, %v2142_v3  ;;  %v4550_v3 = vld [vmem:[#allocation8 + $0x1] ss:$0 sm:$0xff] }
 0x2bf   : > { %v2046_v18 = vmax.f32 %v2014_v60, 0.0  ;;  %1944 = vmatmul.bf16.gmra.mxu1 %v1884_v10  ;;  %v1694_v34 = vmax.f32 %v1645_v4, 0.0 }
 0x2c0   : > { %v2144_v17 = vsub.f32 1.5, %v2143_v6 }
 0x2c1   : > { %v3054_v54 = vpop.eup %3053  ;;  %v4536_v49 = vadd.f32 1e-05, %v2046_v18  ;;  %v4555_v2 = vadd.f32 %v1694_v34, %v4234_v62  ;;  %v2077_v62 = vsub.f32 %v4207_v26, %v4514_v33 }
 0x2c2   : > { %v2145_v51 = vmul.f32 %v3052_v52, %v2144_v17  ;;  %v2151_v0 = vmul.f32 %v3054_v54, %v2109_v8  ;;  %v4538_v16 = vpop.f32.mrf.mxu0  ;;  %vm2157_vm3 = vweird.f32 %v3054_v54 }
 0x2c3   : > { %3055 = vrsqrt.f32 %v4536_v49  ;;  %v1983_v29 = vmul.f32 %v4538_v16, %v4538_v16  ;;  %vm2158_vm5 = vmor %vm2156_vm4, %vm2157_vm3  ;;  %v1863_v8 = vmul.f32 %v4555_v2, %v4555_v2  ;;  %vm2166_vm7 = vweird.f32 %v4536_v49 }
 0x2c4   : > { %v2149_v63 = vsel %vm2148_vm2, %v3052_v52, %v2145_v51  ;;  %v2152_v48 = vmul.f32 %v3054_v54, %v2151_v0  ;;  %v1646_v55 = vpop.f32.mrf.mxu3  ;;  %v1907_v58 = vpop.f32.mrf.mxu1 }
 0x2c5   : > { %v2460_v36 = vmul.f32 %v2149_v63, %v2076_v27  ;;  %v1647_v20 = vadd.f32 %v4176_v9, %v1646_v55  ;;  %v2015_v42 = vsub.f32 %v1907_v58, %v1983_v29 }
 0x2c6   : > { %v2153_v21 = vmul.f32 0.5, %v2152_v48 }
 0x2c7   : > { %v2497_v31 = vmul.f32 %v4545_v7, %v2460_v36  ;;  %v1695_v35 = vmax.f32 %v1647_v20, 0.0  ;;  %v2047_v28 = vmax.f32 %v2015_v42, 0.0 }
 0x2c8   : > { %v2154_v60 = vsub.f32 1.5, %v2153_v21 }
 0x2c9   : > { %v3056_v52 = vpop.eup %3055  ;;  %v2534_v6 = vadd.f32 %v4550_v3, %v2497_v31  ;;  %v4559_v10 = vadd.f32 %v1695_v35, %v4237_v22  ;;  %v4561_v4 = vadd.f32 1e-05, %v2047_v28 }
 0x2ca   : > { %v2155_v18 = vmul.f32 %v3054_v54, %v2154_v60  ;;  %v2161_v17 = vmul.f32 %v3056_v52, %v4536_v49  ;;  %v4564_v51 = vpop.f32.mrf.mxu0  ;;  %vm2167_vm6 = vweird.f32 %v3056_v52 }
 0x2cb   : > { %2566 = vst [vmem:[%s4568_s16] sm:$0xff] %v2534_v6  ;;  %3057 = vrsqrt.f32 %v4561_v4  ;;  %v1984_v22 = vmul.f32 %v4564_v51, %v4564_v51  ;;  %v1748_v63 = vpack.c.bf16 %v4559_v10, %v4555_v2  ;;  %v1864_v48 = vmul.f32 %v4559_v10, %v4559_v10  ;;  %vm2168_vm8 = vmor %vm2166_vm7, %vm2167_vm6 }
 0x2cc   : > { %v2159_v0 = vsel %vm2158_vm5, %v3054_v54, %v2155_v18  ;;  %v2162_v27 = vmul.f32 %v3056_v52, %v2161_v17  ;;  %v1649_v34 = vpop.f32.mrf.mxu3  ;;  %v1910_v29 = vpop.f32.mrf.mxu1  ;;  %v2078_v18 = vsub.f32 %v4243_v23, %v4525_v11  ;;  %vm2176_vm10 = vweird.f32 %v4561_v4 }
 0x2cd   : > { %v2461_v26 = vmul.f32 %v2159_v0, %v2077_v62  ;;  %v2016_v33 = vsub.f32 %v1910_v29, %v1984_v22  ;;  %1812 = vmatmul.bf16.gmra.mxu0 %v1748_v63  ;;  %v1885_v58 = vpack.c.bf16 %v1864_v48, %v1863_v8  ;;  %v1650_v20 = vadd.f32 %v4176_v9, %v1649_v34 }
 0x2ce   : > { %v2163_v55 = vmul.f32 0.5, %v2162_v27 }
 0x2cf   : > { %v2498_v36 = vmul.f32 %v4545_v7, %v2461_v26  ;;  %v2048_v54 = vmax.f32 %v2016_v33, 0.0  ;;  %1949 = vmatmul.bf16.gmra.mxu1 %v1885_v58  ;;  %v1696_v17 = vmax.f32 %v1650_v20, 0.0 }
 0x2d0   : > { %v2164_v42 = vsub.f32 1.5, %v2163_v55 }
 0x2d1   : > { %v3058_v21 = vpop.eup %3057  ;;  %v2535_v31 = vadd.f32 %v4550_v3, %v2498_v36  ;;  %v4585_v35 = vadd.f32 1e-05, %v2048_v54  ;;  %v4600_v23 = vadd.f32 %v1696_v17, %v4293_v1  ;;  %v2079_v1 = vsub.f32 %v4254_v12, %v4538_v16 }
 0x2d2   : > { %v2165_v28 = vmul.f32 %v3056_v52, %v2164_v42  ;;  %v2171_v60 = vmul.f32 %v3058_v21, %v4561_v4  ;;  %v4589_v6 = vpop.f32.mrf.mxu0  ;;  %vm2177_vm9 = vweird.f32 %v3058_v21 }
 0x2d3   : > { %2567 = vst [vmem:[%s4568_s16 + $0x8] sm:$0xff] %v2535_v31  ;;  %3059 = vrsqrt.f32 %v4585_v35  ;;  %v1985_v62 = vmul.f32 %v4589_v6, %v4589_v6  ;;  %vm2178_vm11 = vmor %vm2176_vm10, %vm2177_vm9  ;;  %v1865_v42 = vmul.f32 %v4600_v23, %v4600_v23  ;;  %vm2186_vm13 = vweird.f32 %v4585_v35 }
 0x2d4   : > { %v2169_v22 = vsel %vm2168_vm8, %v3056_v52, %v2165_v28  ;;  %v2172_v8 = vmul.f32 %v3058_v21, %v2171_v60  ;;  %v1651_v0 = vpop.f32.mrf.mxu3  ;;  %v1912_v27 = vpop.f32.mrf.mxu1 }
 0x2d5   : > { %v2462_v49 = vmul.f32 %v2169_v22, %v2078_v18  ;;  %v1652_v34 = vadd.f32 %v4176_v9, %v1651_v0  ;;  %v2017_v29 = vsub.f32 %v1912_v27, %v1985_v62  ;;  %v4625_v0 = vld [vmem:[#allocation7 + $0x1] ss:$0 sm:$0xff] }
 0x2d6   : > { %v2173_v63 = vmul.f32 0.5, %v2172_v8 }
 0x2d7   : > { %v2499_v48 = vmul.f32 %v4545_v7, %v2462_v49  ;;  %v1697_v11 = vmax.f32 %v1652_v34, 0.0  ;;  %v2049_v26 = vmax.f32 %v2017_v29, 0.0 }
 0x2d8   : > { %v2174_v33 = vsub.f32 1.5, %v2173_v63 }
 0x2d9   : > { %v3060_v55 = vpop.eup %3059  ;;  %v2536_v52 = vadd.f32 %v4550_v3, %v2499_v48  ;;  %v4604_v58 = vadd.f32 %v1697_v11, %v4296_v15  ;;  %v4606_v36 = vadd.f32 1e-05, %v2049_v26 }
 0x2da   : > { %v2175_v9 = vmul.f32 %v3058_v21, %v2174_v33  ;;  %v2181_v20 = vmul.f32 %v3060_v55, %v4585_v35  ;;  %v4610_v54 = vpop.f32.mrf.mxu0  ;;  %vm2187_vm12 = vweird.f32 %v3060_v55  ;;  %v2080_v33 = vsub.f32 %v4304_v5, %v4564_v51 }
 0x2db   : > { %2568 = vst [vmem:[%s4568_s16 + $0x10] sm:$0xff] %v2536_v52  ;;  %3061 = vrsqrt.f32 %v4606_v36  ;;  %v1986_v15 = vmul.f32 %v4610_v54, %v4610_v54  ;;  %v1749_v18 = vpack.c.bf16 %v4604_v58, %v4600_v23  ;;  %v1866_v17 = vmul.f32 %v4604_v58, %v4604_v58  ;;  %vm2188_vm14 = vmor %vm2186_vm13, %vm2187_vm12 }
 0x2dc   : > { %v2179_v31 = vsel %vm2178_vm11, %v3058_v21, %v2175_v9  ;;  %v2182_v28 = vmul.f32 %v3060_v55, %v2181_v20  ;;  %v1654_v4 = vpop.f32.mrf.mxu3  ;;  %v1915_v60 = vpop.f32.mrf.mxu1  ;;  %vm2196_vm0 = vweird.f32 %v4606_v36 }
 0x2dd   : > { %v2463_v12 = vmul.f32 %v2179_v31, %v2079_v1  ;;  %v2018_v16 = vsub.f32 %v1915_v60, %v1986_v15  ;;  %1817 = vmatmul.bf16.gmra.mxu0 %v1749_v18  ;;  %v1886_v22 = vpack.c.bf16 %v1866_v17, %v1865_v42  ;;  %v1655_v21 = vadd.f32 %v4625_v0, %v1654_v4 }
 0x2de   : > { %v2183_v62 = vmul.f32 0.5, %v2182_v28 }
 0x2df   : > { %v2500_v8 = vmul.f32 %v4545_v7, %v2463_v12  ;;  %v2050_v27 = vmax.f32 %v2018_v16, 0.0  ;;  %1954 = vmatmul.bf16.gmra.mxu1 %v1886_v22  ;;  %v1698_v52 = vmax.f32 %v1655_v21, 0.0 }
 0x2e0   : > { %v2184_v49 = vsub.f32 1.5, %v2183_v62 }
 0x2e1   : > { %v3062_v34 = vpop.eup %3061  ;;  %v2537_v29 = vadd.f32 %v4550_v3, %v2500_v8  ;;  %v4629_v63 = vadd.f32 1e-05, %v2050_v27  ;;  %v4644_v5 = vadd.f32 %v1698_v52, %v4344_v40  ;;  %v2081_v40 = vsub.f32 %v4315_v13, %v4589_v6 }
 0x2e2   : > { %v2185_v48 = vmul.f32 %v3060_v55, %v2184_v49  ;;  %v2191_v11 = vmul.f32 %v3062_v34, %v4606_v36  ;;  %v4633_v26 = vpop.f32.mrf.mxu0  ;;  %vm2197_vm15 = vweird.f32 %v3062_v34 }
 0x2e3   : > { %2569 = vst [vmem:[%s4568_s16 + $0x18] sm:$0xff] %v2537_v29  ;;  %3063 = vrsqrt.f32 %v4629_v63  ;;  %v1987_v9 = vmul.f32 %v4633_v26, %v4633_v26  ;;  %vm2198_vm1 = vmor %vm2196_vm0, %vm2197_vm15  ;;  %v1867_v27 = vmul.f32 %v4644_v5, %v4644_v5  ;;  %vm2206_vm3 = vweird.f32 %v4629_v63 }
 0x2e4   : > { %v2189_v20 = vsel %vm2188_vm14, %v3060_v55, %v2185_v48  ;;  %v2192_v1 = vmul.f32 %v3062_v34, %v2191_v11  ;;  %v1656_v15 = vpop.f32.mrf.mxu3  ;;  %v1917_v42 = vpop.f32.mrf.mxu1 }
 0x2e5   : > { %v2464_v35 = vmul.f32 %v2189_v20, %v2080_v33  ;;  %v1657_v31 = vadd.f32 %v4625_v0, %v1656_v15  ;;  %v2019_v28 = vsub.f32 %v1917_v42, %v1987_v9 }
 0x2e6   : > { %v2193_v4 = vmul.f32 0.5, %v2192_v1 }
 0x2e7   : > { %v2501_v60 = vmul.f32 %v4545_v7, %v2464_v35  ;;  %v1699_v51 = vmax.f32 %v1657_v31, 0.0  ;;  %v2051_v18 = vmax.f32 %v2019_v28, 0.0 }
 0x2e8   : > { %v2194_v17 = vsub.f32 1.5, %v2193_v4 }
 0x2e9   : > { %v3064_v12 = vpop.eup %3063  ;;  %v2538_v55 = vadd.f32 %v4550_v3, %v2501_v60  ;;  %v4648_v16 = vadd.f32 %v1699_v51, %v4347_v37  ;;  %v4650_v62 = vadd.f32 1e-05, %v2051_v18  ;;  %v2082_v51 = vsub.f32 %v4353_v47, %v4610_v54 }
 0x2ea   : > { %v2195_v22 = vmul.f32 %v3062_v34, %v2194_v17  ;;  %v2201_v8 = vmul.f32 %v3064_v12, %v4629_v63  ;;  %v4654_v21 = vpop.f32.mrf.mxu0  ;;  %vm2207_vm2 = vweird.f32 %v3064_v12 }
 0x2eb   : > { %2570 = vst [vmem:[%s4568_s16 + $0x20] sm:$0xff] %v2538_v55  ;;  %3065 = vrsqrt.f32 %v4650_v62  ;;  %v1988_v37 = vmul.f32 %v4654_v21, %v4654_v21  ;;  %v1750_v11 = vpack.c.bf16 %v4648_v16, %v4644_v5  ;;  %v1868_v33 = vmul.f32 %v4648_v16, %v4648_v16  ;;  %vm2208_vm4 = vmor %vm2206_vm3, %vm2207_vm2 }
 0x2ec   : > { %v2199_v49 = vsel %vm2198_vm1, %v3062_v34, %v2195_v22  ;;  %v2202_v29 = vmul.f32 %v3064_v12, %v2201_v8  ;;  %v1659_v36 = vpop.f32.mrf.mxu3  ;;  %v1920_v48 = vpop.f32.mrf.mxu1  ;;  %vm2216_vm6 = vweird.f32 %v4650_v62 }
 0x2ed   : > { %v2465_v13 = vmul.f32 %v2199_v49, %v2081_v40  ;;  %v2020_v6 = vsub.f32 %v1920_v48, %v1988_v37  ;;  %1822 = vmatmul.bf16.gmra.mxu0 %v1750_v11  ;;  %v1887_v9 = vpack.c.bf16 %v1868_v33, %v1867_v27  ;;  %v1660_v1 = vadd.f32 %v4625_v0, %v1659_v36 }
 0x2ee   : > { %v2203_v52 = vmul.f32 0.5, %v2202_v29 }
 0x2ef   : > { %v2502_v20 = vmul.f32 %v4545_v7, %v2465_v13  ;;  %v2052_v34 = vmax.f32 %v2020_v6, 0.0  ;;  %1959 = vmatmul.bf16.gmra.mxu1 %v1887_v9  ;;  %v1700_v18 = vmax.f32 %v1660_v1, 0.0 }
 0x2f0   : > { %v2204_v15 = vsub.f32 1.5, %v2203_v52 }
 0x2f1   : > { %v3066_v42 = vpop.eup %3065  ;;  %v2539_v35 = vadd.f32 %v4550_v3, %v2502_v20  ;;  %v4671_v31 = vadd.f32 1e-05, %v2052_v34  ;;  %v4686_v47 = vadd.f32 %v1700_v18, %v4392_v38  ;;  %v2083_v38 = vsub.f32 %v4364_v24, %v4633_v26 }
 0x2f2   : > { %v2205_v28 = vmul.f32 %v3064_v12, %v2204_v15  ;;  %v2211_v4 = vmul.f32 %v3066_v42, %v4650_v62  ;;  %v4675_v60 = vpop.f32.mrf.mxu0  ;;  %vm2217_vm5 = vweird.f32 %v3066_v42 }
 0x2f3   : > { %2571 = vst [vmem:[%s4568_s16 + $0x28] sm:$0xff] %v2539_v35  ;;  %3067 = vrsqrt.f32 %v4671_v31  ;;  %v1989_v17 = vmul.f32 %v4675_v60, %v4675_v60  ;;  %vm2218_vm7 = vmor %vm2216_vm6, %vm2217_vm5  ;;  %v1869_v20 = vmul.f32 %v4686_v47, %v4686_v47  ;;  %vm2226_vm9 = vweird.f32 %v4671_v31 }
 0x2f4   : > { %v2209_v55 = vsel %vm2208_vm4, %v3064_v12, %v2205_v28  ;;  %v2212_v22 = vmul.f32 %v3066_v42, %v2211_v4  ;;  %v1661_v8 = vpop.f32.mrf.mxu3  ;;  %v1922_v40 = vpop.f32.mrf.mxu1 }
 0x2f5   : > { %v2466_v63 = vmul.f32 %v2209_v55, %v2082_v51  ;;  %v1662_v37 = vadd.f32 %v4625_v0, %v1661_v8  ;;  %v2021_v27 = vsub.f32 %v1922_v40, %v1989_v17 }
 0x2f6   : > { %v2213_v49 = vmul.f32 0.5, %v2212_v22 }
 0x2f7   : > { %v2503_v29 = vmul.f32 %v4545_v7, %v2466_v63  ;;  %v1701_v54 = vmax.f32 %v1662_v37, 0.0  ;;  %v2053_v36 = vmax.f32 %v2021_v27, 0.0 }
 0x2f8   : > { %v2214_v48 = vsub.f32 1.5, %v2213_v49  ;;  %v2084_v49 = vsub.f32 %v4401_v44, %v4654_v21 }
 0x2f9   : > { %v3068_v11 = vpop.eup %3067  ;;  %v2540_v12 = vadd.f32 %v4550_v3, %v2503_v29  ;;  %v4690_v33 = vadd.f32 %v1701_v54, %v4395_v32  ;;  %v4692_v13 = vadd.f32 1e-05, %v2053_v36 }
 0x2fa   : > { %v2215_v6 = vmul.f32 %v3066_v42, %v2214_v48  ;;  %v2221_v52 = vmul.f32 %v3068_v11, %v4671_v31  ;;  %v4696_v9 = vpop.f32.mrf.mxu0  ;;  %vm2227_vm8 = vweird.f32 %v3068_v11 }
 0x2fb   : > { %2572 = vst [vmem:[%s4568_s16 + $0x30] sm:$0xff] %v2540_v12  ;;  %3069 = vrsqrt.f32 %v4692_v13  ;;  %v1990_v32 = vmul.f32 %v4696_v9, %v4696_v9  ;;  %v1751_v35 = vpack.c.bf16 %v4690_v33, %v4686_v47  ;;  %v1870_v28 = vmul.f32 %v4690_v33, %v4690_v33  ;;  %vm2228_vm10 = vmor %vm2226_vm9, %vm2227_vm8 }
 0x2fc   : > { %v2219_v1 = vsel %vm2218_vm7, %v3066_v42, %v2215_v6  ;;  %v2222_v34 = vmul.f32 %v3068_v11, %v2221_v52  ;;  %v1664_v62 = vpop.f32.mrf.mxu3  ;;  %v1925_v15 = vpop.f32.mrf.mxu1  ;;  %vm2236_vm12 = vweird.f32 %v4692_v13 }
 0x2fd   : > { %v2467_v24 = vmul.f32 %v2219_v1, %v2083_v38  ;;  %v2022_v26 = vsub.f32 %v1925_v15, %v1990_v32  ;;  %1827 = vmatmul.bf16.gmra.mxu0 %v1751_v35  ;;  %v1888_v51 = vpack.c.bf16 %v1870_v28, %v1869_v20  ;;  %v1665_v17 = vadd.f32 %v4625_v0, %v1664_v62 }
 0x2fe   : > { %v2223_v4 = vmul.f32 0.5, %v2222_v34 }
 0x2ff   : > { %v2504_v18 = vmul.f32 %v4545_v7, %v2467_v24  ;;  %v2054_v42 = vmax.f32 %v2022_v26, 0.0  ;;  %1964 = vmatmul.bf16.gmra.mxu1 %v1888_v51  ;;  %v1702_v29 = vmax.f32 %v1665_v17, 0.0 }
 0x300   : > { %v2224_v55 = vsub.f32 1.5, %v2223_v4 }
 0x301   : > { %v3070_v22 = vpop.eup %3069  ;;  %v2541_v8 = vadd.f32 %v4550_v3, %v2504_v18  ;;  %v4713_v40 = vadd.f32 1e-05, %v2054_v42  ;;  %v4728_v44 = vadd.f32 %v1702_v29, %v4433_v56  ;;  %v2085_v56 = vsub.f32 %v4412_v50, %v4675_v60 }
 0x302   : > { %v2225_v63 = vmul.f32 %v3068_v11, %v2224_v55  ;;  %v2231_v37 = vmul.f32 %v3070_v22, %v4692_v13  ;;  %v4717_v27 = vpop.f32.mrf.mxu0  ;;  %vm2237_vm11 = vweird.f32 %v3070_v22 }
 0x303   : > { %2573 = vst [vmem:[%s4568_s16 + $0x38] sm:$0xff] %v2541_v8  ;;  %3071 = vrsqrt.f32 %v4713_v40  ;;  %v1991_v54 = vmul.f32 %v4717_v27, %v4717_v27  ;;  %vm2238_vm13 = vmor %vm2236_vm12, %vm2237_vm11  ;;  %v1871_v4 = vmul.f32 %v4728_v44, %v4728_v44  ;;  %vm2246_vm15 = vweird.f32 %v4713_v40 }
 0x304   : > { %v2229_v36 = vsel %vm2228_vm10, %v3068_v11, %v2225_v63  ;;  %v2232_v48 = vmul.f32 %v3070_v22, %v2231_v37  ;;  %v1666_v12 = vpop.f32.mrf.mxu3  ;;  %v1927_v6 = vpop.f32.mrf.mxu1 }
 0x305   : > { %v2468_v31 = vmul.f32 %v2229_v36, %v2084_v49  ;;  %v1667_v52 = vadd.f32 %v4625_v0, %v1666_v12  ;;  %v2023_v38 = vsub.f32 %v1927_v6, %v1991_v54 }
 0x306   : > { %v2233_v32 = vmul.f32 0.5, %v2232_v48 }
 0x307   : > { %v2505_v20 = vmul.f32 %v4545_v7, %v2468_v31  ;;  %v1703_v21 = vmax.f32 %v1667_v52, 0.0  ;;  %v2055_v1 = vmax.f32 %v2023_v38, 0.0  ;;  %v2086_v52 = vsub.f32 %v4439_v59, %v4696_v9 }
 0x308   : > { %v2234_v34 = vsub.f32 1.5, %v2233_v32 }
 0x309   : > { %v3072_v62 = vpop.eup %3071  ;;  %v2542_v11 = vadd.f32 %v4550_v3, %v2505_v20  ;;  %v4732_v15 = vadd.f32 %v1703_v21, %v4436_v57  ;;  %v4734_v35 = vadd.f32 1e-05, %v2055_v1 }
 0x30a   : > { %v2235_v28 = vmul.f32 %v3070_v22, %v2234_v34  ;;  %v2241_v24 = vmul.f32 %v3072_v62, %v4713_v40  ;;  %v4738_v26 = vpop.f32.mrf.mxu0  ;;  %vm2247_vm14 = vweird.f32 %v3072_v62 }
 0x30b   : > { %2574 = vst [vmem:[%s4568_s16 + $0x40] sm:$0xff] %v2542_v11  ;;  %3073 = vrsqrt.f32 %v4734_v35  ;;  %v1992_v57 = vmul.f32 %v4738_v26, %v4738_v26  ;;  %v1752_v42 = vpack.c.bf16 %v4732_v15, %v4728_v44  ;;  %v1872_v55 = vmul.f32 %v4732_v15, %v4732_v15  ;;  %vm2248_vm0 = vmor %vm2246_vm15, %vm2247_vm14 }
 0x30c   : > { %v2239_v51 = vsel %vm2238_vm13, %v3070_v22, %v2235_v28  ;;  %v2242_v18 = vmul.f32 %v3072_v62, %v2241_v24  ;;  %v1669_v13 = vpop.f32.mrf.mxu3  ;;  %v1930_v17 = vpop.f32.mrf.mxu1  ;;  %vm2256_vm2 = vweird.f32 %v4734_v35 }
 0x30d   : > { %v2469_v50 = vmul.f32 %v2239_v51, %v2085_v56  ;;  %v2024_v60 = vsub.f32 %v1930_v17, %v1992_v57  ;;  %1832 = vmatmul.bf16.gmra.mxu0 %v1752_v42  ;;  %v1889_v63 = vpack.c.bf16 %v1872_v55, %v1871_v4  ;;  %v1670_v49 = vadd.f32 %v4625_v0, %v1669_v13 }
 0x30e   : > { %v2243_v8 = vmul.f32 0.5, %v2242_v18 }
 0x30f   : > { %v2506_v37 = vmul.f32 %v4545_v7, %v2469_v50  ;;  %v2056_v22 = vmax.f32 %v2024_v60, 0.0  ;;  %1969 = vmatmul.bf16.gmra.mxu1 %v1889_v63  ;;  %v1704_v38 = vmax.f32 %v1670_v49, 0.0 }
 0x310   : > { %v2244_v29 = vsub.f32 1.5, %v2243_v8 }
 0x311   : > { %v3074_v54 = vpop.eup %3073  ;;  %v2543_v36 = vadd.f32 %v4550_v3, %v2506_v37  ;;  %v4755_v48 = vadd.f32 1e-05, %v2056_v22  ;;  %v4770_v59 = vadd.f32 %v1704_v38, %v4462_v19  ;;  %v2087_v19 = vsub.f32 %v4445_v53, %v4717_v27 }
 0x312   : > { %v2245_v12 = vmul.f32 %v3072_v62, %v2244_v29  ;;  %v2251_v6 = vmul.f32 %v3074_v54, %v4734_v35  ;;  %v4759_v31 = vpop.f32.mrf.mxu0  ;;  %vm2257_vm1 = vweird.f32 %v3074_v54 }
 0x313   : > { %2575 = vst [vmem:[%s4568_s16 + $0x48] sm:$0xff] %v2543_v36  ;;  %3075 = vrsqrt.f32 %v4755_v48  ;;  %v1993_v32 = vmul.f32 %v4759_v31, %v4759_v31  ;;  %vm2258_vm3 = vmor %vm2256_vm2, %vm2257_vm1  ;;  %vm2266_vm5 = vweird.f32 %v4755_v48 }
 0x314   : > { %v2249_v20 = vsel %vm2248_vm0, %v3072_v62, %v2245_v12  ;;  %v2252_v21 = vmul.f32 %v3074_v54, %v2251_v6  ;;  %v1671_v1 = vpop.f32.mrf.mxu3  ;;  %v1932_v34 = vpop.f32.mrf.mxu1 }
 0x315   : > { %v2470_v40 = vmul.f32 %v2249_v20, %v2086_v52  ;;  %v1672_v11 = vadd.f32 %v4625_v0, %v1671_v1  ;;  %v2025_v28 = vsub.f32 %v1932_v34, %v1993_v32  ;;  %v2088_v20 = vsub.f32 %v4468_v25, %v4738_v26 }
 0x316   : > { %v2253_v24 = vmul.f32 0.5, %v2252_v21 }
 0x317   : > { %v2507_v56 = vmul.f32 %v4545_v7, %v2470_v40  ;;  %v1705_v9 = vmax.f32 %v1672_v11, 0.0  ;;  %v2057_v57 = vmax.f32 %v2025_v28, 0.0 }
 0x318   : > { %v2254_v4 = vsub.f32 1.5, %v2253_v24 }
 0x319   : > { %v3076_v51 = vpop.eup %3075  ;;  %v2544_v62 = vadd.f32 %v4550_v3, %v2507_v56  ;;  %v4774_v18 = vadd.f32 %v1705_v9, %v4465_v46  ;;  %v2121_v13 = vadd.f32 1e-05, %v2057_v57  ;;  %v1873_v46 = vmul.f32 %v4770_v59, %v4770_v59 }
 0x31a   : > { %v2255_v0 = vmul.f32 %v3074_v54, %v2254_v4  ;;  %v2261_v17 = vmul.f32 %v3076_v51, %v4755_v48  ;;  %v4778_v42 = vpop.f32.mrf.mxu0  ;;  %vm2267_vm4 = vweird.f32 %v3076_v51 }
 0x31b   : > { %2576 = vst [vmem:[%s4568_s16 + $0x50] sm:$0xff] %v2544_v62  ;;  %3077 = vrsqrt.f32 %v2121_v13  ;;  %v1994_v55 = vmul.f32 %v4778_v42, %v4778_v42  ;;  %v1753_v35 = vpack.c.bf16 %v4774_v18, %v4770_v59  ;;  %v1874_v63 = vmul.f32 %v4774_v18, %v4774_v18  ;;  %vm2268_vm6 = vmor %vm2266_vm5, %vm2267_vm4 }
 0x31c   : > { %v2259_v50 = vsel %vm2258_vm3, %v3074_v54, %v2255_v0  ;;  %v2262_v60 = vmul.f32 %v3076_v51, %v2261_v17  ;;  %v1935_v8 = vpop.f32.mrf.mxu1  ;;  %vm2276_vm8 = vweird.f32 %v2121_v13 }
 0x31d   : > { %v2471_v37 = vmul.f32 %v2259_v50, %v2087_v19  ;;  %v2026_v49 = vsub.f32 %v1935_v8, %v1994_v55  ;;  %1837 = vmatmul.bf16.gmra.mxu0 %v1753_v35  ;;  %v1890_v27 = vpack.c.bf16 %v1874_v63, %v1873_v46 }
 0x31e   : > { %v2263_v53 = vmul.f32 0.5, %v2262_v60 }
 0x31f   : > { %v2508_v22 = vmul.f32 %v4545_v7, %v2471_v37  ;;  %v2058_v29 = vmax.f32 %v2026_v49, 0.0  ;;  %1974 = vmatmul.bf16.gmra.mxu1 %v1890_v27 }
 0x320   : > { %v2264_v36 = vsub.f32 1.5, %v2263_v53 }
 0x321   : > { %v3078_v54 = vpop.eup %3077  ;;  %v2545_v12 = vadd.f32 %v4550_v3, %v2508_v22  ;;  %v2122_v6 = vadd.f32 1e-05, %v2058_v29  ;;  %v2090_v22 = vsub.f32 %v4484_v41, %v4778_v42 }
 0x322   : > { %v2265_v52 = vmul.f32 %v3076_v51, %v2264_v36  ;;  %v2271_v38 = vmul.f32 %v3078_v54, %v2121_v13  ;;  %v4794_v32 = vpop.f32.mrf.mxu0  ;;  %vm2277_vm7 = vweird.f32 %v3078_v54 }
 0x323   : > { %2577 = vst [vmem:[%s4568_s16 + $0x58] sm:$0xff] %v2545_v12  ;;  %3079 = vrsqrt.f32 %v2122_v6  ;;  %v1995_v21 = vmul.f32 %v4794_v32, %v4794_v32  ;;  %vm2278_vm9 = vmor %vm2276_vm8, %vm2277_vm7  ;;  %vm2286_vm11 = vweird.f32 %v2122_v6 }
 0x324   : > { %v2269_v1 = vsel %vm2268_vm6, %v3076_v51, %v2265_v52  ;;  %v2272_v34 = vmul.f32 %v3078_v54, %v2271_v38  ;;  %v1937_v40 = vpop.f32.mrf.mxu1  ;;  %v2089_v51 = vsub.f32 %v4473_v39, %v4759_v31 }
 0x325   : > { %v2472_v11 = vmul.f32 %v2269_v1, %v2088_v20  ;;  %v2027_v28 = vsub.f32 %v1937_v40, %v1995_v21 }
 0x326   : > { %v2273_v24 = vmul.f32 0.5, %v2272_v34 }
 0x327   : > { %v2509_v48 = vmul.f32 %v4545_v7, %v2472_v11  ;;  %v2059_v56 = vmax.f32 %v2027_v28, 0.0  ;;  %v2091_v28 = vsub.f32 %v4487_v43, %v4794_v32 }
 0x328   : > { %v2274_v9 = vsub.f32 1.5, %v2273_v24 }
 0x329   : > { %v3080_v57 = vpop.eup %3079  ;;  %v2546_v25 = vadd.f32 %v4550_v3, %v2509_v48  ;;  %v2123_v26 = vadd.f32 1e-05, %v2059_v56 }
 0x32a   : > { %v2275_v4 = vmul.f32 %v3078_v54, %v2274_v9  ;;  %v2281_v62 = vmul.f32 %v3080_v57, %v2122_v6  ;;  %v4803_v0 = vpop.f32.mrf.mxu0  ;;  %vm2287_vm10 = vweird.f32 %v3080_v57 }
 0x32b   : > { %2578 = vst [vmem:[%s4568_s16 + $0x60] sm:$0xff] %v2546_v25  ;;  %3081 = vrsqrt.f32 %v2123_v26  ;;  %v1996_v17 = vmul.f32 %v4803_v0, %v4803_v0  ;;  %vm2288_vm12 = vmor %vm2286_vm11, %vm2287_vm10  ;;  %vm2296_vm14 = vweird.f32 %v2123_v26 }
 0x32c   : > { %v2279_v19 = vsel %vm2278_vm9, %v3078_v54, %v2275_v4  ;;  %v2282_v55 = vmul.f32 %v3080_v57, %v2281_v62  ;;  %v1940_v46 = vpop.f32.mrf.mxu1 }
 0x32d   : > { %v2473_v50 = vmul.f32 %v2279_v19, %v2089_v51  ;;  %v2028_v60 = vsub.f32 %v1940_v46, %v1996_v17 }
 0x32e   : > { %v2283_v8 = vmul.f32 0.5, %v2282_v55 }
 0x32f   : > { %v2510_v13 = vmul.f32 %v4545_v7, %v2473_v50  ;;  %v2060_v35 = vmax.f32 %v2028_v60, 0.0  ;;  %v2092_v50 = vsub.f32 %v4498_v30, %v4803_v0 }
 0x330   : > { %v2284_v63 = vsub.f32 1.5, %v2283_v8 }
 0x331   : > { %v3082_v37 = vpop.eup %3081  ;;  %v2547_v39 = vadd.f32 %v4550_v3, %v2510_v13  ;;  %v2124_v31 = vadd.f32 1e-05, %v2060_v35 }
 0x332   : > { %v2285_v49 = vmul.f32 %v3080_v57, %v2284_v63  ;;  %v2291_v53 = vmul.f32 %v3082_v37, %v2123_v26  ;;  %v4812_v27 = vpop.f32.mrf.mxu0  ;;  %vm2297_vm13 = vweird.f32 %v3082_v37 }
 0x333   : > { %2579 = vst [vmem:[%s4568_s16 + $0x68] sm:$0xff] %v2547_v39  ;;  %3083 = vrsqrt.f32 %v2124_v31  ;;  %v1997_v29 = vmul.f32 %v4812_v27, %v4812_v27  ;;  %vm2298_vm15 = vmor %vm2296_vm14, %vm2297_vm13  ;;  %vm2306_vm1 = vweird.f32 %v2124_v31 }
 0x334   : > { %v2289_v36 = vsel %vm2288_vm12, %v3080_v57, %v2285_v49  ;;  %v2292_v54 = vmul.f32 %v3082_v37, %v2291_v53  ;;  %v1942_v12 = vpop.f32.mrf.mxu1 }
 0x335   : > { %v2474_v52 = vmul.f32 %v2289_v36, %v2090_v22  ;;  %v2029_v38 = vsub.f32 %v1942_v12, %v1997_v29  ;;  %v2093_v36 = vsub.f32 %v4501_v14, %v4812_v27 }
 0x336   : > { %v2293_v20 = vmul.f32 0.5, %v2292_v54 }
 0x337   : > { %v2511_v6 = vmul.f32 %v4545_v7, %v2474_v52  ;;  %v2061_v21 = vmax.f32 %v2029_v38, 0.0 }
 0x338   : > { %v2294_v1 = vsub.f32 1.5, %v2293_v20 }
 0x339   : > { %v3084_v34 = vpop.eup %3083  ;;  %v2548_v41 = vadd.f32 %v4550_v3, %v2511_v6  ;;  %v2125_v42 = vadd.f32 1e-05, %v2061_v21 }
 0x33a   : > { %v2295_v40 = vmul.f32 %v3082_v37, %v2294_v1  ;;  %v2301_v11 = vmul.f32 %v3084_v34, %v2124_v31  ;;  %v4824_v24 = vpop.f32.mrf.mxu0  ;;  %vm2307_vm0 = vweird.f32 %v3084_v34 }
 0x33b   : > { %2580 = vst [vmem:[%s4568_s16 + $0x70] sm:$0xff] %v2548_v41  ;;  %3085 = vrsqrt.f32 %v2125_v42  ;;  %v1998_v9 = vmul.f32 %v4824_v24, %v4824_v24  ;;  %vm2308_vm2 = vmor %vm2306_vm1, %vm2307_vm0  ;;  %vm2316_vm4 = vweird.f32 %v2125_v42 }
 0x33c   : > { %v2299_v48 = vsel %vm2298_vm15, %v3082_v37, %v2295_v40  ;;  %v2302_v56 = vmul.f32 %v3084_v34, %v2301_v11  ;;  %v1945_v25 = vpop.f32.mrf.mxu1 }
 0x33d   : > { %v2475_v57 = vmul.f32 %v2299_v48, %v2091_v28  ;;  %v2030_v62 = vsub.f32 %v1945_v25, %v1998_v9  ;;  %v2094_v9 = vsub.f32 %v4520_v45, %v4824_v24 }
 0x33e   : > { %v2303_v4 = vmul.f32 0.5, %v2302_v56 }
 0x33f   : > { %v2512_v26 = vmul.f32 %v4545_v7, %v2475_v57  ;;  %v2062_v17 = vmax.f32 %v2030_v62, 0.0 }
 0x340   : > { %v2304_v51 = vsub.f32 1.5, %v2303_v4 }
 0x341   : > { %v3086_v43 = vpop.eup %3085  ;;  %v2549_v32 = vadd.f32 %v4550_v3, %v2512_v26  ;;  %v2126_v46 = vadd.f32 1e-05, %v2062_v17 }
 0x342   : > { %v2305_v19 = vmul.f32 %v3084_v34, %v2304_v51  ;;  %v2311_v55 = vmul.f32 %v3086_v43, %v2125_v42  ;;  %v4833_v60 = vpop.f32.mrf.mxu0  ;;  %vm2317_vm3 = vweird.f32 %v3086_v43 }
 0x343   : > { %2581 = vst [vmem:[%s4568_s16 + $0x78] sm:$0xff] %v2549_v32  ;;  %3087 = vrsqrt.f32 %v2126_v46  ;;  %v1999_v63 = vmul.f32 %v4833_v60, %v4833_v60  ;;  %vm2318_vm5 = vmor %vm2316_vm4, %vm2317_vm3  ;;  %vm2326_vm7 = vweird.f32 %v2126_v46 }
 0x344   : > { %v2309_v8 = vsel %vm2308_vm2, %v3084_v34, %v2305_v19  ;;  %v2312_v13 = vmul.f32 %v3086_v43, %v2311_v55  ;;  %v1947_v37 = vpop.f32.mrf.mxu1 }
 0x345   : > { %v2476_v35 = vmul.f32 %v2309_v8, %v2092_v50  ;;  %v2031_v49 = vsub.f32 %v1947_v37, %v1999_v63 }
 0x346   : > { %v2313_v39 = vmul.f32 0.5, %v2312_v13 }
 0x347   : > { %v2513_v31 = vmul.f32 %v4545_v7, %v2476_v35  ;;  %v2063_v0 = vmax.f32 %v2031_v49, 0.0 }
 0x348   : > { %v2314_v53 = vsub.f32 1.5, %v2313_v39 }
 0x349   : > { %v2550_v30 = vadd.f32 %v4550_v3, %v2513_v31  ;;  %v3088_v22 = vpop.eup %3087  ;;  %v2127_v12 = vadd.f32 1e-05, %v2063_v0  ;;  %v4867_v0 = vld [vmem:[%s5001_s3 + $0x1] ss:$0 sm:$0xff] }
 0x34a   : > { %v2315_v29 = vmul.f32 %v3086_v43, %v2314_v53  ;;  %v2321_v54 = vmul.f32 %v3088_v22, %v2126_v46  ;;  %v4842_v52 = vpop.f32.mrf.mxu0  ;;  %vm2327_vm6 = vweird.f32 %v3088_v22 }
 0x34b   : > { %2582 = vst [vmem:[%s4568_s16 + $0x80] sm:$0xff] %v2550_v30  ;;  %v2000_v20 = vmul.f32 %v4842_v52, %v4842_v52  ;;  %3089 = vrsqrt.f32 %v2127_v12  ;;  %vm2328_vm8 = vmor %vm2326_vm7, %vm2327_vm6  ;;  %vm2336_vm10 = vweird.f32 %v2127_v12 }
 0x34c   : > { %v2319_v38 = vsel %vm2318_vm5, %v3086_v43, %v2315_v29  ;;  %v2322_v21 = vmul.f32 %v3088_v22, %v2321_v54  ;;  %v1950_v1 = vpop.f32.mrf.mxu1 }
 0x34d   : > { %v2477_v6 = vmul.f32 %v2319_v38, %v2093_v36  ;;  %v2032_v34 = vsub.f32 %v1950_v1, %v2000_v20  ;;  %v2096_v38 = vsub.f32 %v4555_v2, %v4842_v52 }
 0x34e   : > { %v2323_v42 = vmul.f32 0.5, %v2322_v21 }
 0x34f   : > { %v2514_v41 = vmul.f32 %v4545_v7, %v2477_v6  ;;  %v2064_v40 = vmax.f32 %v2032_v34, 0.0 }
 0x350   : > { %v2324_v27 = vsub.f32 1.5, %v2323_v42 }
 0x351   : > { %v2551_v14 = vadd.f32 %v4550_v3, %v2514_v41  ;;  %v2128_v11 = vadd.f32 1e-05, %v2064_v40  ;;  %v3090_v28 = vpop.eup %3089 }
 0x352   : > { %v2325_v48 = vmul.f32 %v3088_v22, %v2324_v27  ;;  %v4849_v56 = vpop.f32.mrf.mxu0  ;;  %v2331_v57 = vmul.f32 %v3090_v28, %v2127_v12  ;;  %vm2337_vm9 = vweird.f32 %v3090_v28 }
 0x353   : > { %2583 = vst [vmem:[%s4568_s16 + $0x88] sm:$0xff] %v2551_v14  ;;  %3091 = vrsqrt.f32 %v2128_v11  ;;  %v2001_v4 = vmul.f32 %v4849_v56, %v4849_v56  ;;  %vm2338_vm11 = vmor %vm2336_vm10, %vm2337_vm9  ;;  %vm2346_vm13 = vweird.f32 %v2128_v11 }
 0x354   : > { %v2329_v25 = vsel %vm2328_vm8, %v3088_v22, %v2325_v48  ;;  %v1952_v62 = vpop.f32.mrf.mxu1  ;;  %v2332_v51 = vmul.f32 %v3090_v28, %v2331_v57 }
 0x355   : > { %v2478_v26 = vmul.f32 %v2329_v25, %v2094_v9  ;;  %v2033_v17 = vsub.f32 %v1952_v62, %v2001_v4  ;;  %v2097_v4 = vsub.f32 %v4559_v10, %v4849_v56 }
 0x356   : > { %v2333_v32 = vmul.f32 0.5, %v2332_v51 }
 0x357   : > { %v2515_v43 = vmul.f32 %v4545_v7, %v2478_v26  ;;  %v2065_v19 = vmax.f32 %v2033_v17, 0.0  ;;  %v2095_v7 = vsub.f32 %v4523_v61, %v4833_v60 }
 0x358   : > { %v2334_v45 = vsub.f32 1.5, %v2333_v32 }
 0x359   : > { %v3092_v55 = vpop.eup %3091  ;;  %v2552_v46 = vadd.f32 %v4550_v3, %v2515_v43  ;;  %v2129_v50 = vadd.f32 1e-05, %v2065_v19 }
 0x35a   : > { %v2341_v24 = vmul.f32 %v3092_v55, %v2128_v11  ;;  %v4857_v8 = vpop.f32.mrf.mxu0  ;;  %v2335_v13 = vmul.f32 %v3090_v28, %v2334_v45  ;;  %vm2347_vm12 = vweird.f32 %v3092_v55  ;;  %v4879_v11 = vld [vmem:[#allocation8 + $0x1] ss:$0 sm:$0xff] }
 0x35b   : > { %2584 = vst [vmem:[%s4568_s16 + $0x90] sm:$0xff] %v2552_v46  ;;  %v2002_v35 = vmul.f32 %v4857_v8, %v4857_v8  ;;  %3093 = vrsqrt.f32 %v2129_v50  ;;  %vm2348_vm14 = vmor %vm2346_vm13, %vm2347_vm12  ;;  %vm2356_vm0 = vweird.f32 %v2129_v50  ;;  %v2098_v56 = vsub.f32 %v4600_v23, %v4857_v8 }
 0x35c   : > { %v2342_v63 = vmul.f32 %v3092_v55, %v2341_v24  ;;  %v1955_v37 = vpop.f32.mrf.mxu1  ;;  %v2339_v39 = vsel %vm2338_vm11, %v3090_v28, %v2335_v13 }
 0x35d   : > { %v2034_v31 = vsub.f32 %v1955_v37, %v2002_v35  ;;  %v2479_v49 = vmul.f32 %v2339_v39, %v2095_v7 }
 0x35e   : > { %v2343_v53 = vmul.f32 0.5, %v2342_v63 }
 0x35f   : > { %v2066_v30 = vmax.f32 %v2034_v31, 0.0  ;;  %v2516_v22 = vmul.f32 %v4867_v0, %v2479_v49 }
 0x360   : > { %v2344_v29 = vsub.f32 1.5, %v2343_v53 }
 0x361   : > { %v2130_v61 = vadd.f32 1e-05, %v2066_v30  ;;  %v3094_v60 = vpop.eup %3093  ;;  %v2553_v36 = vadd.f32 %v4550_v3, %v2516_v22 }
 0x362   : > { %v2345_v54 = vmul.f32 %v3092_v55, %v2344_v29  ;;  %v4871_v12 = vpop.f32.mrf.mxu0  ;;  %v2351_v20 = vmul.f32 %v3094_v60, %v2129_v50  ;;  %vm2357_vm15 = vweird.f32 %v3094_v60 }
 0x363   : > { %3095 = vrsqrt.f32 %v2130_v61  ;;  %2585 = vst [vmem:[%s4568_s16 + $0x98] sm:$0xff] %v2553_v36  ;;  %v2003_v21 = vmul.f32 %v4871_v12, %v4871_v12  ;;  %vm2358_vm1 = vmor %vm2356_vm0, %vm2357_vm15  ;;  %vm2366_vm3 = vweird.f32 %v2130_v61 }
 0x364   : > { %v2349_v6 = vsel %vm2348_vm14, %v3092_v55, %v2345_v54  ;;  %v1957_v1 = vpop.f32.mrf.mxu1  ;;  %v2352_v41 = vmul.f32 %v3094_v60, %v2351_v20  ;;  %v2099_v20 = vsub.f32 %v4604_v58, %v4871_v12 }
 0x365   : > { %v2480_v34 = vmul.f32 %v2349_v6, %v2096_v38  ;;  %v2035_v3 = vsub.f32 %v1957_v1, %v2003_v21 }
 0x366   : > { %v2353_v40 = vmul.f32 0.5, %v2352_v41 }
 0x367   : > { %v2517_v42 = vmul.f32 %v4867_v0, %v2480_v34  ;;  %v2067_v14 = vmax.f32 %v2035_v3, 0.0 }
 0x368   : > { %v2354_v52 = vsub.f32 1.5, %v2353_v40 }
 0x369   : > { %v3096_v27 = vpop.eup %3095  ;;  %v2554_v2 = vadd.f32 %v4879_v11, %v2517_v42  ;;  %v2131_v48 = vadd.f32 1e-05, %v2067_v14 }
 0x36a   : > { %v2361_v28 = vmul.f32 %v3096_v27, %v2130_v61  ;;  %v4882_v9 = vpop.f32.mrf.mxu0  ;;  %v2355_v57 = vmul.f32 %v3094_v60, %v2354_v52  ;;  %vm2367_vm2 = vweird.f32 %v3096_v27 }
 0x36b   : > { %2586 = vst [vmem:[%s4568_s16 + $0xa0] sm:$0xff] %v2554_v2  ;;  %v2004_v25 = vmul.f32 %v4882_v9, %v4882_v9  ;;  %3097 = vrsqrt.f32 %v2131_v48  ;;  %vm2368_vm4 = vmor %vm2366_vm3, %vm2367_vm2  ;;  %vm2376_vm6 = vweird.f32 %v2131_v48  ;;  %v2100_v12 = vsub.f32 %v4644_v5, %v4882_v9 }
 0x36c   : > { %v2362_v62 = vmul.f32 %v3096_v27, %v2361_v28  ;;  %v1960_v26 = vpop.f32.mrf.mxu1  ;;  %v2359_v51 = vsel %vm2358_vm1, %v3094_v60, %v2355_v57 }
 0x36d   : > { %v2036_v17 = vsub.f32 %v1960_v26, %v2004_v25  ;;  %v2481_v43 = vmul.f32 %v2359_v51, %v2097_v4 }
 0x36e   : > { %v2363_v32 = vmul.f32 0.5, %v2362_v62 }
 0x36f   : > { %v2068_v19 = vmax.f32 %v2036_v17, 0.0  ;;  %v2518_v55 = vmul.f32 %v4867_v0, %v2481_v43 }
 0x370   : > { %v2364_v46 = vsub.f32 1.5, %v2363_v32 }
 0x371   : > { %v2132_v45 = vadd.f32 1e-05, %v2068_v19  ;;  %v3098_v24 = vpop.eup %3097  ;;  %v2555_v50 = vadd.f32 %v4879_v11, %v2518_v55 }
 0x372   : > { %v2365_v13 = vmul.f32 %v3096_v27, %v2364_v46  ;;  %v4891_v10 = vpop.f32.mrf.mxu0  ;;  %v2371_v35 = vmul.f32 %v3098_v24, %v2131_v48  ;;  %vm2377_vm5 = vweird.f32 %v3098_v24 }
 0x373   : > { %3099 = vrsqrt.f32 %v2132_v45  ;;  %2587 = vst [vmem:[%s4568_s16 + $0xa8] sm:$0xff] %v2555_v50  ;;  %v2005_v63 = vmul.f32 %v4891_v10, %v4891_v10  ;;  %vm2378_vm7 = vmor %vm2376_vm6, %vm2377_vm5  ;;  %vm2386_vm9 = vweird.f32 %v2132_v45 }
 0x374   : > { %v2369_v7 = vsel %vm2368_vm4, %v3096_v27, %v2365_v13  ;;  %v1962_v37 = vpop.f32.mrf.mxu1  ;;  %v2372_v31 = vmul.f32 %v3098_v24, %v2371_v35  ;;  %v2101_v13 = vsub.f32 %v4648_v16, %v4891_v10 }
 0x375   : > { %v2482_v39 = vmul.f32 %v2369_v7, %v2098_v56  ;;  %v2037_v49 = vsub.f32 %v1962_v37, %v2005_v63 }
 0x376   : > { %v2373_v30 = vmul.f32 0.5, %v2372_v31 }
 0x377   : > { %v2519_v53 = vmul.f32 %v4867_v0, %v2482_v39  ;;  %v2069_v22 = vmax.f32 %v2037_v49, 0.0 }
 0x378   : > { %v2374_v8 = vsub.f32 1.5, %v2373_v30 }
 0x379   : > { %v3100_v29 = vpop.eup %3099  ;;  %v2556_v23 = vadd.f32 %v4879_v11, %v2519_v53  ;;  %v2133_v60 = vadd.f32 1e-05, %v2069_v22 }
 0x37a   : > { %v2381_v61 = vmul.f32 %v3100_v29, %v2132_v45  ;;  %v4900_v36 = vpop.f32.mrf.mxu0  ;;  %v2375_v54 = vmul.f32 %v3098_v24, %v2374_v8  ;;  %vm2387_vm8 = vweird.f32 %v3100_v29 }
 0x37b   : > { %2588 = vst [vmem:[%s4568_s16 + $0xb0] sm:$0xff] %v2556_v23  ;;  %v2006_v38 = vmul.f32 %v4900_v36, %v4900_v36  ;;  %3101 = vrsqrt.f32 %v2133_v60  ;;  %vm2388_vm10 = vmor %vm2386_vm9, %vm2387_vm8  ;;  %vm2396_vm12 = vweird.f32 %v2133_v60  ;;  %v2102_v10 = vsub.f32 %v4686_v47, %v4900_v36 }
 0x37c   : > { %v2382_v6 = vmul.f32 %v3100_v29, %v2381_v61  ;;  %v1965_v21 = vpop.f32.mrf.mxu1  ;;  %v2379_v1 = vsel %vm2378_vm7, %v3098_v24, %v2375_v54 }
 0x37d   : > { %v2038_v34 = vsub.f32 %v1965_v21, %v2006_v38  ;;  %v2483_v41 = vmul.f32 %v2379_v1, %v2099_v20 }
 0x37e   : > { %v2383_v3 = vmul.f32 0.5, %v2382_v6 }
 0x37f   : > { %v2070_v42 = vmax.f32 %v2038_v34, 0.0  ;;  %v2520_v40 = vmul.f32 %v4867_v0, %v2483_v41 }
 0x380   : > { %v2384_v14 = vsub.f32 1.5, %v2383_v3 }
 0x381   : > { %v2134_v27 = vadd.f32 1e-05, %v2070_v42  ;;  %v3102_v2 = vpop.eup %3101  ;;  %v2557_v52 = vadd.f32 %v4879_v11, %v2520_v40 }
 0x382   : > { %v2385_v28 = vmul.f32 %v3100_v29, %v2384_v14  ;;  %v4909_v58 = vpop.f32.mrf.mxu0  ;;  %v2391_v48 = vmul.f32 %v3102_v2, %v2133_v60  ;;  %vm2397_vm11 = vweird.f32 %v3102_v2 }
 0x383   : > { %3103 = vrsqrt.f32 %v2134_v27  ;;  %2589 = vst [vmem:[%s4568_s16 + $0xb8] sm:$0xff] %v2557_v52  ;;  %v2007_v25 = vmul.f32 %v4909_v58, %v4909_v58  ;;  %vm2398_vm13 = vmor %vm2396_vm12, %vm2397_vm11  ;;  %vm2406_vm15 = vweird.f32 %v2134_v27 }
 0x384   : > { %v2389_v57 = vsel %vm2388_vm10, %v3100_v29, %v2385_v28  ;;  %v1967_v4 = vpop.f32.mrf.mxu1  ;;  %v2392_v26 = vmul.f32 %v3102_v2, %v2391_v48 }
 0x385   : > { %v2484_v62 = vmul.f32 %v2389_v57, %v2100_v12  ;;  %v2039_v51 = vsub.f32 %v1967_v4, %v2007_v25 }
 0x386   : > { %v2393_v43 = vmul.f32 0.5, %v2392_v26 }
 0x387   : > { %v2521_v17 = vmul.f32 %v4867_v0, %v2484_v62  ;;  %v2071_v32 = vmax.f32 %v2039_v51, 0.0 }
 0x388   : > { %v2394_v9 = vsub.f32 1.5, %v2393_v43 }
 0x389   : > { %v3104_v19 = vpop.eup %3103  ;;  %v2558_v5 = vadd.f32 %v4879_v11, %v2521_v17  ;;  %v2135_v46 = vadd.f32 1e-05, %v2071_v32 }
 0x38a   : > { %v2401_v55 = vmul.f32 %v3104_v19, %v2134_v27  ;;  %v4918_v45 = vpop.f32.mrf.mxu0  ;;  %v2395_v24 = vmul.f32 %v3102_v2, %v2394_v9  ;;  %vm2407_vm14 = vweird.f32 %v3104_v19 }
 0x38b   : > { %2590 = vst [vmem:[%s4568_s16 + $0xc0] sm:$0xff] %v2558_v5  ;;  %v2008_v50 = vmul.f32 %v4918_v45, %v4918_v45  ;;  %3105 = vrsqrt.f32 %v2135_v46  ;;  %vm2408_vm0 = vmor %vm2406_vm15, %vm2407_vm14  ;;  %vm2416_vm2 = vweird.f32 %v2135_v46 }
 0x38c   : > { %v2402_v56 = vmul.f32 %v3104_v19, %v2401_v55  ;;  %v1970_v35 = vpop.f32.mrf.mxu1  ;;  %v2399_v7 = vsel %vm2398_vm13, %v3102_v2, %v2395_v24  ;;  %v2103_v2 = vsub.f32 %v4690_v33, %v4909_v58  ;;  %v2104_v58 = vsub.f32 %v4728_v44, %v4918_v45 }
 0x38d   : > { %v2040_v63 = vsub.f32 %v1970_v35, %v2008_v50  ;;  %v2485_v37 = vmul.f32 %v2399_v7, %v2101_v13 }
 0x38e   : > { %v2403_v39 = vmul.f32 0.5, %v2402_v56 }
 0x38f   : > { %v2072_v31 = vmax.f32 %v2040_v63, 0.0  ;;  %v2522_v49 = vmul.f32 %v4867_v0, %v2485_v37 }
 0x390   : > { %v2404_v53 = vsub.f32 1.5, %v2403_v39 }
 0x391   : > { %v2136_v30 = vadd.f32 1e-05, %v2072_v31  ;;  %v3106_v22 = vpop.eup %3105  ;;  %v2559_v29 = vadd.f32 %v4879_v11, %v2522_v49 }
 0x392   : > { %v2405_v23 = vmul.f32 %v3104_v19, %v2404_v53  ;;  %v4927_v16 = vpop.f32.mrf.mxu0  ;;  %v2411_v8 = vmul.f32 %v3106_v22, %v2135_v46  ;;  %vm2417_vm1 = vweird.f32 %v3106_v22 }
 0x393   : > { %3107 = vrsqrt.f32 %v2136_v30  ;;  %2591 = vst [vmem:[%s4568_s16 + $0xc8] sm:$0xff] %v2559_v29  ;;  %v2009_v60 = vmul.f32 %v4927_v16, %v4927_v16  ;;  %vm2418_vm3 = vmor %vm2416_vm2, %vm2417_vm1  ;;  %vm2426_vm5 = vweird.f32 %v2136_v30  ;;  %v2105_v31 = vsub.f32 %v4732_v15, %v4927_v16 }
 0x394   : > { %v2409_v61 = vsel %vm2408_vm0, %v3104_v19, %v2405_v23  ;;  %v1972_v54 = vpop.f32.mrf.mxu1  ;;  %v2412_v20 = vmul.f32 %v3106_v22, %v2411_v8 }
 0x395   : > { %v2486_v38 = vmul.f32 %v2409_v61, %v2102_v10  ;;  %v2041_v6 = vsub.f32 %v1972_v54, %v2009_v60 }
 0x396   : > { %v2413_v1 = vmul.f32 0.5, %v2412_v20 }
 0x397   : > { %v2523_v21 = vmul.f32 %v4867_v0, %v2486_v38  ;;  %v2073_v34 = vmax.f32 %v2041_v6, 0.0 }
 0x398   : > { %v2414_v36 = vsub.f32 1.5, %v2413_v1 }
 0x399   : > { %v3108_v41 = vpop.eup %3107  ;;  %v2560_v47 = vadd.f32 %v4879_v11, %v2523_v21  ;;  %v2137_v42 = vadd.f32 1e-05, %v2073_v34 }
 0x39a   : > { %v2421_v3 = vmul.f32 %v3108_v41, %v2136_v30  ;;  %v4936_v40 = vpop.f32.mrf.mxu0  ;;  %v2415_v14 = vmul.f32 %v3106_v22, %v2414_v36  ;;  %vm2427_vm4 = vweird.f32 %v3108_v41 }
 0x39b   : > { %2592 = vst [vmem:[%s4568_s16 + $0xd0] sm:$0xff] %v2560_v47  ;;  %v2010_v27 = vmul.f32 %v4936_v40, %v4936_v40  ;;  %3109 = vrsqrt.f32 %v2137_v42  ;;  %vm2428_vm6 = vmor %vm2426_vm5, %vm2427_vm4  ;;  %vm2436_vm8 = vweird.f32 %v2137_v42  ;;  %v2106_v15 = vsub.f32 %v4770_v59, %v4936_v40 }
 0x39c   : > { %v2422_v52 = vmul.f32 %v3108_v41, %v2421_v3  ;;  %v1975_v28 = vpop.f32.mrf.mxu1  ;;  %v2419_v12 = vsel %vm2418_vm3, %v3106_v22, %v2415_v14 }
 0x39d   : > { %v2042_v48 = vsub.f32 %v1975_v28, %v2010_v27  ;;  %v2487_v57 = vmul.f32 %v2419_v12, %v2103_v2 }
 0x39e   : > { %v2423_v25 = vmul.f32 0.5, %v2422_v52 }
 0x39f   : > { %v2074_v4 = vmax.f32 %v2042_v48, 0.0  ;;  %v2524_v62 = vmul.f32 %v4867_v0, %v2487_v57 }
 0x3a0   : > { %v2424_v26 = vsub.f32 1.5, %v2423_v25 }
 0x3a1   : > { %v2138_v51 = vadd.f32 1e-05, %v2074_v4  ;;  %v3110_v17 = vpop.eup %3109  ;;  %v2561_v43 = vadd.f32 %v4879_v11, %v2524_v62 }
 0x3a2   : > { %v2425_v32 = vmul.f32 %v3108_v41, %v2424_v26  ;;  %v1840_v33 = vpop.f32.mrf.mxu0  ;;  %v2431_v19 = vmul.f32 %v3110_v17, %v2137_v42  ;;  %vm2437_vm7 = vweird.f32 %v3110_v17 }
 0x3a3   : > { %3111 = vrsqrt.f32 %v2138_v51  ;;  %2593 = vst [vmem:[%s4568_s16 + $0xd8] sm:$0xff] %v2561_v43  ;;  %v2011_v9 = vmul.f32 %v1840_v33, %v1840_v33  ;;  %vm2438_vm9 = vmor %vm2436_vm8, %vm2437_vm7  ;;  %vm2446_vm11 = vweird.f32 %v2138_v51  ;;  %v2107_v59 = vsub.f32 %v4774_v18, %v1840_v33 }
 0x3a4   : > { %v2429_v5 = vsel %vm2428_vm6, %v3108_v41, %v2425_v32  ;;  %v1977_v55 = vpop.f32.mrf.mxu1  ;;  %v2432_v24 = vmul.f32 %v3110_v17, %v2431_v19 }
 0x3a5   : > { %v2488_v46 = vmul.f32 %v2429_v5, %v2104_v58  ;;  %v2043_v50 = vsub.f32 %v1977_v55, %v2011_v9 }
 0x3a6   : > { %v2433_v56 = vmul.f32 0.5, %v2432_v24 }
 0x3a7   : > { %v2525_v13 = vmul.f32 %v4867_v0, %v2488_v46  ;;  %v2075_v35 = vmax.f32 %v2043_v50, 0.0 }
 0x3a8   : > { %v2434_v37 = vsub.f32 1.5, %v2433_v56 }
 0x3a9   : > { %v3112_v7 = vpop.eup %3111  ;;  %v2562_v63 = vadd.f32 %v4879_v11, %v2525_v13  ;;  %v2139_v45 = vadd.f32 1e-05, %v2075_v35 }
 0x3aa   : > { %v2441_v44 = vmul.f32 %v3112_v7, %v2138_v51  ;;  %v2435_v39 = vmul.f32 %v3110_v17, %v2434_v37  ;;  %vm2447_vm10 = vweird.f32 %v3112_v7 }
 0x3ab   : > { %2594 = vst [vmem:[%s4568_s16 + $0xe0] sm:$0xff] %v2562_v63  ;;  %3113 = vrsqrt.f32 %v2139_v45  ;;  %vm2448_vm12 = vmor %vm2446_vm11, %vm2447_vm10  ;;  %vm2456_vm14 = vweird.f32 %v2139_v45 }
 0x3ac   : > { %v2442_v49 = vmul.f32 %v3112_v7, %v2441_v44  ;;  %v2439_v53 = vsel %vm2438_vm9, %v3110_v17, %v2435_v39 }
 0x3ad   : > { %v2489_v30 = vmul.f32 %v2439_v53, %v2105_v31 }
 0x3ae   : > { %v2443_v22 = vmul.f32 0.5, %v2442_v49 }
 0x3af   : > { %v2526_v29 = vmul.f32 %v4867_v0, %v2489_v30 }
 0x3b0   : > { %v2444_v23 = vsub.f32 1.5, %v2443_v22 }
 0x3b1   : > { %v3114_v10 = vpop.eup %3113  ;;  %v2563_v8 = vadd.f32 %v4879_v11, %v2526_v29 }
 0x3b2   : > { %v2445_v61 = vmul.f32 %v3112_v7, %v2444_v23  ;;  %v2451_v16 = vmul.f32 %v3114_v10, %v2139_v45  ;;  %vm2457_vm13 = vweird.f32 %v3114_v10 }
 0x3b3   : > { %2595 = vst [vmem:[%s4568_s16 + $0xe8] sm:$0xff] %v2563_v8  ;;  %vm2458_vm15 = vmor %vm2456_vm14, %vm2457_vm13 }
 0x3b4   : > { %v2449_v60 = vsel %vm2448_vm12, %v3112_v7, %v2445_v61  ;;  %v2452_v38 = vmul.f32 %v3114_v10, %v2451_v16 }
 0x3b5   : > { %v2490_v54 = vmul.f32 %v2449_v60, %v2106_v15 }
 0x3b6   : > { %v2453_v6 = vmul.f32 0.5, %v2452_v38 }
 0x3b7   : > { %v2527_v20 = vmul.f32 %v4867_v0, %v2490_v54 }
 0x3b8   : > { %v2454_v1 = vsub.f32 1.5, %v2453_v6 }
 0x3b9   : > { %v2564_v21 = vadd.f32 %v4879_v11, %v2527_v20 }
 0x3ba   : > { %v2455_v34 = vmul.f32 %v3114_v10, %v2454_v1 }
 0x3bb   : > { %2596 = vst [vmem:[%s4568_s16 + $0xf0] sm:$0xff] %v2564_v21 }
 0x3bc   : > { %v2459_v41 = vsel %vm2458_vm15, %v3114_v10, %v2455_v34 }
 0x3bd   : > { %v2491_v47 = vmul.f32 %v2459_v41, %v2107_v59 }
 0x3bf   : > { %v2528_v36 = vmul.f32 %v4867_v0, %v2491_v47 }
 0x3c1   : > { %v2565_v3 = vadd.f32 %v4879_v11, %v2528_v36 }
 0x3c3   : > { %2597 = vst [vmem:[%s4568_s16 + $0xf8] sm:$0xff] %v2565_v3 }
 0x3c4   : > { %3297 = shalt.err (!%p3294_p10)
}
 0x3c5   : > { %s3356_s15 = smov 128   ;;  %s3357_s16 = smov 8  }
 0x3c6   : > { %2904 = dma.vmem_to_hbm [thread:$0]  (%p3476_p0), %s2612_s25, 4096, %s2614_s11, %s2599_s27, %s3356_s15, %s3356_s15, %s3357_s16  }
 0x3c7 PF: > { %p2936_p11 = scmp.ge.s32.totalorder %s3344_s24, 2  ;;  %s2628_s29 = sand.u32 1, %s3332_s21  }
 0x3c8   : > { %s2629_s10 = scalar_lea.sflag [#allocation4], %s2628_s29 }
 0x3c9   : > { %p2924_p12 = pnand %p2936_p11, %p3428_p6 }
 0x3cb   : > { %p2925_p13 = pneg %p2924_p12 }
 0x3cd   : > { %3327 = dma.done.wait (%p2925_p13), %s2629_s10, 4096  }
 0x3ce   : > { %3329 = vsyncadd (%p2925_p13), %s2629_s10, 4294963200  ;;  %p21_p3 = scmp.ge.s32.totalorder %s3466_s14, 6   ;;  %s5045_s21 = smov %s3336_s22 }
 0x3cf   : > { %s5046_s22 = smov %s3340_s23  ;;  %s5047_s23 = smov %s3482_s26 }
 0x3d0   : > { %s5048_s24 = smov %s3466_s14  ;;  %23 = sbr.rel (!%p21_p3) target bundleno = 7 (0x7), region = 109 }
 0x3d5   :  { %2635 = vsyncpa [#allocation3], 1 }
 0x3d6   :  { %2637 = vsyncpa [#allocation3 + $0x1], 1 }
 0x3d7   :  { %2638 = vsyncpa [#allocation6], 1 }
 0x3d8   :  { %2639 = vsyncpa [#allocation9], 1 }
 0x3d9   :  { %2640 = vsyncpa [#allocation4], 1 }
 0x3da   :  { %2642 = vsyncpa [#allocation4 + $0x1], 1 }

</bundles_post_ra>
